<compile_context>
chip_gen: v5e
topology: v5e:2x2
jax: 0.10.0
libtpu: 0.0.40
codegen_flags: <defaults>
</compile_context>

<pallas_src>
import numpy as np

import jax
import jax.numpy as jnp
from jax.experimental import pallas as pl
from jax.experimental.pallas import tpu as pltpu


# ----------------------------------------------------------------------------
# One-time parameter packing: build (T, B, bias) banded operands per layer.
#   Activation block for one image: rows = y (0..H-1), lanes = x*C + c.
# ----------------------------------------------------------------------------
def _conv_band(w, b, h_in, w_in, stride):
    """PyTorch Conv2d (padding=0).  w: (Cout, Cin, kh, kw)."""
    w = np.asarray(w, np.float32)
    b = np.asarray(b, np.float32)
    cout, cin, kh, kw = w.shape
    ho = (h_in - kh) // stride + 1
    wo = (w_in - kw) // stride + 1
    T = np.zeros((kh, ho, h_in), np.float32)
    for ky in range(kh):
        for oy in range(ho):
            T[ky, oy, stride * oy + ky] = 1.0
    B = np.zeros((kh, w_in * cin, wo * cout), np.float32)
    for ky in range(kh):
        for ox in range(wo):
            for kx in range(kw):
                ix = stride * ox + kx
                B[ky, ix * cin:(ix + 1) * cin, ox * cout:(ox + 1) * cout] = w[:, :, ky, kx].T
    bias = np.tile(b.reshape(1, 1, cout), (1, wo, 1)).reshape(1, wo * cout)
    return T, B, bias, ho, wo


def _convT_band(w, b, h_in, w_in, stride, out_pad):
    """PyTorch ConvTranspose2d (padding=0).  w: (Cin, Cout, kh, kw)."""
    w = np.asarray(w, np.float32)
    b = np.asarray(b, np.float32)
    cin, cout, kh, kw = w.shape
    ho = (h_in - 1) * stride + kh + out_pad
    wo = (w_in - 1) * stride + kw + out_pad
    T = np.zeros((kh, ho, h_in), np.float32)
    for ky in range(kh):
        for iy in range(h_in):
            T[ky, stride * iy + ky, iy] = 1.0
    B = np.zeros((kh, w_in * cin, wo * cout), np.float32)
    for ky in range(kh):
        for ix in range(w_in):
            for kx in range(kw):
                ox = stride * ix + kx
                B[ky, ix * cin:(ix + 1) * cin, ox * cout:(ox + 1) * cout] = w[:, :, ky, kx]
    bias = np.tile(b.reshape(1, 1, cout), (1, wo, 1)).reshape(1, wo * cout)
    return T, B, bias, ho, wo


_LATENT_ROWS = 8  # latent block padded to 8 rows (one sublane tile); row 0 is the latent


def _enc_fc_band(w, b, d):
    """nn.Linear(128, d) applied to the NCHW-flattened (32,2,2) block.

    PyTorch flatten index = c*4 + y*2 + x; our block has rows=y, lanes=x*32+c.
    Expressed as 2 y-taps so no in-kernel reshape is needed.  Output block is
    (_LATENT_ROWS, d) with only row 0 meaningful.
    """
    w = np.asarray(w, np.float32)          # (d, 128)
    b = np.asarray(b, np.float32)          # (d,)
    T = np.zeros((2, _LATENT_ROWS, 2), np.float32)
    for ky in range(2):
        T[ky, 0, ky] = 1.0
    B = np.zeros((2, 2 * 32, d), np.float32)
    for y in range(2):
        for x in range(2):
            for c in range(32):
                B[y, x * 32 + c, :] = w[:, c * 4 + y * 2 + x]
    bias = b.reshape(1, d)
    return T, B, bias


def _dec_fc_band(w, b, d):
    """nn.Linear(d, 128) followed by .view(32, 2, 2) -> our (2, 64) block."""
    w = np.asarray(w, np.float32)          # (128, d)
    b = np.asarray(b, np.float32)          # (128,)
    T = np.zeros((2, 2, _LATENT_ROWS), np.float32)
    for ky in range(2):
        T[ky, ky, 0] = 1.0
    B = np.zeros((2, d, 2 * 32), np.float32)
    bias = np.zeros((2, 2 * 32), np.float32)
    for y in range(2):
        for x in range(2):
            for c in range(32):
                B[y, :, x * 32 + c] = w[c * 4 + y * 2 + x, :]
                bias[y, x * 32 + c] = b[c * 4 + y * 2 + x]
    return T, B, bias


def pack_params(raw, d):
    """Build the ordered per-layer (T, B, bias, relu) list.  Runs once at init."""
    L = []
    T, B, bs, h, w = _conv_band(raw['e_c1_w'], raw['e_c1_b'], 28, 28, 2); L.append((T, B, bs, True))
    T, B, bs, h, w = _conv_band(raw['e_c2_w'], raw['e_c2_b'], h, w, 1);   L.append((T, B, bs, True))
    T, B, bs, h, w = _conv_band(raw['e_c3_w'], raw['e_c3_b'], h, w, 2);   L.append((T, B, bs, True))
    T, B, bs, h, w = _conv_band(raw['e_c4_w'], raw['e_c4_b'], h, w, 1);   L.append((T, B, bs, True))
    assert (h, w) == (2, 2)
    T, B, bs = _enc_fc_band(raw['e_fc_w'], raw['e_fc_b'], d);             L.append((T, B, bs, True))
    T, B, bs = _dec_fc_band(raw['d_fc_w'], raw['d_fc_b'], d);             L.append((T, B, bs, False))
    T, B, bs, h, w = _convT_band(raw['d_c1_w'], raw['d_c1_b'], 2, 2, 1, 0); L.append((T, B, bs, True))
    T, B, bs, h, w = _convT_band(raw['d_c2_w'], raw['d_c2_b'], h, w, 2, 1); L.append((T, B, bs, True))
    T, B, bs, h, w = _convT_band(raw['d_c3_w'], raw['d_c3_b'], h, w, 2, 1); L.append((T, B, bs, True))
    T, B, bs, h, w = _convT_band(raw['d_c4_w'], raw['d_c4_b'], h, w, 1, 0); L.append((T, B, bs, True))
    T, B, bs, h, w = _convT_band(raw['d_c5_w'], raw['d_c5_b'], h, w, 1, 0); L.append((T, B, bs, False))
    assert (h, w) == (28, 28)

    packed, relus = [], []
    for T, B, bs, relu in L:
        packed.append((jnp.asarray(T, jnp.float32),       # exact 0/1 row coupling
                       jnp.asarray(B, jnp.bfloat16),      # bf16 weights -> MXU
                       jnp.asarray(bs, jnp.float32)))     # f32 bias
        relus.append(relu)
    return packed, tuple(relus)


# ----------------------------------------------------------------------------
# Fused forward: single pallas_call, grid over the batch.
# ----------------------------------------------------------------------------
def _const_index_map(ndim):
    if ndim == 2:
        return lambda n: (0, 0)
    return lambda n: (0, 0, 0)


def build_forward(packed, relus, batch, h=28, w=28):
    flat = []
    for T, B, bias in packed:
        flat.extend([T, B, bias])
    n_layers = len(packed)

    def kernel(*refs):
        x_ref = refs[0]
        p_refs = refs[1:1 + 3 * n_layers]
        out_ref = refs[1 + 3 * n_layers]

        a = x_ref[0]                                   # (28, 28) f32: rows=y, lanes=x
        for li in range(n_layers):
            T_ref = p_refs[3 * li]
            B_ref = p_refs[3 * li + 1]
            bias_ref = p_refs[3 * li + 2]
            kh = T_ref.shape[0]
            a_lo = a.astype(jnp.bfloat16)
            acc = None
            for ky in range(kh):
                # lane-dense banded GEMM (folds x-taps / x-stride / dilation)
                p = jnp.dot(a_lo, B_ref[ky], preferred_element_type=jnp.float32)
                # 0/1 row coupling (folds y-taps / y-stride / dilation), exact f32
                c = jnp.dot(T_ref[ky], p, preferred_element_type=jnp.float32)
                acc = c if acc is None else acc + c
            acc = acc + bias_ref[...]
            if relus[li]:
                acc = jnp.maximum(acc, 0.0)
            a = acc
        out_ref[0] = a                                 # (28, 28) f32

    in_specs = [pl.BlockSpec((1, h, w), lambda n: (n, 0, 0))]
    for arr in flat:
        in_specs.append(pl.BlockSpec(arr.shape, _const_index_map(arr.ndim)))
    out_spec = pl.BlockSpec((1, h, w), lambda n: (n, 0, 0))

    call = pl.pallas_call(
        kernel,
        out_shape=jax.ShapeDtypeStruct((batch, h, w), jnp.float32),
        grid=(batch,),
        in_specs=in_specs,
        out_specs=out_spec,
        compiler_params=pltpu.CompilerParams(
            dimension_semantics=("parallel",)),   # v7x: batch shards across 2 TCs
    )

    def forward(x_nchw):
        x3 = x_nchw.reshape(batch, h, w).astype(jnp.float32)   # C=1 -> drop channel dim
        y = call(x3, *flat)
        return y.reshape(batch, 1, h, w)

    return jax.jit(forward)


# ----------------------------------------------------------------------------
# Deterministic raw parameter init (same shapes as the nn.Module __init__)
# ----------------------------------------------------------------------------
def init_raw_params(d, key):
    keys = jax.random.split(key, 11)

    def conv_init(k, cout, cin, kh, kw):
        bound = 1.0 / float(cin * kh * kw) ** 0.5
        k1, k2 = jax.random.split(k)
        return (jax.random.uniform(k1, (cout, cin, kh, kw), jnp.float32, -bound, bound),
                jax.random.uniform(k2, (cout,), jnp.float32, -bound, bound))

    def tconv_init(k, cin, cout, kh, kw):
        bound = 1.0 / float(cout * kh * kw) ** 0.5
        k1, k2 = jax.random.split(k)
        return (jax.random.uniform(k1, (cin, cout, kh, kw), jnp.float32, -bound, bound),
                jax.random.uniform(k2, (cout,), jnp.float32, -bound, bound))

    def fc_init(k, dout, din):
        bound = 1.0 / float(din) ** 0.5
        k1, k2 = jax.random.split(k)
        return (jax.random.uniform(k1, (dout, din), jnp.float32, -bound, bound),
                jax.random.uniform(k2, (dout,), jnp.float32, -bound, bound))

    p = {}
    p['e_c1_w'], p['e_c1_b'] = conv_init(keys[0], 4, 1, 5, 5)
    p['e_c2_w'], p['e_c2_b'] = conv_init(keys[1], 8, 4, 3, 3)
    p['e_c3_w'], p['e_c3_b'] = conv_init(keys[2], 16, 8, 3, 3)
    p['e_c4_w'], p['e_c4_b'] = conv_init(keys[3], 32, 16, 3, 3)
    p['e_fc_w'], p['e_fc_b'] = fc_init(keys[4], d, 32 * 4)
    p['d_fc_w'], p['d_fc_b'] = fc_init(keys[5], 32 * 2 * 2, d)
    p['d_c1_w'], p['d_c1_b'] = tconv_init(keys[6], 32, 32, 3, 3)
    p['d_c2_w'], p['d_c2_b'] = tconv_init(keys[7], 32, 16, 3, 3)
    p['d_c3_w'], p['d_c3_b'] = tconv_init(keys[8], 16, 8, 3, 3)
    p['d_c4_w'], p['d_c4_b'] = tconv_init(keys[9], 8, 4, 3, 3)
    p['d_c5_w'], p['d_c5_b'] = tconv_init(keys[10], 4, 1, 5, 5)
    return p


if __name__ == "__main__":
    d = 32
    batch = 2
    key = jax.random.PRNGKey(0)
    k_params, k_x = jax.random.split(key)

    raw = init_raw_params(d, k_params)
    packed, relus = pack_params(raw, d)       # one-time weight transform (hoisted)
    x = jax.random.normal(k_x, (batch, 1, 28, 28), jnp.float32)

    fwd = build_forward(packed, relus, batch)
    y = jax.block_until_ready(fwd(x))

    assert y.shape == (batch, 1, 28, 28), y.shape
    assert y.dtype == jnp.float32
    assert bool(jnp.all(jnp.isfinite(y)))
    print("KERNEL_OK")
</pallas_src>

<mosaic_0001>
module attributes {stable_mosaic.version = 11 : i64} {
  func.func @kernel(%arg0: i32, %arg1: memref<1x28x28xf32, #tpu.memory_space<vmem>>, %arg2: memref<5x12x28xf32, #tpu.memory_space<vmem>>, %arg3: memref<5x28x48xbf16, #tpu.memory_space<vmem>>, %arg4: memref<1x48xf32, #tpu.memory_space<vmem>>, %arg5: memref<3x10x12xf32, #tpu.memory_space<vmem>>, %arg6: memref<3x48x80xbf16, #tpu.memory_space<vmem>>, %arg7: memref<1x80xf32, #tpu.memory_space<vmem>>, %arg8: memref<3x4x10xf32, #tpu.memory_space<vmem>>, %arg9: memref<3x80x64xbf16, #tpu.memory_space<vmem>>, %arg10: memref<1x64xf32, #tpu.memory_space<vmem>>, %arg11: memref<3x2x4xf32, #tpu.memory_space<vmem>>, %arg12: memref<3x64x64xbf16, #tpu.memory_space<vmem>>, %arg13: memref<1x64xf32, #tpu.memory_space<vmem>>, %arg14: memref<2x8x2xf32, #tpu.memory_space<vmem>>, %arg15: memref<2x64x32xbf16, #tpu.memory_space<vmem>>, %arg16: memref<1x32xf32, #tpu.memory_space<vmem>>, %arg17: memref<2x2x8xf32, #tpu.memory_space<vmem>>, %arg18: memref<2x32x64xbf16, #tpu.memory_space<vmem>>, %arg19: memref<2x64xf32, #tpu.memory_space<vmem>>, %arg20: memref<3x4x2xf32, #tpu.memory_space<vmem>>, %arg21: memref<3x64x128xbf16, #tpu.memory_space<vmem>>, %arg22: memref<1x128xf32, #tpu.memory_space<vmem>>, %arg23: memref<3x10x4xf32, #tpu.memory_space<vmem>>, %arg24: memref<3x128x160xbf16, #tpu.memory_space<vmem>>, %arg25: memref<1x160xf32, #tpu.memory_space<vmem>>, %arg26: memref<3x22x10xf32, #tpu.memory_space<vmem>>, %arg27: memref<3x160x176xbf16, #tpu.memory_space<vmem>>, %arg28: memref<1x176xf32, #tpu.memory_space<vmem>>, %arg29: memref<3x24x22xf32, #tpu.memory_space<vmem>>, %arg30: memref<3x176x96xbf16, #tpu.memory_space<vmem>>, %arg31: memref<1x96xf32, #tpu.memory_space<vmem>>, %arg32: memref<5x28x24xf32, #tpu.memory_space<vmem>>, %arg33: memref<5x96x28xbf16, #tpu.memory_space<vmem>>, %arg34: memref<1x28xf32, #tpu.memory_space<vmem>>, %arg35: memref<1x28x28xf32, #tpu.memory_space<vmem>>) attributes {dimension_semantics = [#tpu.dimension_semantics<parallel>], iteration_bounds = array<i64: 2>, scalar_prefetch = 0 : i64, scratch_operands = 0 : i64, tpu.core_type = #tpu.core_type<tc>, window_params = [{transform_indices = @transform_0, window_bounds = array<i64: 1, 28, 28>}, {pipeline_mode = #tpu.pipeline_mode<synchronous>, transform_indices = @transform_1, window_bounds = array<i64: 5, 12, 28>}, {pipeline_mode = #tpu.pipeline_mode<synchronous>, transform_indices = @transform_2, window_bounds = array<i64: 5, 28, 48>}, {pipeline_mode = #tpu.pipeline_mode<synchronous>, transform_indices = @transform_3, window_bounds = array<i64: 1, 48>}, {pipeline_mode = #tpu.pipeline_mode<synchronous>, transform_indices = @transform_4, window_bounds = array<i64: 3, 10, 12>}, {pipeline_mode = #tpu.pipeline_mode<synchronous>, transform_indices = @transform_5, window_bounds = array<i64: 3, 48, 80>}, {pipeline_mode = #tpu.pipeline_mode<synchronous>, transform_indices = @transform_6, window_bounds = array<i64: 1, 80>}, {pipeline_mode = #tpu.pipeline_mode<synchronous>, transform_indices = @transform_7, window_bounds = array<i64: 3, 4, 10>}, {pipeline_mode = #tpu.pipeline_mode<synchronous>, transform_indices = @transform_8, window_bounds = array<i64: 3, 80, 64>}, {pipeline_mode = #tpu.pipeline_mode<synchronous>, transform_indices = @transform_9, window_bounds = array<i64: 1, 64>}, {pipeline_mode = #tpu.pipeline_mode<synchronous>, transform_indices = @transform_10, window_bounds = array<i64: 3, 2, 4>}, {pipeline_mode = #tpu.pipeline_mode<synchronous>, transform_indices = @transform_11, window_bounds = array<i64: 3, 64, 64>}, {pipeline_mode = #tpu.pipeline_mode<synchronous>, transform_indices = @transform_12, window_bounds = array<i64: 1, 64>}, {pipeline_mode = #tpu.pipeline_mode<synchronous>, transform_indices = @transform_13, window_bounds = array<i64: 2, 8, 2>}, {pipeline_mode = #tpu.pipeline_mode<synchronous>, transform_indices = @transform_14, window_bounds = array<i64: 2, 64, 32>}, {pipeline_mode = #tpu.pipeline_mode<synchronous>, transform_indices = @transform_15, window_bounds = array<i64: 1, 32>}, {pipeline_mode = #tpu.pipeline_mode<synchronous>, transform_indices = @transform_16, window_bounds = array<i64: 2, 2, 8>}, {pipeline_mode = #tpu.pipeline_mode<synchronous>, transform_indices = @transform_17, window_bounds = array<i64: 2, 32, 64>}, {pipeline_mode = #tpu.pipeline_mode<synchronous>, transform_indices = @transform_18, window_bounds = array<i64: 2, 64>}, {pipeline_mode = #tpu.pipeline_mode<synchronous>, transform_indices = @transform_19, window_bounds = array<i64: 3, 4, 2>}, {pipeline_mode = #tpu.pipeline_mode<synchronous>, transform_indices = @transform_20, window_bounds = array<i64: 3, 64, 128>}, {pipeline_mode = #tpu.pipeline_mode<synchronous>, transform_indices = @transform_21, window_bounds = array<i64: 1, 128>}, {pipeline_mode = #tpu.pipeline_mode<synchronous>, transform_indices = @transform_22, window_bounds = array<i64: 3, 10, 4>}, {pipeline_mode = #tpu.pipeline_mode<synchronous>, transform_indices = @transform_23, window_bounds = array<i64: 3, 128, 160>}, {pipeline_mode = #tpu.pipeline_mode<synchronous>, transform_indices = @transform_24, window_bounds = array<i64: 1, 160>}, {pipeline_mode = #tpu.pipeline_mode<synchronous>, transform_indices = @transform_25, window_bounds = array<i64: 3, 22, 10>}, {pipeline_mode = #tpu.pipeline_mode<synchronous>, transform_indices = @transform_26, window_bounds = array<i64: 3, 160, 176>}, {pipeline_mode = #tpu.pipeline_mode<synchronous>, transform_indices = @transform_27, window_bounds = array<i64: 1, 176>}, {pipeline_mode = #tpu.pipeline_mode<synchronous>, transform_indices = @transform_28, window_bounds = array<i64: 3, 24, 22>}, {pipeline_mode = #tpu.pipeline_mode<synchronous>, transform_indices = @transform_29, window_bounds = array<i64: 3, 176, 96>}, {pipeline_mode = #tpu.pipeline_mode<synchronous>, transform_indices = @transform_30, window_bounds = array<i64: 1, 96>}, {pipeline_mode = #tpu.pipeline_mode<synchronous>, transform_indices = @transform_31, window_bounds = array<i64: 5, 28, 24>}, {pipeline_mode = #tpu.pipeline_mode<synchronous>, transform_indices = @transform_32, window_bounds = array<i64: 5, 96, 28>}, {pipeline_mode = #tpu.pipeline_mode<synchronous>, transform_indices = @transform_33, window_bounds = array<i64: 1, 28>}, {transform_indices = @transform_34, window_bounds = array<i64: 1, 28, 28>}]} {
    %c0 = arith.constant 0 : index
    %c0_0 = arith.constant 0 : index
    %c0_1 = arith.constant 0 : index
    %0 = vector.load %arg1[%c0, %c0_0, %c0_1] : memref<1x28x28xf32, #tpu.memory_space<vmem>>, vector<1x28x28xf32>
    %1 = vector.shape_cast %0 : vector<1x28x28xf32> to vector<28x28xf32>
    %2 = arith.truncf %1 : vector<28x28xf32> to vector<28x28xbf16>
    %c0_2 = arith.constant 0 : index
    %c0_3 = arith.constant 0 : index
    %c0_4 = arith.constant 0 : index
    %3 = vector.load %arg3[%c0_2, %c0_3, %c0_4] : memref<5x28x48xbf16, #tpu.memory_space<vmem>>, vector<1x28x48xbf16>
    %4 = vector.shape_cast %3 : vector<1x28x48xbf16> to vector<28x48xbf16>
    %cst = arith.constant dense<0.000000e+00> : vector<28x48xf32>
    %5 = tpu.matmul %2, %4, %cst {dimension_numbers = #tpu.dot_dimension_numbers<[1], [0], [0], [1], [0, 0, 1, 1], [], []>} : vector<28x28xbf16>, vector<28x48xbf16>, vector<28x48xf32> -> vector<28x48xf32>
    %c0_5 = arith.constant 0 : index
    %c0_6 = arith.constant 0 : index
    %c0_7 = arith.constant 0 : index
    %6 = vector.load %arg2[%c0_5, %c0_6, %c0_7] : memref<5x12x28xf32, #tpu.memory_space<vmem>>, vector<1x12x28xf32>
    %7 = vector.shape_cast %6 : vector<1x12x28xf32> to vector<12x28xf32>
    %cst_8 = arith.constant dense<0.000000e+00> : vector<12x48xf32>
    %8 = tpu.matmul %7, %5, %cst_8 {dimension_numbers = #tpu.dot_dimension_numbers<[1], [0], [0], [1], [0, 0, 1, 1], [], []>} : vector<12x28xf32>, vector<28x48xf32>, vector<12x48xf32> -> vector<12x48xf32>
    %c1 = arith.constant 1 : index
    %c0_9 = arith.constant 0 : index
    %c0_10 = arith.constant 0 : index
    %9 = vector.load %arg3[%c1, %c0_9, %c0_10] : memref<5x28x48xbf16, #tpu.memory_space<vmem>>, vector<1x28x48xbf16>
    %10 = vector.shape_cast %9 : vector<1x28x48xbf16> to vector<28x48xbf16>
    %cst_11 = arith.constant dense<0.000000e+00> : vector<28x48xf32>
    %11 = tpu.matmul %2, %10, %cst_11 {dimension_numbers = #tpu.dot_dimension_numbers<[1], [0], [0], [1], [0, 0, 1, 1], [], []>} : vector<28x28xbf16>, vector<28x48xbf16>, vector<28x48xf32> -> vector<28x48xf32>
    %c1_12 = arith.constant 1 : index
    %c0_13 = arith.constant 0 : index
    %c0_14 = arith.constant 0 : index
    %12 = vector.load %arg2[%c1_12, %c0_13, %c0_14] : memref<5x12x28xf32, #tpu.memory_space<vmem>>, vector<1x12x28xf32>
    %13 = vector.shape_cast %12 : vector<1x12x28xf32> to vector<12x28xf32>
    %cst_15 = arith.constant dense<0.000000e+00> : vector<12x48xf32>
    %14 = tpu.matmul %13, %11, %cst_15 {dimension_numbers = #tpu.dot_dimension_numbers<[1], [0], [0], [1], [0, 0, 1, 1], [], []>} : vector<12x28xf32>, vector<28x48xf32>, vector<12x48xf32> -> vector<12x48xf32>
    %15 = arith.addf %8, %14 : vector<12x48xf32>
    %c2 = arith.constant 2 : index
    %c0_16 = arith.constant 0 : index
    %c0_17 = arith.constant 0 : index
    %16 = vector.load %arg3[%c2, %c0_16, %c0_17] : memref<5x28x48xbf16, #tpu.memory_space<vmem>>, vector<1x28x48xbf16>
    %17 = vector.shape_cast %16 : vector<1x28x48xbf16> to vector<28x48xbf16>
    %cst_18 = arith.constant dense<0.000000e+00> : vector<28x48xf32>
    %18 = tpu.matmul %2, %17, %cst_18 {dimension_numbers = #tpu.dot_dimension_numbers<[1], [0], [0], [1], [0, 0, 1, 1], [], []>} : vector<28x28xbf16>, vector<28x48xbf16>, vector<28x48xf32> -> vector<28x48xf32>
    %c2_19 = arith.constant 2 : index
    %c0_20 = arith.constant 0 : index
    %c0_21 = arith.constant 0 : index
    %19 = vector.load %arg2[%c2_19, %c0_20, %c0_21] : memref<5x12x28xf32, #tpu.memory_space<vmem>>, vector<1x12x28xf32>
    %20 = vector.shape_cast %19 : vector<1x12x28xf32> to vector<12x28xf32>
    %cst_22 = arith.constant dense<0.000000e+00> : vector<12x48xf32>
    %21 = tpu.matmul %20, %18, %cst_22 {dimension_numbers = #tpu.dot_dimension_numbers<[1], [0], [0], [1], [0, 0, 1, 1], [], []>} : vector<12x28xf32>, vector<28x48xf32>, vector<12x48xf32> -> vector<12x48xf32>
    %22 = arith.addf %15, %21 : vector<12x48xf32>
    %c3 = arith.constant 3 : index
    %c0_23 = arith.constant 0 : index
    %c0_24 = arith.constant 0 : index
    %23 = vector.load %arg3[%c3, %c0_23, %c0_24] : memref<5x28x48xbf16, #tpu.memory_space<vmem>>, vector<1x28x48xbf16>
    %24 = vector.shape_cast %23 : vector<1x28x48xbf16> to vector<28x48xbf16>
    %cst_25 = arith.constant dense<0.000000e+00> : vector<28x48xf32>
    %25 = tpu.matmul %2, %24, %cst_25 {dimension_numbers = #tpu.dot_dimension_numbers<[1], [0], [0], [1], [0, 0, 1, 1], [], []>} : vector<28x28xbf16>, vector<28x48xbf16>, vector<28x48xf32> -> vector<28x48xf32>
    %c3_26 = arith.constant 3 : index
    %c0_27 = arith.constant 0 : index
    %c0_28 = arith.constant 0 : index
    %26 = vector.load %arg2[%c3_26, %c0_27, %c0_28] : memref<5x12x28xf32, #tpu.memory_space<vmem>>, vector<1x12x28xf32>
    %27 = vector.shape_cast %26 : vector<1x12x28xf32> to vector<12x28xf32>
    %cst_29 = arith.constant dense<0.000000e+00> : vector<12x48xf32>
    %28 = tpu.matmul %27, %25, %cst_29 {dimension_numbers = #tpu.dot_dimension_numbers<[1], [0], [0], [1], [0, 0, 1, 1], [], []>} : vector<12x28xf32>, vector<28x48xf32>, vector<12x48xf32> -> vector<12x48xf32>
    %29 = arith.addf %22, %28 : vector<12x48xf32>
    %c4 = arith.constant 4 : index
    %c0_30 = arith.constant 0 : index
    %c0_31 = arith.constant 0 : index
    %30 = vector.load %arg3[%c4, %c0_30, %c0_31] : memref<5x28x48xbf16, #tpu.memory_space<vmem>>, vector<1x28x48xbf16>
    %31 = vector.shape_cast %30 : vector<1x28x48xbf16> to vector<28x48xbf16>
    %cst_32 = arith.constant dense<0.000000e+00> : vector<28x48xf32>
    %32 = tpu.matmul %2, %31, %cst_32 {dimension_numbers = #tpu.dot_dimension_numbers<[1], [0], [0], [1], [0, 0, 1, 1], [], []>} : vector<28x28xbf16>, vector<28x48xbf16>, vector<28x48xf32> -> vector<28x48xf32>
    %c4_33 = arith.constant 4 : index
    %c0_34 = arith.constant 0 : index
    %c0_35 = arith.constant 0 : index
    %33 = vector.load %arg2[%c4_33, %c0_34, %c0_35] : memref<5x12x28xf32, #tpu.memory_space<vmem>>, vector<1x12x28xf32>
    %34 = vector.shape_cast %33 : vector<1x12x28xf32> to vector<12x28xf32>
    %cst_36 = arith.constant dense<0.000000e+00> : vector<12x48xf32>
    %35 = tpu.matmul %34, %32, %cst_36 {dimension_numbers = #tpu.dot_dimension_numbers<[1], [0], [0], [1], [0, 0, 1, 1], [], []>} : vector<12x28xf32>, vector<28x48xf32>, vector<12x48xf32> -> vector<12x48xf32>
    %36 = arith.addf %29, %35 : vector<12x48xf32>
    %c0_37 = arith.constant 0 : index
    %c0_38 = arith.constant 0 : index
    %37 = vector.load %arg4[%c0_37, %c0_38] : memref<1x48xf32, #tpu.memory_space<vmem>>, vector<1x48xf32>
    %38 = vector.broadcast %37 : vector<1x48xf32> to vector<12x48xf32>
    %39 = arith.addf %36, %38 : vector<12x48xf32>
    %cst_39 = arith.constant 0.000000e+00 : f32
    %40 = vector.broadcast %cst_39 : f32 to vector<12x48xf32>
    %41 = arith.maximumf %39, %40 : vector<12x48xf32>
    %42 = arith.truncf %41 : vector<12x48xf32> to vector<12x48xbf16>
    %c0_40 = arith.constant 0 : index
    %c0_41 = arith.constant 0 : index
    %c0_42 = arith.constant 0 : index
    %43 = vector.load %arg6[%c0_40, %c0_41, %c0_42] : memref<3x48x80xbf16, #tpu.memory_space<vmem>>, vector<1x48x80xbf16>
    %44 = vector.shape_cast %43 : vector<1x48x80xbf16> to vector<48x80xbf16>
    %cst_43 = arith.constant dense<0.000000e+00> : vector<12x80xf32>
    %45 = tpu.matmul %42, %44, %cst_43 {dimension_numbers = #tpu.dot_dimension_numbers<[1], [0], [0], [1], [0, 0, 1, 1], [], []>} : vector<12x48xbf16>, vector<48x80xbf16>, vector<12x80xf32> -> vector<12x80xf32>
    %c0_44 = arith.constant 0 : index
    %c0_45 = arith.constant 0 : index
    %c0_46 = arith.constant 0 : index
    %46 = vector.load %arg5[%c0_44, %c0_45, %c0_46] : memref<3x10x12xf32, #tpu.memory_space<vmem>>, vector<1x10x12xf32>
    %47 = vector.shape_cast %46 : vector<1x10x12xf32> to vector<10x12xf32>
    %cst_47 = arith.constant dense<0.000000e+00> : vector<10x80xf32>
    %48 = tpu.matmul %47, %45, %cst_47 {dimension_numbers = #tpu.dot_dimension_numbers<[1], [0], [0], [1], [0, 0, 1, 1], [], []>} : vector<10x12xf32>, vector<12x80xf32>, vector<10x80xf32> -> vector<10x80xf32>
    %c1_48 = arith.constant 1 : index
    %c0_49 = arith.constant 0 : index
    %c0_50 = arith.constant 0 : index
    %49 = vector.load %arg6[%c1_48, %c0_49, %c0_50] : memref<3x48x80xbf16, #tpu.memory_space<vmem>>, vector<1x48x80xbf16>
    %50 = vector.shape_cast %49 : vector<1x48x80xbf16> to vector<48x80xbf16>
    %cst_51 = arith.constant dense<0.000000e+00> : vector<12x80xf32>
    %51 = tpu.matmul %42, %50, %cst_51 {dimension_numbers = #tpu.dot_dimension_numbers<[1], [0], [0], [1], [0, 0, 1, 1], [], []>} : vector<12x48xbf16>, vector<48x80xbf16>, vector<12x80xf32> -> vector<12x80xf32>
    %c1_52 = arith.constant 1 : index
    %c0_53 = arith.constant 0 : index
    %c0_54 = arith.constant 0 : index
    %52 = vector.load %arg5[%c1_52, %c0_53, %c0_54] : memref<3x10x12xf32, #tpu.memory_space<vmem>>, vector<1x10x12xf32>
    %53 = vector.shape_cast %52 : vector<1x10x12xf32> to vector<10x12xf32>
    %cst_55 = arith.constant dense<0.000000e+00> : vector<10x80xf32>
    %54 = tpu.matmul %53, %51, %cst_55 {dimension_numbers = #tpu.dot_dimension_numbers<[1], [0], [0], [1], [0, 0, 1, 1], [], []>} : vector<10x12xf32>, vector<12x80xf32>, vector<10x80xf32> -> vector<10x80xf32>
    %55 = arith.addf %48, %54 : vector<10x80xf32>
    %c2_56 = arith.constant 2 : index
    %c0_57 = arith.constant 0 : index
    %c0_58 = arith.constant 0 : index
    %56 = vector.load %arg6[%c2_56, %c0_57, %c0_58] : memref<3x48x80xbf16, #tpu.memory_space<vmem>>, vector<1x48x80xbf16>
    %57 = vector.shape_cast %56 : vector<1x48x80xbf16> to vector<48x80xbf16>
    %cst_59 = arith.constant dense<0.000000e+00> : vector<12x80xf32>
    %58 = tpu.matmul %42, %57, %cst_59 {dimension_numbers = #tpu.dot_dimension_numbers<[1], [0], [0], [1], [0, 0, 1, 1], [], []>} : vector<12x48xbf16>, vector<48x80xbf16>, vector<12x80xf32> -> vector<12x80xf32>
    %c2_60 = arith.constant 2 : index
    %c0_61 = arith.constant 0 : index
    %c0_62 = arith.constant 0 : index
    %59 = vector.load %arg5[%c2_60, %c0_61, %c0_62] : memref<3x10x12xf32, #tpu.memory_space<vmem>>, vector<1x10x12xf32>
    %60 = vector.shape_cast %59 : vector<1x10x12xf32> to vector<10x12xf32>
    %cst_63 = arith.constant dense<0.000000e+00> : vector<10x80xf32>
    %61 = tpu.matmul %60, %58, %cst_63 {dimension_numbers = #tpu.dot_dimension_numbers<[1], [0], [0], [1], [0, 0, 1, 1], [], []>} : vector<10x12xf32>, vector<12x80xf32>, vector<10x80xf32> -> vector<10x80xf32>
    %62 = arith.addf %55, %61 : vector<10x80xf32>
    %c0_64 = arith.constant 0 : index
    %c0_65 = arith.constant 0 : index
    %63 = vector.load %arg7[%c0_64, %c0_65] : memref<1x80xf32, #tpu.memory_space<vmem>>, vector<1x80xf32>
    %64 = vector.broadcast %63 : vector<1x80xf32> to vector<10x80xf32>
    %65 = arith.addf %62, %64 : vector<10x80xf32>
    %cst_66 = arith.constant 0.000000e+00 : f32
    %66 = vector.broadcast %cst_66 : f32 to vector<10x80xf32>
    %67 = arith.maximumf %65, %66 : vector<10x80xf32>
    %68 = arith.truncf %67 : vector<10x80xf32> to vector<10x80xbf16>
    %c0_67 = arith.constant 0 : index
    %c0_68 = arith.constant 0 : index
    %c0_69 = arith.constant 0 : index
    %69 = vector.load %arg9[%c0_67, %c0_68, %c0_69] : memref<3x80x64xbf16, #tpu.memory_space<vmem>>, vector<1x80x64xbf16>
    %70 = vector.shape_cast %69 : vector<1x80x64xbf16> to vector<80x64xbf16>
    %cst_70 = arith.constant dense<0.000000e+00> : vector<10x64xf32>
    %71 = tpu.matmul %68, %70, %cst_70 {dimension_numbers = #tpu.dot_dimension_numbers<[1], [0], [0], [1], [0, 0, 1, 1], [], []>} : vector<10x80xbf16>, vector<80x64xbf16>, vector<10x64xf32> -> vector<10x64xf32>
    %c0_71 = arith.constant 0 : index
    %c0_72 = arith.constant 0 : index
    %c0_73 = arith.constant 0 : index
    %72 = vector.load %arg8[%c0_71, %c0_72, %c0_73] : memref<3x4x10xf32, #tpu.memory_space<vmem>>, vector<1x4x10xf32>
    %73 = vector.shape_cast %72 : vector<1x4x10xf32> to vector<4x10xf32>
    %cst_74 = arith.constant dense<0.000000e+00> : vector<4x64xf32>
    %74 = tpu.matmul %73, %71, %cst_74 {dimension_numbers = #tpu.dot_dimension_numbers<[1], [0], [0], [1], [0, 0, 1, 1], [], []>} : vector<4x10xf32>, vector<10x64xf32>, vector<4x64xf32> -> vector<4x64xf32>
    %c1_75 = arith.constant 1 : index
    %c0_76 = arith.constant 0 : index
    %c0_77 = arith.constant 0 : index
    %75 = vector.load %arg9[%c1_75, %c0_76, %c0_77] : memref<3x80x64xbf16, #tpu.memory_space<vmem>>, vector<1x80x64xbf16>
    %76 = vector.shape_cast %75 : vector<1x80x64xbf16> to vector<80x64xbf16>
    %cst_78 = arith.constant dense<0.000000e+00> : vector<10x64xf32>
    %77 = tpu.matmul %68, %76, %cst_78 {dimension_numbers = #tpu.dot_dimension_numbers<[1], [0], [0], [1], [0, 0, 1, 1], [], []>} : vector<10x80xbf16>, vector<80x64xbf16>, vector<10x64xf32> -> vector<10x64xf32>
    %c1_79 = arith.constant 1 : index
    %c0_80 = arith.constant 0 : index
    %c0_81 = arith.constant 0 : index
    %78 = vector.load %arg8[%c1_79, %c0_80, %c0_81] : memref<3x4x10xf32, #tpu.memory_space<vmem>>, vector<1x4x10xf32>
    %79 = vector.shape_cast %78 : vector<1x4x10xf32> to vector<4x10xf32>
    %cst_82 = arith.constant dense<0.000000e+00> : vector<4x64xf32>
    %80 = tpu.matmul %79, %77, %cst_82 {dimension_numbers = #tpu.dot_dimension_numbers<[1], [0], [0], [1], [0, 0, 1, 1], [], []>} : vector<4x10xf32>, vector<10x64xf32>, vector<4x64xf32> -> vector<4x64xf32>
    %81 = arith.addf %74, %80 : vector<4x64xf32>
    %c2_83 = arith.constant 2 : index
    %c0_84 = arith.constant 0 : index
    %c0_85 = arith.constant 0 : index
    %82 = vector.load %arg9[%c2_83, %c0_84, %c0_85] : memref<3x80x64xbf16, #tpu.memory_space<vmem>>, vector<1x80x64xbf16>
    %83 = vector.shape_cast %82 : vector<1x80x64xbf16> to vector<80x64xbf16>
    %cst_86 = arith.constant dense<0.000000e+00> : vector<10x64xf32>
    %84 = tpu.matmul %68, %83, %cst_86 {dimension_numbers = #tpu.dot_dimension_numbers<[1], [0], [0], [1], [0, 0, 1, 1], [], []>} : vector<10x80xbf16>, vector<80x64xbf16>, vector<10x64xf32> -> vector<10x64xf32>
    %c2_87 = arith.constant 2 : index
    %c0_88 = arith.constant 0 : index
    %c0_89 = arith.constant 0 : index
    %85 = vector.load %arg8[%c2_87, %c0_88, %c0_89] : memref<3x4x10xf32, #tpu.memory_space<vmem>>, vector<1x4x10xf32>
    %86 = vector.shape_cast %85 : vector<1x4x10xf32> to vector<4x10xf32>
    %cst_90 = arith.constant dense<0.000000e+00> : vector<4x64xf32>
    %87 = tpu.matmul %86, %84, %cst_90 {dimension_numbers = #tpu.dot_dimension_numbers<[1], [0], [0], [1], [0, 0, 1, 1], [], []>} : vector<4x10xf32>, vector<10x64xf32>, vector<4x64xf32> -> vector<4x64xf32>
    %88 = arith.addf %81, %87 : vector<4x64xf32>
    %c0_91 = arith.constant 0 : index
    %c0_92 = arith.constant 0 : index
    %89 = vector.load %arg10[%c0_91, %c0_92] : memref<1x64xf32, #tpu.memory_space<vmem>>, vector<1x64xf32>
    %90 = vector.broadcast %89 : vector<1x64xf32> to vector<4x64xf32>
    %91 = arith.addf %88, %90 : vector<4x64xf32>
    %cst_93 = arith.constant 0.000000e+00 : f32
    %92 = vector.broadcast %cst_93 : f32 to vector<4x64xf32>
    %93 = arith.maximumf %91, %92 : vector<4x64xf32>
    %94 = arith.truncf %93 : vector<4x64xf32> to vector<4x64xbf16>
    %c0_94 = arith.constant 0 : index
    %c0_95 = arith.constant 0 : index
    %c0_96 = arith.constant 0 : index
    %95 = vector.load %arg12[%c0_94, %c0_95, %c0_96] : memref<3x64x64xbf16, #tpu.memory_space<vmem>>, vector<1x64x64xbf16>
    %96 = vector.shape_cast %95 : vector<1x64x64xbf16> to vector<64x64xbf16>
    %cst_97 = arith.constant dense<0.000000e+00> : vector<4x64xf32>
    %97 = tpu.matmul %94, %96, %cst_97 {dimension_numbers = #tpu.dot_dimension_numbers<[1], [0], [0], [1], [0, 0, 1, 1], [], []>} : vector<4x64xbf16>, vector<64x64xbf16>, vector<4x64xf32> -> vector<4x64xf32>
    %c0_98 = arith.constant 0 : index
    %c0_99 = arith.constant 0 : index
    %c0_100 = arith.constant 0 : index
    %98 = vector.load %arg11[%c0_98, %c0_99, %c0_100] : memref<3x2x4xf32, #tpu.memory_space<vmem>>, vector<1x2x4xf32>
    %99 = vector.shape_cast %98 : vector<1x2x4xf32> to vector<2x4xf32>
    %cst_101 = arith.constant dense<0.000000e+00> : vector<2x64xf32>
    %100 = tpu.matmul %99, %97, %cst_101 {dimension_numbers = #tpu.dot_dimension_numbers<[1], [0], [0], [1], [0, 0, 1, 1], [], []>} : vector<2x4xf32>, vector<4x64xf32>, vector<2x64xf32> -> vector<2x64xf32>
    %c1_102 = arith.constant 1 : index
    %c0_103 = arith.constant 0 : index
    %c0_104 = arith.constant 0 : index
    %101 = vector.load %arg12[%c1_102, %c0_103, %c0_104] : memref<3x64x64xbf16, #tpu.memory_space<vmem>>, vector<1x64x64xbf16>
    %102 = vector.shape_cast %101 : vector<1x64x64xbf16> to vector<64x64xbf16>
    %cst_105 = arith.constant dense<0.000000e+00> : vector<4x64xf32>
    %103 = tpu.matmul %94, %102, %cst_105 {dimension_numbers = #tpu.dot_dimension_numbers<[1], [0], [0], [1], [0, 0, 1, 1], [], []>} : vector<4x64xbf16>, vector<64x64xbf16>, vector<4x64xf32> -> vector<4x64xf32>
    %c1_106 = arith.constant 1 : index
    %c0_107 = arith.constant 0 : index
    %c0_108 = arith.constant 0 : index
    %104 = vector.load %arg11[%c1_106, %c0_107, %c0_108] : memref<3x2x4xf32, #tpu.memory_space<vmem>>, vector<1x2x4xf32>
    %105 = vector.shape_cast %104 : vector<1x2x4xf32> to vector<2x4xf32>
    %cst_109 = arith.constant dense<0.000000e+00> : vector<2x64xf32>
    %106 = tpu.matmul %105, %103, %cst_109 {dimension_numbers = #tpu.dot_dimension_numbers<[1], [0], [0], [1], [0, 0, 1, 1], [], []>} : vector<2x4xf32>, vector<4x64xf32>, vector<2x64xf32> -> vector<2x64xf32>
    %107 = arith.addf %100, %106 : vector<2x64xf32>
    %c2_110 = arith.constant 2 : index
    %c0_111 = arith.constant 0 : index
    %c0_112 = arith.constant 0 : index
    %108 = vector.load %arg12[%c2_110, %c0_111, %c0_112] : memref<3x64x64xbf16, #tpu.memory_space<vmem>>, vector<1x64x64xbf16>
    %109 = vector.shape_cast %108 : vector<1x64x64xbf16> to vector<64x64xbf16>
    %cst_113 = arith.constant dense<0.000000e+00> : vector<4x64xf32>
    %110 = tpu.matmul %94, %109, %cst_113 {dimension_numbers = #tpu.dot_dimension_numbers<[1], [0], [0], [1], [0, 0, 1, 1], [], []>} : vector<4x64xbf16>, vector<64x64xbf16>, vector<4x64xf32> -> vector<4x64xf32>
    %c2_114 = arith.constant 2 : index
    %c0_115 = arith.constant 0 : index
    %c0_116 = arith.constant 0 : index
    %111 = vector.load %arg11[%c2_114, %c0_115, %c0_116] : memref<3x2x4xf32, #tpu.memory_space<vmem>>, vector<1x2x4xf32>
    %112 = vector.shape_cast %111 : vector<1x2x4xf32> to vector<2x4xf32>
    %cst_117 = arith.constant dense<0.000000e+00> : vector<2x64xf32>
    %113 = tpu.matmul %112, %110, %cst_117 {dimension_numbers = #tpu.dot_dimension_numbers<[1], [0], [0], [1], [0, 0, 1, 1], [], []>} : vector<2x4xf32>, vector<4x64xf32>, vector<2x64xf32> -> vector<2x64xf32>
    %114 = arith.addf %107, %113 : vector<2x64xf32>
    %c0_118 = arith.constant 0 : index
    %c0_119 = arith.constant 0 : index
    %115 = vector.load %arg13[%c0_118, %c0_119] : memref<1x64xf32, #tpu.memory_space<vmem>>, vector<1x64xf32>
    %116 = vector.broadcast %115 : vector<1x64xf32> to vector<2x64xf32>
    %117 = arith.addf %114, %116 : vector<2x64xf32>
    %cst_120 = arith.constant 0.000000e+00 : f32
    %118 = vector.broadcast %cst_120 : f32 to vector<2x64xf32>
    %119 = arith.maximumf %117, %118 : vector<2x64xf32>
    %120 = arith.truncf %119 : vector<2x64xf32> to vector<2x64xbf16>
    %c0_121 = arith.constant 0 : index
    %c0_122 = arith.constant 0 : index
    %c0_123 = arith.constant 0 : index
    %121 = vector.load %arg15[%c0_121, %c0_122, %c0_123] : memref<2x64x32xbf16, #tpu.memory_space<vmem>>, vector<1x64x32xbf16>
    %122 = vector.shape_cast %121 : vector<1x64x32xbf16> to vector<64x32xbf16>
    %cst_124 = arith.constant dense<0.000000e+00> : vector<2x32xf32>
    %123 = tpu.matmul %120, %122, %cst_124 {dimension_numbers = #tpu.dot_dimension_numbers<[1], [0], [0], [1], [0, 0, 1, 1], [], []>} : vector<2x64xbf16>, vector<64x32xbf16>, vector<2x32xf32> -> vector<2x32xf32>
    %c0_125 = arith.constant 0 : index
    %c0_126 = arith.constant 0 : index
    %c0_127 = arith.constant 0 : index
    %124 = vector.load %arg14[%c0_125, %c0_126, %c0_127] : memref<2x8x2xf32, #tpu.memory_space<vmem>>, vector<1x8x2xf32>
    %125 = vector.shape_cast %124 : vector<1x8x2xf32> to vector<8x2xf32>
    %cst_128 = arith.constant dense<0.000000e+00> : vector<8x32xf32>
    %126 = tpu.matmul %125, %123, %cst_128 {dimension_numbers = #tpu.dot_dimension_numbers<[1], [0], [0], [1], [0, 0, 1, 1], [], []>} : vector<8x2xf32>, vector<2x32xf32>, vector<8x32xf32> -> vector<8x32xf32>
    %c1_129 = arith.constant 1 : index
    %c0_130 = arith.constant 0 : index
    %c0_131 = arith.constant 0 : index
    %127 = vector.load %arg15[%c1_129, %c0_130, %c0_131] : memref<2x64x32xbf16, #tpu.memory_space<vmem>>, vector<1x64x32xbf16>
    %128 = vector.shape_cast %127 : vector<1x64x32xbf16> to vector<64x32xbf16>
    %cst_132 = arith.constant dense<0.000000e+00> : vector<2x32xf32>
    %129 = tpu.matmul %120, %128, %cst_132 {dimension_numbers = #tpu.dot_dimension_numbers<[1], [0], [0], [1], [0, 0, 1, 1], [], []>} : vector<2x64xbf16>, vector<64x32xbf16>, vector<2x32xf32> -> vector<2x32xf32>
    %c1_133 = arith.constant 1 : index
    %c0_134 = arith.constant 0 : index
    %c0_135 = arith.constant 0 : index
    %130 = vector.load %arg14[%c1_133, %c0_134, %c0_135] : memref<2x8x2xf32, #tpu.memory_space<vmem>>, vector<1x8x2xf32>
    %131 = vector.shape_cast %130 : vector<1x8x2xf32> to vector<8x2xf32>
    %cst_136 = arith.constant dense<0.000000e+00> : vector<8x32xf32>
    %132 = tpu.matmul %131, %129, %cst_136 {dimension_numbers = #tpu.dot_dimension_numbers<[1], [0], [0], [1], [0, 0, 1, 1], [], []>} : vector<8x2xf32>, vector<2x32xf32>, vector<8x32xf32> -> vector<8x32xf32>
    %133 = arith.addf %126, %132 : vector<8x32xf32>
    %c0_137 = arith.constant 0 : index
    %c0_138 = arith.constant 0 : index
    %134 = vector.load %arg16[%c0_137, %c0_138] : memref<1x32xf32, #tpu.memory_space<vmem>>, vector<1x32xf32>
    %135 = vector.broadcast %134 : vector<1x32xf32> to vector<8x32xf32>
    %136 = arith.addf %133, %135 : vector<8x32xf32>
    %cst_139 = arith.constant 0.000000e+00 : f32
    %137 = vector.broadcast %cst_139 : f32 to vector<8x32xf32>
    %138 = arith.maximumf %136, %137 : vector<8x32xf32>
    %139 = arith.truncf %138 : vector<8x32xf32> to vector<8x32xbf16>
    %c0_140 = arith.constant 0 : index
    %c0_141 = arith.constant 0 : index
    %c0_142 = arith.constant 0 : index
    %140 = vector.load %arg18[%c0_140, %c0_141, %c0_142] : memref<2x32x64xbf16, #tpu.memory_space<vmem>>, vector<1x32x64xbf16>
    %141 = vector.shape_cast %140 : vector<1x32x64xbf16> to vector<32x64xbf16>
    %cst_143 = arith.constant dense<0.000000e+00> : vector<8x64xf32>
    %142 = tpu.matmul %139, %141, %cst_143 {dimension_numbers = #tpu.dot_dimension_numbers<[1], [0], [0], [1], [0, 0, 1, 1], [], []>} : vector<8x32xbf16>, vector<32x64xbf16>, vector<8x64xf32> -> vector<8x64xf32>
    %c0_144 = arith.constant 0 : index
    %c0_145 = arith.constant 0 : index
    %c0_146 = arith.constant 0 : index
    %143 = vector.load %arg17[%c0_144, %c0_145, %c0_146] : memref<2x2x8xf32, #tpu.memory_space<vmem>>, vector<1x2x8xf32>
    %144 = vector.shape_cast %143 : vector<1x2x8xf32> to vector<2x8xf32>
    %cst_147 = arith.constant dense<0.000000e+00> : vector<2x64xf32>
    %145 = tpu.matmul %144, %142, %cst_147 {dimension_numbers = #tpu.dot_dimension_numbers<[1], [0], [0], [1], [0, 0, 1, 1], [], []>} : vector<2x8xf32>, vector<8x64xf32>, vector<2x64xf32> -> vector<2x64xf32>
    %c1_148 = arith.constant 1 : index
    %c0_149 = arith.constant 0 : index
    %c0_150 = arith.constant 0 : index
    %146 = vector.load %arg18[%c1_148, %c0_149, %c0_150] : memref<2x32x64xbf16, #tpu.memory_space<vmem>>, vector<1x32x64xbf16>
    %147 = vector.shape_cast %146 : vector<1x32x64xbf16> to vector<32x64xbf16>
    %cst_151 = arith.constant dense<0.000000e+00> : vector<8x64xf32>
    %148 = tpu.matmul %139, %147, %cst_151 {dimension_numbers = #tpu.dot_dimension_numbers<[1], [0], [0], [1], [0, 0, 1, 1], [], []>} : vector<8x32xbf16>, vector<32x64xbf16>, vector<8x64xf32> -> vector<8x64xf32>
    %c1_152 = arith.constant 1 : index
    %c0_153 = arith.constant 0 : index
    %c0_154 = arith.constant 0 : index
    %149 = vector.load %arg17[%c1_152, %c0_153, %c0_154] : memref<2x2x8xf32, #tpu.memory_space<vmem>>, vector<1x2x8xf32>
    %150 = vector.shape_cast %149 : vector<1x2x8xf32> to vector<2x8xf32>
    %cst_155 = arith.constant dense<0.000000e+00> : vector<2x64xf32>
    %151 = tpu.matmul %150, %148, %cst_155 {dimension_numbers = #tpu.dot_dimension_numbers<[1], [0], [0], [1], [0, 0, 1, 1], [], []>} : vector<2x8xf32>, vector<8x64xf32>, vector<2x64xf32> -> vector<2x64xf32>
    %152 = arith.addf %145, %151 : vector<2x64xf32>
    %c0_156 = arith.constant 0 : index
    %c0_157 = arith.constant 0 : index
    %153 = vector.load %arg19[%c0_156, %c0_157] : memref<2x64xf32, #tpu.memory_space<vmem>>, vector<2x64xf32>
    %154 = arith.addf %152, %153 : vector<2x64xf32>
    %155 = arith.truncf %154 : vector<2x64xf32> to vector<2x64xbf16>
    %c0_158 = arith.constant 0 : index
    %c0_159 = arith.constant 0 : index
    %c0_160 = arith.constant 0 : index
    %156 = vector.load %arg21[%c0_158, %c0_159, %c0_160] : memref<3x64x128xbf16, #tpu.memory_space<vmem>>, vector<1x64x128xbf16>
    %157 = vector.shape_cast %156 : vector<1x64x128xbf16> to vector<64x128xbf16>
    %cst_161 = arith.constant dense<0.000000e+00> : vector<2x128xf32>
    %158 = tpu.matmul %155, %157, %cst_161 {dimension_numbers = #tpu.dot_dimension_numbers<[1], [0], [0], [1], [0, 0, 1, 1], [], []>} : vector<2x64xbf16>, vector<64x128xbf16>, vector<2x128xf32> -> vector<2x128xf32>
    %c0_162 = arith.constant 0 : index
    %c0_163 = arith.constant 0 : index
    %c0_164 = arith.constant 0 : index
    %159 = vector.load %arg20[%c0_162, %c0_163, %c0_164] : memref<3x4x2xf32, #tpu.memory_space<vmem>>, vector<1x4x2xf32>
    %160 = vector.shape_cast %159 : vector<1x4x2xf32> to vector<4x2xf32>
    %cst_165 = arith.constant dense<0.000000e+00> : vector<4x128xf32>
    %161 = tpu.matmul %160, %158, %cst_165 {dimension_numbers = #tpu.dot_dimension_numbers<[1], [0], [0], [1], [0, 0, 1, 1], [], []>} : vector<4x2xf32>, vector<2x128xf32>, vector<4x128xf32> -> vector<4x128xf32>
    %c1_166 = arith.constant 1 : index
    %c0_167 = arith.constant 0 : index
    %c0_168 = arith.constant 0 : index
    %162 = vector.load %arg21[%c1_166, %c0_167, %c0_168] : memref<3x64x128xbf16, #tpu.memory_space<vmem>>, vector<1x64x128xbf16>
    %163 = vector.shape_cast %162 : vector<1x64x128xbf16> to vector<64x128xbf16>
    %cst_169 = arith.constant dense<0.000000e+00> : vector<2x128xf32>
    %164 = tpu.matmul %155, %163, %cst_169 {dimension_numbers = #tpu.dot_dimension_numbers<[1], [0], [0], [1], [0, 0, 1, 1], [], []>} : vector<2x64xbf16>, vector<64x128xbf16>, vector<2x128xf32> -> vector<2x128xf32>
    %c1_170 = arith.constant 1 : index
    %c0_171 = arith.constant 0 : index
    %c0_172 = arith.constant 0 : index
    %165 = vector.load %arg20[%c1_170, %c0_171, %c0_172] : memref<3x4x2xf32, #tpu.memory_space<vmem>>, vector<1x4x2xf32>
    %166 = vector.shape_cast %165 : vector<1x4x2xf32> to vector<4x2xf32>
    %cst_173 = arith.constant dense<0.000000e+00> : vector<4x128xf32>
    %167 = tpu.matmul %166, %164, %cst_173 {dimension_numbers = #tpu.dot_dimension_numbers<[1], [0], [0], [1], [0, 0, 1, 1], [], []>} : vector<4x2xf32>, vector<2x128xf32>, vector<4x128xf32> -> vector<4x128xf32>
    %168 = arith.addf %161, %167 : vector<4x128xf32>
    %c2_174 = arith.constant 2 : index
    %c0_175 = arith.constant 0 : index
    %c0_176 = arith.constant 0 : index
    %169 = vector.load %arg21[%c2_174, %c0_175, %c0_176] : memref<3x64x128xbf16, #tpu.memory_space<vmem>>, vector<1x64x128xbf16>
    %170 = vector.shape_cast %169 : vector<1x64x128xbf16> to vector<64x128xbf16>
    %cst_177 = arith.constant dense<0.000000e+00> : vector<2x128xf32>
    %171 = tpu.matmul %155, %170, %cst_177 {dimension_numbers = #tpu.dot_dimension_numbers<[1], [0], [0], [1], [0, 0, 1, 1], [], []>} : vector<2x64xbf16>, vector<64x128xbf16>, vector<2x128xf32> -> vector<2x128xf32>
    %c2_178 = arith.constant 2 : index
    %c0_179 = arith.constant 0 : index
    %c0_180 = arith.constant 0 : index
    %172 = vector.load %arg20[%c2_178, %c0_179, %c0_180] : memref<3x4x2xf32, #tpu.memory_space<vmem>>, vector<1x4x2xf32>
    %173 = vector.shape_cast %172 : vector<1x4x2xf32> to vector<4x2xf32>
    %cst_181 = arith.constant dense<0.000000e+00> : vector<4x128xf32>
    %174 = tpu.matmul %173, %171, %cst_181 {dimension_numbers = #tpu.dot_dimension_numbers<[1], [0], [0], [1], [0, 0, 1, 1], [], []>} : vector<4x2xf32>, vector<2x128xf32>, vector<4x128xf32> -> vector<4x128xf32>
    %175 = arith.addf %168, %174 : vector<4x128xf32>
    %c0_182 = arith.constant 0 : index
    %c0_183 = arith.constant 0 : index
    %176 = vector.load %arg22[%c0_182, %c0_183] : memref<1x128xf32, #tpu.memory_space<vmem>>, vector<1x128xf32>
    %177 = vector.broadcast %176 : vector<1x128xf32> to vector<4x128xf32>
    %178 = arith.addf %175, %177 : vector<4x128xf32>
    %cst_184 = arith.constant 0.000000e+00 : f32
    %179 = vector.broadcast %cst_184 : f32 to vector<4x128xf32>
    %180 = arith.maximumf %178, %179 : vector<4x128xf32>
    %181 = arith.truncf %180 : vector<4x128xf32> to vector<4x128xbf16>
    %c0_185 = arith.constant 0 : index
    %c0_186 = arith.constant 0 : index
    %c0_187 = arith.constant 0 : index
    %182 = vector.load %arg24[%c0_185, %c0_186, %c0_187] : memref<3x128x160xbf16, #tpu.memory_space<vmem>>, vector<1x128x160xbf16>
    %183 = vector.shape_cast %182 : vector<1x128x160xbf16> to vector<128x160xbf16>
    %cst_188 = arith.constant dense<0.000000e+00> : vector<4x160xf32>
    %184 = tpu.matmul %181, %183, %cst_188 {dimension_numbers = #tpu.dot_dimension_numbers<[1], [0], [0], [1], [0, 0, 1, 1], [], []>} : vector<4x128xbf16>, vector<128x160xbf16>, vector<4x160xf32> -> vector<4x160xf32>
    %c0_189 = arith.constant 0 : index
    %c0_190 = arith.constant 0 : index
    %c0_191 = arith.constant 0 : index
    %185 = vector.load %arg23[%c0_189, %c0_190, %c0_191] : memref<3x10x4xf32, #tpu.memory_space<vmem>>, vector<1x10x4xf32>
    %186 = vector.shape_cast %185 : vector<1x10x4xf32> to vector<10x4xf32>
    %cst_192 = arith.constant dense<0.000000e+00> : vector<10x160xf32>
    %187 = tpu.matmul %186, %184, %cst_192 {dimension_numbers = #tpu.dot_dimension_numbers<[1], [0], [0], [1], [0, 0, 1, 1], [], []>} : vector<10x4xf32>, vector<4x160xf32>, vector<10x160xf32> -> vector<10x160xf32>
    %c1_193 = arith.constant 1 : index
    %c0_194 = arith.constant 0 : index
    %c0_195 = arith.constant 0 : index
    %188 = vector.load %arg24[%c1_193, %c0_194, %c0_195] : memref<3x128x160xbf16, #tpu.memory_space<vmem>>, vector<1x128x160xbf16>
    %189 = vector.shape_cast %188 : vector<1x128x160xbf16> to vector<128x160xbf16>
    %cst_196 = arith.constant dense<0.000000e+00> : vector<4x160xf32>
    %190 = tpu.matmul %181, %189, %cst_196 {dimension_numbers = #tpu.dot_dimension_numbers<[1], [0], [0], [1], [0, 0, 1, 1], [], []>} : vector<4x128xbf16>, vector<128x160xbf16>, vector<4x160xf32> -> vector<4x160xf32>
    %c1_197 = arith.constant 1 : index
    %c0_198 = arith.constant 0 : index
    %c0_199 = arith.constant 0 : index
    %191 = vector.load %arg23[%c1_197, %c0_198, %c0_199] : memref<3x10x4xf32, #tpu.memory_space<vmem>>, vector<1x10x4xf32>
    %192 = vector.shape_cast %191 : vector<1x10x4xf32> to vector<10x4xf32>
    %cst_200 = arith.constant dense<0.000000e+00> : vector<10x160xf32>
    %193 = tpu.matmul %192, %190, %cst_200 {dimension_numbers = #tpu.dot_dimension_numbers<[1], [0], [0], [1], [0, 0, 1, 1], [], []>} : vector<10x4xf32>, vector<4x160xf32>, vector<10x160xf32> -> vector<10x160xf32>
    %194 = arith.addf %187, %193 : vector<10x160xf32>
    %c2_201 = arith.constant 2 : index
    %c0_202 = arith.constant 0 : index
    %c0_203 = arith.constant 0 : index
    %195 = vector.load %arg24[%c2_201, %c0_202, %c0_203] : memref<3x128x160xbf16, #tpu.memory_space<vmem>>, vector<1x128x160xbf16>
    %196 = vector.shape_cast %195 : vector<1x128x160xbf16> to vector<128x160xbf16>
    %cst_204 = arith.constant dense<0.000000e+00> : vector<4x160xf32>
    %197 = tpu.matmul %181, %196, %cst_204 {dimension_numbers = #tpu.dot_dimension_numbers<[1], [0], [0], [1], [0, 0, 1, 1], [], []>} : vector<4x128xbf16>, vector<128x160xbf16>, vector<4x160xf32> -> vector<4x160xf32>
    %c2_205 = arith.constant 2 : index
    %c0_206 = arith.constant 0 : index
    %c0_207 = arith.constant 0 : index
    %198 = vector.load %arg23[%c2_205, %c0_206, %c0_207] : memref<3x10x4xf32, #tpu.memory_space<vmem>>, vector<1x10x4xf32>
    %199 = vector.shape_cast %198 : vector<1x10x4xf32> to vector<10x4xf32>
    %cst_208 = arith.constant dense<0.000000e+00> : vector<10x160xf32>
    %200 = tpu.matmul %199, %197, %cst_208 {dimension_numbers = #tpu.dot_dimension_numbers<[1], [0], [0], [1], [0, 0, 1, 1], [], []>} : vector<10x4xf32>, vector<4x160xf32>, vector<10x160xf32> -> vector<10x160xf32>
    %201 = arith.addf %194, %200 : vector<10x160xf32>
    %c0_209 = arith.constant 0 : index
    %c0_210 = arith.constant 0 : index
    %202 = vector.load %arg25[%c0_209, %c0_210] : memref<1x160xf32, #tpu.memory_space<vmem>>, vector<1x160xf32>
    %203 = vector.broadcast %202 : vector<1x160xf32> to vector<10x160xf32>
    %204 = arith.addf %201, %203 : vector<10x160xf32>
    %cst_211 = arith.constant 0.000000e+00 : f32
    %205 = vector.broadcast %cst_211 : f32 to vector<10x160xf32>
    %206 = arith.maximumf %204, %205 : vector<10x160xf32>
    %207 = arith.truncf %206 : vector<10x160xf32> to vector<10x160xbf16>
    %c0_212 = arith.constant 0 : index
    %c0_213 = arith.constant 0 : index
    %c0_214 = arith.constant 0 : index
    %208 = vector.load %arg27[%c0_212, %c0_213, %c0_214] : memref<3x160x176xbf16, #tpu.memory_space<vmem>>, vector<1x160x176xbf16>
    %209 = vector.shape_cast %208 : vector<1x160x176xbf16> to vector<160x176xbf16>
    %cst_215 = arith.constant dense<0.000000e+00> : vector<10x176xf32>
    %210 = tpu.matmul %207, %209, %cst_215 {dimension_numbers = #tpu.dot_dimension_numbers<[1], [0], [0], [1], [0, 0, 1, 1], [], []>} : vector<10x160xbf16>, vector<160x176xbf16>, vector<10x176xf32> -> vector<10x176xf32>
    %c0_216 = arith.constant 0 : index
    %c0_217 = arith.constant 0 : index
    %c0_218 = arith.constant 0 : index
    %211 = vector.load %arg26[%c0_216, %c0_217, %c0_218] : memref<3x22x10xf32, #tpu.memory_space<vmem>>, vector<1x22x10xf32>
    %212 = vector.shape_cast %211 : vector<1x22x10xf32> to vector<22x10xf32>
    %cst_219 = arith.constant dense<0.000000e+00> : vector<22x176xf32>
    %213 = tpu.matmul %212, %210, %cst_219 {dimension_numbers = #tpu.dot_dimension_numbers<[1], [0], [0], [1], [0, 0, 1, 1], [], []>} : vector<22x10xf32>, vector<10x176xf32>, vector<22x176xf32> -> vector<22x176xf32>
    %c1_220 = arith.constant 1 : index
    %c0_221 = arith.constant 0 : index
    %c0_222 = arith.constant 0 : index
    %214 = vector.load %arg27[%c1_220, %c0_221, %c0_222] : memref<3x160x176xbf16, #tpu.memory_space<vmem>>, vector<1x160x176xbf16>
    %215 = vector.shape_cast %214 : vector<1x160x176xbf16> to vector<160x176xbf16>
    %cst_223 = arith.constant dense<0.000000e+00> : vector<10x176xf32>
    %216 = tpu.matmul %207, %215, %cst_223 {dimension_numbers = #tpu.dot_dimension_numbers<[1], [0], [0], [1], [0, 0, 1, 1], [], []>} : vector<10x160xbf16>, vector<160x176xbf16>, vector<10x176xf32> -> vector<10x176xf32>
    %c1_224 = arith.constant 1 : index
    %c0_225 = arith.constant 0 : index
    %c0_226 = arith.constant 0 : index
    %217 = vector.load %arg26[%c1_224, %c0_225, %c0_226] : memref<3x22x10xf32, #tpu.memory_space<vmem>>, vector<1x22x10xf32>
    %218 = vector.shape_cast %217 : vector<1x22x10xf32> to vector<22x10xf32>
    %cst_227 = arith.constant dense<0.000000e+00> : vector<22x176xf32>
    %219 = tpu.matmul %218, %216, %cst_227 {dimension_numbers = #tpu.dot_dimension_numbers<[1], [0], [0], [1], [0, 0, 1, 1], [], []>} : vector<22x10xf32>, vector<10x176xf32>, vector<22x176xf32> -> vector<22x176xf32>
    %220 = arith.addf %213, %219 : vector<22x176xf32>
    %c2_228 = arith.constant 2 : index
    %c0_229 = arith.constant 0 : index
    %c0_230 = arith.constant 0 : index
    %221 = vector.load %arg27[%c2_228, %c0_229, %c0_230] : memref<3x160x176xbf16, #tpu.memory_space<vmem>>, vector<1x160x176xbf16>
    %222 = vector.shape_cast %221 : vector<1x160x176xbf16> to vector<160x176xbf16>
    %cst_231 = arith.constant dense<0.000000e+00> : vector<10x176xf32>
    %223 = tpu.matmul %207, %222, %cst_231 {dimension_numbers = #tpu.dot_dimension_numbers<[1], [0], [0], [1], [0, 0, 1, 1], [], []>} : vector<10x160xbf16>, vector<160x176xbf16>, vector<10x176xf32> -> vector<10x176xf32>
    %c2_232 = arith.constant 2 : index
    %c0_233 = arith.constant 0 : index
    %c0_234 = arith.constant 0 : index
    %224 = vector.load %arg26[%c2_232, %c0_233, %c0_234] : memref<3x22x10xf32, #tpu.memory_space<vmem>>, vector<1x22x10xf32>
    %225 = vector.shape_cast %224 : vector<1x22x10xf32> to vector<22x10xf32>
    %cst_235 = arith.constant dense<0.000000e+00> : vector<22x176xf32>
    %226 = tpu.matmul %225, %223, %cst_235 {dimension_numbers = #tpu.dot_dimension_numbers<[1], [0], [0], [1], [0, 0, 1, 1], [], []>} : vector<22x10xf32>, vector<10x176xf32>, vector<22x176xf32> -> vector<22x176xf32>
    %227 = arith.addf %220, %226 : vector<22x176xf32>
    %c0_236 = arith.constant 0 : index
    %c0_237 = arith.constant 0 : index
    %228 = vector.load %arg28[%c0_236, %c0_237] : memref<1x176xf32, #tpu.memory_space<vmem>>, vector<1x176xf32>
    %229 = vector.broadcast %228 : vector<1x176xf32> to vector<22x176xf32>
    %230 = arith.addf %227, %229 : vector<22x176xf32>
    %cst_238 = arith.constant 0.000000e+00 : f32
    %231 = vector.broadcast %cst_238 : f32 to vector<22x176xf32>
    %232 = arith.maximumf %230, %231 : vector<22x176xf32>
    %233 = arith.truncf %232 : vector<22x176xf32> to vector<22x176xbf16>
    %c0_239 = arith.constant 0 : index
    %c0_240 = arith.constant 0 : index
    %c0_241 = arith.constant 0 : index
    %234 = vector.load %arg30[%c0_239, %c0_240, %c0_241] : memref<3x176x96xbf16, #tpu.memory_space<vmem>>, vector<1x176x96xbf16>
    %235 = vector.shape_cast %234 : vector<1x176x96xbf16> to vector<176x96xbf16>
    %cst_242 = arith.constant dense<0.000000e+00> : vector<22x96xf32>
    %236 = tpu.matmul %233, %235, %cst_242 {dimension_numbers = #tpu.dot_dimension_numbers<[1], [0], [0], [1], [0, 0, 1, 1], [], []>} : vector<22x176xbf16>, vector<176x96xbf16>, vector<22x96xf32> -> vector<22x96xf32>
    %c0_243 = arith.constant 0 : index
    %c0_244 = arith.constant 0 : index
    %c0_245 = arith.constant 0 : index
    %237 = vector.load %arg29[%c0_243, %c0_244, %c0_245] : memref<3x24x22xf32, #tpu.memory_space<vmem>>, vector<1x24x22xf32>
    %238 = vector.shape_cast %237 : vector<1x24x22xf32> to vector<24x22xf32>
    %cst_246 = arith.constant dense<0.000000e+00> : vector<24x96xf32>
    %239 = tpu.matmul %238, %236, %cst_246 {dimension_numbers = #tpu.dot_dimension_numbers<[1], [0], [0], [1], [0, 0, 1, 1], [], []>} : vector<24x22xf32>, vector<22x96xf32>, vector<24x96xf32> -> vector<24x96xf32>
    %c1_247 = arith.constant 1 : index
    %c0_248 = arith.constant 0 : index
    %c0_249 = arith.constant 0 : index
    %240 = vector.load %arg30[%c1_247, %c0_248, %c0_249] : memref<3x176x96xbf16, #tpu.memory_space<vmem>>, vector<1x176x96xbf16>
    %241 = vector.shape_cast %240 : vector<1x176x96xbf16> to vector<176x96xbf16>
    %cst_250 = arith.constant dense<0.000000e+00> : vector<22x96xf32>
    %242 = tpu.matmul %233, %241, %cst_250 {dimension_numbers = #tpu.dot_dimension_numbers<[1], [0], [0], [1], [0, 0, 1, 1], [], []>} : vector<22x176xbf16>, vector<176x96xbf16>, vector<22x96xf32> -> vector<22x96xf32>
    %c1_251 = arith.constant 1 : index
    %c0_252 = arith.constant 0 : index
    %c0_253 = arith.constant 0 : index
    %243 = vector.load %arg29[%c1_251, %c0_252, %c0_253] : memref<3x24x22xf32, #tpu.memory_space<vmem>>, vector<1x24x22xf32>
    %244 = vector.shape_cast %243 : vector<1x24x22xf32> to vector<24x22xf32>
    %cst_254 = arith.constant dense<0.000000e+00> : vector<24x96xf32>
    %245 = tpu.matmul %244, %242, %cst_254 {dimension_numbers = #tpu.dot_dimension_numbers<[1], [0], [0], [1], [0, 0, 1, 1], [], []>} : vector<24x22xf32>, vector<22x96xf32>, vector<24x96xf32> -> vector<24x96xf32>
    %246 = arith.addf %239, %245 : vector<24x96xf32>
    %c2_255 = arith.constant 2 : index
    %c0_256 = arith.constant 0 : index
    %c0_257 = arith.constant 0 : index
    %247 = vector.load %arg30[%c2_255, %c0_256, %c0_257] : memref<3x176x96xbf16, #tpu.memory_space<vmem>>, vector<1x176x96xbf16>
    %248 = vector.shape_cast %247 : vector<1x176x96xbf16> to vector<176x96xbf16>
    %cst_258 = arith.constant dense<0.000000e+00> : vector<22x96xf32>
    %249 = tpu.matmul %233, %248, %cst_258 {dimension_numbers = #tpu.dot_dimension_numbers<[1], [0], [0], [1], [0, 0, 1, 1], [], []>} : vector<22x176xbf16>, vector<176x96xbf16>, vector<22x96xf32> -> vector<22x96xf32>
    %c2_259 = arith.constant 2 : index
    %c0_260 = arith.constant 0 : index
    %c0_261 = arith.constant 0 : index
    %250 = vector.load %arg29[%c2_259, %c0_260, %c0_261] : memref<3x24x22xf32, #tpu.memory_space<vmem>>, vector<1x24x22xf32>
    %251 = vector.shape_cast %250 : vector<1x24x22xf32> to vector<24x22xf32>
    %cst_262 = arith.constant dense<0.000000e+00> : vector<24x96xf32>
    %252 = tpu.matmul %251, %249, %cst_262 {dimension_numbers = #tpu.dot_dimension_numbers<[1], [0], [0], [1], [0, 0, 1, 1], [], []>} : vector<24x22xf32>, vector<22x96xf32>, vector<24x96xf32> -> vector<24x96xf32>
    %253 = arith.addf %246, %252 : vector<24x96xf32>
    %c0_263 = arith.constant 0 : index
    %c0_264 = arith.constant 0 : index
    %254 = vector.load %arg31[%c0_263, %c0_264] : memref<1x96xf32, #tpu.memory_space<vmem>>, vector<1x96xf32>
    %255 = vector.broadcast %254 : vector<1x96xf32> to vector<24x96xf32>
    %256 = arith.addf %253, %255 : vector<24x96xf32>
    %cst_265 = arith.constant 0.000000e+00 : f32
    %257 = vector.broadcast %cst_265 : f32 to vector<24x96xf32>
    %258 = arith.maximumf %256, %257 : vector<24x96xf32>
    %259 = arith.truncf %258 : vector<24x96xf32> to vector<24x96xbf16>
    %c0_266 = arith.constant 0 : index
    %c0_267 = arith.constant 0 : index
    %c0_268 = arith.constant 0 : index
    %260 = vector.load %arg33[%c0_266, %c0_267, %c0_268] : memref<5x96x28xbf16, #tpu.memory_space<vmem>>, vector<1x96x28xbf16>
    %261 = vector.shape_cast %260 : vector<1x96x28xbf16> to vector<96x28xbf16>
    %cst_269 = arith.constant dense<0.000000e+00> : vector<24x28xf32>
    %262 = tpu.matmul %259, %261, %cst_269 {dimension_numbers = #tpu.dot_dimension_numbers<[1], [0], [0], [1], [0, 0, 1, 1], [], []>} : vector<24x96xbf16>, vector<96x28xbf16>, vector<24x28xf32> -> vector<24x28xf32>
    %c0_270 = arith.constant 0 : index
    %c0_271 = arith.constant 0 : index
    %c0_272 = arith.constant 0 : index
    %263 = vector.load %arg32[%c0_270, %c0_271, %c0_272] : memref<5x28x24xf32, #tpu.memory_space<vmem>>, vector<1x28x24xf32>
    %264 = vector.shape_cast %263 : vector<1x28x24xf32> to vector<28x24xf32>
    %cst_273 = arith.constant dense<0.000000e+00> : vector<28x28xf32>
    %265 = tpu.matmul %264, %262, %cst_273 {dimension_numbers = #tpu.dot_dimension_numbers<[1], [0], [0], [1], [0, 0, 1, 1], [], []>} : vector<28x24xf32>, vector<24x28xf32>, vector<28x28xf32> -> vector<28x28xf32>
    %c1_274 = arith.constant 1 : index
    %c0_275 = arith.constant 0 : index
    %c0_276 = arith.constant 0 : index
    %266 = vector.load %arg33[%c1_274, %c0_275, %c0_276] : memref<5x96x28xbf16, #tpu.memory_space<vmem>>, vector<1x96x28xbf16>
    %267 = vector.shape_cast %266 : vector<1x96x28xbf16> to vector<96x28xbf16>
    %cst_277 = arith.constant dense<0.000000e+00> : vector<24x28xf32>
    %268 = tpu.matmul %259, %267, %cst_277 {dimension_numbers = #tpu.dot_dimension_numbers<[1], [0], [0], [1], [0, 0, 1, 1], [], []>} : vector<24x96xbf16>, vector<96x28xbf16>, vector<24x28xf32> -> vector<24x28xf32>
    %c1_278 = arith.constant 1 : index
    %c0_279 = arith.constant 0 : index
    %c0_280 = arith.constant 0 : index
    %269 = vector.load %arg32[%c1_278, %c0_279, %c0_280] : memref<5x28x24xf32, #tpu.memory_space<vmem>>, vector<1x28x24xf32>
    %270 = vector.shape_cast %269 : vector<1x28x24xf32> to vector<28x24xf32>
    %cst_281 = arith.constant dense<0.000000e+00> : vector<28x28xf32>
    %271 = tpu.matmul %270, %268, %cst_281 {dimension_numbers = #tpu.dot_dimension_numbers<[1], [0], [0], [1], [0, 0, 1, 1], [], []>} : vector<28x24xf32>, vector<24x28xf32>, vector<28x28xf32> -> vector<28x28xf32>
    %272 = arith.addf %265, %271 : vector<28x28xf32>
    %c2_282 = arith.constant 2 : index
    %c0_283 = arith.constant 0 : index
    %c0_284 = arith.constant 0 : index
    %273 = vector.load %arg33[%c2_282, %c0_283, %c0_284] : memref<5x96x28xbf16, #tpu.memory_space<vmem>>, vector<1x96x28xbf16>
    %274 = vector.shape_cast %273 : vector<1x96x28xbf16> to vector<96x28xbf16>
    %cst_285 = arith.constant dense<0.000000e+00> : vector<24x28xf32>
    %275 = tpu.matmul %259, %274, %cst_285 {dimension_numbers = #tpu.dot_dimension_numbers<[1], [0], [0], [1], [0, 0, 1, 1], [], []>} : vector<24x96xbf16>, vector<96x28xbf16>, vector<24x28xf32> -> vector<24x28xf32>
    %c2_286 = arith.constant 2 : index
    %c0_287 = arith.constant 0 : index
    %c0_288 = arith.constant 0 : index
    %276 = vector.load %arg32[%c2_286, %c0_287, %c0_288] : memref<5x28x24xf32, #tpu.memory_space<vmem>>, vector<1x28x24xf32>
    %277 = vector.shape_cast %276 : vector<1x28x24xf32> to vector<28x24xf32>
    %cst_289 = arith.constant dense<0.000000e+00> : vector<28x28xf32>
    %278 = tpu.matmul %277, %275, %cst_289 {dimension_numbers = #tpu.dot_dimension_numbers<[1], [0], [0], [1], [0, 0, 1, 1], [], []>} : vector<28x24xf32>, vector<24x28xf32>, vector<28x28xf32> -> vector<28x28xf32>
    %279 = arith.addf %272, %278 : vector<28x28xf32>
    %c3_290 = arith.constant 3 : index
    %c0_291 = arith.constant 0 : index
    %c0_292 = arith.constant 0 : index
    %280 = vector.load %arg33[%c3_290, %c0_291, %c0_292] : memref<5x96x28xbf16, #tpu.memory_space<vmem>>, vector<1x96x28xbf16>
    %281 = vector.shape_cast %280 : vector<1x96x28xbf16> to vector<96x28xbf16>
    %cst_293 = arith.constant dense<0.000000e+00> : vector<24x28xf32>
    %282 = tpu.matmul %259, %281, %cst_293 {dimension_numbers = #tpu.dot_dimension_numbers<[1], [0], [0], [1], [0, 0, 1, 1], [], []>} : vector<24x96xbf16>, vector<96x28xbf16>, vector<24x28xf32> -> vector<24x28xf32>
    %c3_294 = arith.constant 3 : index
    %c0_295 = arith.constant 0 : index
    %c0_296 = arith.constant 0 : index
    %283 = vector.load %arg32[%c3_294, %c0_295, %c0_296] : memref<5x28x24xf32, #tpu.memory_space<vmem>>, vector<1x28x24xf32>
    %284 = vector.shape_cast %283 : vector<1x28x24xf32> to vector<28x24xf32>
    %cst_297 = arith.constant dense<0.000000e+00> : vector<28x28xf32>
    %285 = tpu.matmul %284, %282, %cst_297 {dimension_numbers = #tpu.dot_dimension_numbers<[1], [0], [0], [1], [0, 0, 1, 1], [], []>} : vector<28x24xf32>, vector<24x28xf32>, vector<28x28xf32> -> vector<28x28xf32>
    %286 = arith.addf %279, %285 : vector<28x28xf32>
    %c4_298 = arith.constant 4 : index
    %c0_299 = arith.constant 0 : index
    %c0_300 = arith.constant 0 : index
    %287 = vector.load %arg33[%c4_298, %c0_299, %c0_300] : memref<5x96x28xbf16, #tpu.memory_space<vmem>>, vector<1x96x28xbf16>
    %288 = vector.shape_cast %287 : vector<1x96x28xbf16> to vector<96x28xbf16>
    %cst_301 = arith.constant dense<0.000000e+00> : vector<24x28xf32>
    %289 = tpu.matmul %259, %288, %cst_301 {dimension_numbers = #tpu.dot_dimension_numbers<[1], [0], [0], [1], [0, 0, 1, 1], [], []>} : vector<24x96xbf16>, vector<96x28xbf16>, vector<24x28xf32> -> vector<24x28xf32>
    %c4_302 = arith.constant 4 : index
    %c0_303 = arith.constant 0 : index
    %c0_304 = arith.constant 0 : index
    %290 = vector.load %arg32[%c4_302, %c0_303, %c0_304] : memref<5x28x24xf32, #tpu.memory_space<vmem>>, vector<1x28x24xf32>
    %291 = vector.shape_cast %290 : vector<1x28x24xf32> to vector<28x24xf32>
    %cst_305 = arith.constant dense<0.000000e+00> : vector<28x28xf32>
    %292 = tpu.matmul %291, %289, %cst_305 {dimension_numbers = #tpu.dot_dimension_numbers<[1], [0], [0], [1], [0, 0, 1, 1], [], []>} : vector<28x24xf32>, vector<24x28xf32>, vector<28x28xf32> -> vector<28x28xf32>
    %293 = arith.addf %286, %292 : vector<28x28xf32>
    %c0_306 = arith.constant 0 : index
    %c0_307 = arith.constant 0 : index
    %294 = vector.load %arg34[%c0_306, %c0_307] : memref<1x28xf32, #tpu.memory_space<vmem>>, vector<1x28xf32>
    %295 = vector.broadcast %294 : vector<1x28xf32> to vector<28x28xf32>
    %296 = arith.addf %293, %295 : vector<28x28xf32>
    %c0_308 = arith.constant 0 : index
    %c0_309 = arith.constant 0 : index
    %c0_310 = arith.constant 0 : index
    %297 = vector.load %arg35[%c0_308, %c0_309, %c0_310] : memref<1x28x28xf32, #tpu.memory_space<vmem>>, vector<1x28x28xf32>
    %298 = vector.shape_cast %297 : vector<1x28x28xf32> to vector<28x28xf32>
    %299 = vector.shape_cast %296 : vector<28x28xf32> to vector<1x28x28xf32>
    tpu.vector_store %arg35[%c0_308, %c0_309, %c0_310], %299 {strides = array<i32>} : memref<1x28x28xf32, #tpu.memory_space<vmem>>, vector<1x28x28xf32>,
    return
  }
  func.func @transform_0(%arg0: i32) -> (i32, i32, i32) {
    %c0_i32 = arith.constant 0 : i32
    %c0_i32_0 = arith.constant 0 : i32
    %c0_i32_1 = arith.constant 0 : i32
    return %arg0, %c0_i32, %c0_i32_0 : i32, i32, i32
  }
  func.func @transform_1(%arg0: i32) -> (i32, i32, i32) {
    %c0_i32 = arith.constant 0 : i32
    %c0_i32_0 = arith.constant 0 : i32
    %c0_i32_1 = arith.constant 0 : i32
    %c0_i32_2 = arith.constant 0 : i32
    return %c0_i32, %c0_i32_0, %c0_i32_1 : i32, i32, i32
  }
  func.func @transform_2(%arg0: i32) -> (i32, i32, i32) {
    %c0_i32 = arith.constant 0 : i32
    %c0_i32_0 = arith.constant 0 : i32
    %c0_i32_1 = arith.constant 0 : i32
    %c0_i32_2 = arith.constant 0 : i32
    return %c0_i32, %c0_i32_0, %c0_i32_1 : i32, i32, i32
  }
  func.func @transform_3(%arg0: i32) -> (i32, i32) {
    %c0_i32 = arith.constant 0 : i32
    %c0_i32_0 = arith.constant 0 : i32
    %c0_i32_1 = arith.constant 0 : i32
    return %c0_i32, %c0_i32_0 : i32, i32
  }
  func.func @transform_4(%arg0: i32) -> (i32, i32, i32) {
    %c0_i32 = arith.constant 0 : i32
    %c0_i32_0 = arith.constant 0 : i32
    %c0_i32_1 = arith.constant 0 : i32
    %c0_i32_2 = arith.constant 0 : i32
    return %c0_i32, %c0_i32_0, %c0_i32_1 : i32, i32, i32
  }
  func.func @transform_5(%arg0: i32) -> (i32, i32, i32) {
    %c0_i32 = arith.constant 0 : i32
    %c0_i32_0 = arith.constant 0 : i32
    %c0_i32_1 = arith.constant 0 : i32
    %c0_i32_2 = arith.constant 0 : i32
    return %c0_i32, %c0_i32_0, %c0_i32_1 : i32, i32, i32
  }
  func.func @transform_6(%arg0: i32) -> (i32, i32) {
    %c0_i32 = arith.constant 0 : i32
    %c0_i32_0 = arith.constant 0 : i32
    %c0_i32_1 = arith.constant 0 : i32
    return %c0_i32, %c0_i32_0 : i32, i32
  }
  func.func @transform_7(%arg0: i32) -> (i32, i32, i32) {
    %c0_i32 = arith.constant 0 : i32
    %c0_i32_0 = arith.constant 0 : i32
    %c0_i32_1 = arith.constant 0 : i32
    %c0_i32_2 = arith.constant 0 : i32
    return %c0_i32, %c0_i32_0, %c0_i32_1 : i32, i32, i32
  }
  func.func @transform_8(%arg0: i32) -> (i32, i32, i32) {
    %c0_i32 = arith.constant 0 : i32
    %c0_i32_0 = arith.constant 0 : i32
    %c0_i32_1 = arith.constant 0 : i32
    %c0_i32_2 = arith.constant 0 : i32
    return %c0_i32, %c0_i32_0, %c0_i32_1 : i32, i32, i32
  }
  func.func @transform_9(%arg0: i32) -> (i32, i32) {
    %c0_i32 = arith.constant 0 : i32
    %c0_i32_0 = arith.constant 0 : i32
    %c0_i32_1 = arith.constant 0 : i32
    return %c0_i32, %c0_i32_0 : i32, i32
  }
  func.func @transform_10(%arg0: i32) -> (i32, i32, i32) {
    %c0_i32 = arith.constant 0 : i32
    %c0_i32_0 = arith.constant 0 : i32
    %c0_i32_1 = arith.constant 0 : i32
    %c0_i32_2 = arith.constant 0 : i32
    return %c0_i32, %c0_i32_0, %c0_i32_1 : i32, i32, i32
  }
  func.func @transform_11(%arg0: i32) -> (i32, i32, i32) {
    %c0_i32 = arith.constant 0 : i32
    %c0_i32_0 = arith.constant 0 : i32
    %c0_i32_1 = arith.constant 0 : i32
    %c0_i32_2 = arith.constant 0 : i32
    return %c0_i32, %c0_i32_0, %c0_i32_1 : i32, i32, i32
  }
  func.func @transform_12(%arg0: i32) -> (i32, i32) {
    %c0_i32 = arith.constant 0 : i32
    %c0_i32_0 = arith.constant 0 : i32
    %c0_i32_1 = arith.constant 0 : i32
    return %c0_i32, %c0_i32_0 : i32, i32
  }
  func.func @transform_13(%arg0: i32) -> (i32, i32, i32) {
    %c0_i32 = arith.constant 0 : i32
    %c0_i32_0 = arith.constant 0 : i32
    %c0_i32_1 = arith.constant 0 : i32
    %c0_i32_2 = arith.constant 0 : i32
    return %c0_i32, %c0_i32_0, %c0_i32_1 : i32, i32, i32
  }
  func.func @transform_14(%arg0: i32) -> (i32, i32, i32) {
    %c0_i32 = arith.constant 0 : i32
    %c0_i32_0 = arith.constant 0 : i32
    %c0_i32_1 = arith.constant 0 : i32
    %c0_i32_2 = arith.constant 0 : i32
    return %c0_i32, %c0_i32_0, %c0_i32_1 : i32, i32, i32
  }
  func.func @transform_15(%arg0: i32) -> (i32, i32) {
    %c0_i32 = arith.constant 0 : i32
    %c0_i32_0 = arith.constant 0 : i32
    %c0_i32_1 = arith.constant 0 : i32
    return %c0_i32, %c0_i32_0 : i32, i32
  }
  func.func @transform_16(%arg0: i32) -> (i32, i32, i32) {
    %c0_i32 = arith.constant 0 : i32
    %c0_i32_0 = arith.constant 0 : i32
    %c0_i32_1 = arith.constant 0 : i32
    %c0_i32_2 = arith.constant 0 : i32
    return %c0_i32, %c0_i32_0, %c0_i32_1 : i32, i32, i32
  }
  func.func @transform_17(%arg0: i32) -> (i32, i32, i32) {
    %c0_i32 = arith.constant 0 : i32
    %c0_i32_0 = arith.constant 0 : i32
    %c0_i32_1 = arith.constant 0 : i32
    %c0_i32_2 = arith.constant 0 : i32
    return %c0_i32, %c0_i32_0, %c0_i32_1 : i32, i32, i32
  }
  func.func @transform_18(%arg0: i32) -> (i32, i32) {
    %c0_i32 = arith.constant 0 : i32
    %c0_i32_0 = arith.constant 0 : i32
    %c0_i32_1 = arith.constant 0 : i32
    return %c0_i32, %c0_i32_0 : i32, i32
  }
  func.func @transform_19(%arg0: i32) -> (i32, i32, i32) {
    %c0_i32 = arith.constant 0 : i32
    %c0_i32_0 = arith.constant 0 : i32
    %c0_i32_1 = arith.constant 0 : i32
    %c0_i32_2 = arith.constant 0 : i32
    return %c0_i32, %c0_i32_0, %c0_i32_1 : i32, i32, i32
  }
  func.func @transform_20(%arg0: i32) -> (i32, i32, i32) {
    %c0_i32 = arith.constant 0 : i32
    %c0_i32_0 = arith.constant 0 : i32
    %c0_i32_1 = arith.constant 0 : i32
    %c0_i32_2 = arith.constant 0 : i32
    return %c0_i32, %c0_i32_0, %c0_i32_1 : i32, i32, i32
  }
  func.func @transform_21(%arg0: i32) -> (i32, i32) {
    %c0_i32 = arith.constant 0 : i32
    %c0_i32_0 = arith.constant 0 : i32
    %c0_i32_1 = arith.constant 0 : i32
    return %c0_i32, %c0_i32_0 : i32, i32
  }
  func.func @transform_22(%arg0: i32) -> (i32, i32, i32) {
    %c0_i32 = arith.constant 0 : i32
    %c0_i32_0 = arith.constant 0 : i32
    %c0_i32_1 = arith.constant 0 : i32
    %c0_i32_2 = arith.constant 0 : i32
    return %c0_i32, %c0_i32_0, %c0_i32_1 : i32, i32, i32
  }
  func.func @transform_23(%arg0: i32) -> (i32, i32, i32) {
    %c0_i32 = arith.constant 0 : i32
    %c0_i32_0 = arith.constant 0 : i32
    %c0_i32_1 = arith.constant 0 : i32
    %c0_i32_2 = arith.constant 0 : i32
    return %c0_i32, %c0_i32_0, %c0_i32_1 : i32, i32, i32
  }
  func.func @transform_24(%arg0: i32) -> (i32, i32) {
    %c0_i32 = arith.constant 0 : i32
    %c0_i32_0 = arith.constant 0 : i32
    %c0_i32_1 = arith.constant 0 : i32
    return %c0_i32, %c0_i32_0 : i32, i32
  }
  func.func @transform_25(%arg0: i32) -> (i32, i32, i32) {
    %c0_i32 = arith.constant 0 : i32
    %c0_i32_0 = arith.constant 0 : i32
    %c0_i32_1 = arith.constant 0 : i32
    %c0_i32_2 = arith.constant 0 : i32
    return %c0_i32, %c0_i32_0, %c0_i32_1 : i32, i32, i32
  }
  func.func @transform_26(%arg0: i32) -> (i32, i32, i32) {
    %c0_i32 = arith.constant 0 : i32
    %c0_i32_0 = arith.constant 0 : i32
    %c0_i32_1 = arith.constant 0 : i32
    %c0_i32_2 = arith.constant 0 : i32
    return %c0_i32, %c0_i32_0, %c0_i32_1 : i32, i32, i32
  }
  func.func @transform_27(%arg0: i32) -> (i32, i32) {
    %c0_i32 = arith.constant 0 : i32
    %c0_i32_0 = arith.constant 0 : i32
    %c0_i32_1 = arith.constant 0 : i32
    return %c0_i32, %c0_i32_0 : i32, i32
  }
  func.func @transform_28(%arg0: i32) -> (i32, i32, i32) {
    %c0_i32 = arith.constant 0 : i32
    %c0_i32_0 = arith.constant 0 : i32
    %c0_i32_1 = arith.constant 0 : i32
    %c0_i32_2 = arith.constant 0 : i32
    return %c0_i32, %c0_i32_0, %c0_i32_1 : i32, i32, i32
  }
  func.func @transform_29(%arg0: i32) -> (i32, i32, i32) {
    %c0_i32 = arith.constant 0 : i32
    %c0_i32_0 = arith.constant 0 : i32
    %c0_i32_1 = arith.constant 0 : i32
    %c0_i32_2 = arith.constant 0 : i32
    return %c0_i32, %c0_i32_0, %c0_i32_1 : i32, i32, i32
  }
  func.func @transform_30(%arg0: i32) -> (i32, i32) {
    %c0_i32 = arith.constant 0 : i32
    %c0_i32_0 = arith.constant 0 : i32
    %c0_i32_1 = arith.constant 0 : i32
    return %c0_i32, %c0_i32_0 : i32, i32
  }
  func.func @transform_31(%arg0: i32) -> (i32, i32, i32) {
    %c0_i32 = arith.constant 0 : i32
    %c0_i32_0 = arith.constant 0 : i32
    %c0_i32_1 = arith.constant 0 : i32
    %c0_i32_2 = arith.constant 0 : i32
    return %c0_i32, %c0_i32_0, %c0_i32_1 : i32, i32, i32
  }
  func.func @transform_32(%arg0: i32) -> (i32, i32, i32) {
    %c0_i32 = arith.constant 0 : i32
    %c0_i32_0 = arith.constant 0 : i32
    %c0_i32_1 = arith.constant 0 : i32
    %c0_i32_2 = arith.constant 0 : i32
    return %c0_i32, %c0_i32_0, %c0_i32_1 : i32, i32, i32
  }
  func.func @transform_33(%arg0: i32) -> (i32, i32) {
    %c0_i32 = arith.constant 0 : i32
    %c0_i32_0 = arith.constant 0 : i32
    %c0_i32_1 = arith.constant 0 : i32
    return %c0_i32, %c0_i32_0 : i32, i32
  }
  func.func @transform_34(%arg0: i32) -> (i32, i32, i32) {
    %c0_i32 = arith.constant 0 : i32
    %c0_i32_0 = arith.constant 0 : i32
    %c0_i32_1 = arith.constant 0 : i32
    return %arg0, %c0_i32, %c0_i32_0 : i32, i32, i32
  }
}

</mosaic_0001>

<bundles_post_ra>
// kernel: forward.1
= control target key start
LH: loop header
LB: loop body
LE: loop exit
PB: predicated region body
PF: predicated region fallthrough
CT: control target
= control target key end

     0   :  { %s8467_s6 = smov 1   ;;  %s8468_s10 = smov 2   ;;  %s9455_s0 = inlined_call_operand.smem [shape: u32[35], index: -1, kind: input, shape index: {}] }
   0x1   :  { %s8542_s5 = sld [smem:[%s9455_s0]]   ;;  %s8469_s14 = smov 3  }
   0x2   :  { %s8547_s9 = sld [smem:[%s9455_s0 + %s8467_s6]]   ;;  %s8470_s18 = smov 4  }
   0x3   :  { %s8552_s13 = sld [smem:[%s9455_s0 + %s8468_s10]]   ;;  %s8471_s22 = smov 5  }
   0x4   :  { %s8557_s17 = sld [smem:[%s9455_s0 + %s8469_s14]]   ;;  %s8472_s26 = smov 6  }
   0x5   :  { %s8562_s21 = sld [smem:[%s9455_s0 + %s8470_s18]]   ;;  %s8473_s30 = smov 7  }
   0x6   :  { %s8567_s25 = sld [smem:[%s9455_s0 + %s8471_s22]]   ;;  %s8474_s4 = smov 8  }
   0x7   :  { %9491 = sst [smem:[#allocation57_spill]] %s8542_s5  ;;  %s8475_s10 = smov 9  }
   0x8   :  { %9492 = sst [smem:[#allocation58_spill]] %s8547_s9  ;;  %s8476_s15 = smov 10  }
   0x9   :  { %9493 = sst [smem:[#allocation59_spill]] %s8552_s13  ;;  %s8477_s20 = smov 11  }
   0xa   :  { %9494 = sst [smem:[#allocation60_spill]] %s8557_s17  ;;  %s8479_s1 = smov 13  }
   0xb   :  { %s8572_s29 = sld [smem:[%s9455_s0 + %s8472_s26]]   ;;  %s8478_s26 = smov 12  }
   0xc   :  { %9495 = sst [smem:[#allocation61_spill]] %s8567_s25  ;;  %s8480_s7 = smov 14  }
   0xd   :  { %s8577_s3 = sld [smem:[%s9455_s0 + %s8473_s30]]   ;;  %s8482_s22 = smov 16  }
   0xe   :  { %s8582_s8 = sld [smem:[%s9455_s0 + %s8474_s4]]   ;;  %s8483_s28 = smov 17  }
   0xf   :  { %s8587_s14 = sld [smem:[%s9455_s0 + %s8475_s10]]  }
  0x10   :  { %s8592_s19 = sld [smem:[%s9455_s0 + %s8476_s15]]   ;;  %s8481_s15 = smov 15  }
  0x11   :  { %s8597_s24 = sld [smem:[%s9455_s0 + %s8477_s20]]  }
  0x12   :  { %s8602_s30 = sld [smem:[%s9455_s0 + %s8478_s26]]  }
  0x13   :  { %9496 = sst [smem:[#allocation62_spill]] %s8577_s3 }
  0x14   :  { %9497 = sst [smem:[#allocation63_spill]] %s8582_s8 }
  0x15   :  { %9498 = sst [smem:[#allocation64_spill]] %s8587_s14 }
  0x16   :  { %9499 = sst [smem:[#allocation65_spill]] %s8592_s19 }
  0x17   :  { %s8607_s6 = sld [smem:[%s9455_s0 + %s8479_s1]]  }
  0x18   :  { %9500 = sst [smem:[#allocation66_spill]] %s8602_s30 }
  0x19   :  { %s8612_s12 = sld [smem:[%s9455_s0 + %s8480_s7]]   ;;  %s8484_s7 = smov 18  }
  0x1a   :  { %s8617_s20 = sld [smem:[%s9455_s0 + %s8481_s15]]   ;;  %s8485_s15 = smov 19  }
  0x1b   :  { %s8622_s27 = sld [smem:[%s9455_s0 + %s8482_s22]]   ;;  %s8486_s22 = smov 20  }
  0x1c   :  { %s8627_s4 = sld [smem:[%s9455_s0 + %s8483_s28]]   ;;  %s8487_s28 = smov 21  }
  0x1d   :  { %9501 = sst [smem:[#allocation67_spill]] %s8607_s6 }
  0x1e   :  { %s8632_s6 = sld [smem:[%s9455_s0 + %s8484_s7]]   ;;  %s8488_s7 = smov 22  }
  0x1f   :  { %9502 = sst [smem:[#allocation68_spill]] %s8612_s12 }
  0x20   :  { %9503 = sst [smem:[#allocation69_spill]] %s8617_s20 }
  0x21   :  { %s8637_s19 = sld [smem:[%s9455_s0 + %s8485_s15]]   ;;  %s8489_s15 = smov 23  }
  0x22   :  { %9504 = sst [smem:[#allocation70_spill]] %s8627_s4 }
  0x23   :  { %s8642_s5 = sld [smem:[%s9455_s0 + %s8486_s22]]   ;;  %s8490_s22 = smov 24  }
  0x24   :  { %9505 = sst [smem:[#allocation71_spill]] %s8632_s6 }
  0x25   :  { %s8647_s4 = sld [smem:[%s9455_s0 + %s8487_s28]]   ;;  %s8491_s28 = smov 25  }
  0x26   :  { %s8652_s20 = sld [smem:[%s9455_s0 + %s8488_s7]]   ;;  %s8492_s7 = smov 26  }
  0x27   :  { %9506 = sst [smem:[#allocation72_spill]] %s8637_s19 }
  0x28   :  { %s8657_s19 = sld [smem:[%s9455_s0 + %s8489_s15]]   ;;  %s8493_s15 = smov 27  }
  0x29   :  { %9507 = sst [smem:[#allocation73_spill]] %s8642_s5 }
  0x2a   :  { %s8662_s30 = sld [smem:[%s9455_s0 + %s8490_s22]]   ;;  %s8494_s22 = smov 28  }
  0x2b   :  { %9508 = sst [smem:[#allocation74_spill]] %s8647_s4 }
  0x2c   :  { %s8667_s4 = sld [smem:[%s9455_s0 + %s8491_s28]]   ;;  %s8495_s28 = smov 29  }
  0x2d   :  { %s8672_s14 = sld [smem:[%s9455_s0 + %s8492_s7]]   ;;  %s8496_s7 = smov 30  }
  0x2e   :  { %9509 = sst [smem:[#allocation75_spill]] %s8657_s19 }
  0x2f   :  { %s8677_s19 = sld [smem:[%s9455_s0 + %s8493_s15]]   ;;  %s8497_s15 = smov 31  }
  0x30   :  { %s8682_s3 = sld [smem:[%s9455_s0 + %s8494_s22]]   ;;  %s8498_s22 = smov 32  }
  0x31   :  { %s8692_s25 = sld [smem:[%s9455_s0 + %s8496_s7]]   ;;  %s8500_s7 = smov 34  }
  0x32   :  { %9510 = sst [smem:[#allocation76_spill]] %s8667_s4 }
  0x33   :  { %s8687_s4 = sld [smem:[%s9455_s0 + %s8495_s28]]   ;;  %s8499_s28 = smov 33  }
  0x34   :  { %s8707_s17 = sld [smem:[%s9455_s0 + %s8499_s28]]  }
  0x35   :  { %9511 = sst [smem:[#allocation77_spill]] %s8677_s19 }
  0x36   :  { %9512 = sst [smem:[#allocation78_spill]] %s8682_s3 }
  0x37   :  { %9514 = sst [smem:[#allocation80_spill]] %s8692_s25 }
  0x38   :  { %s8697_s19 = sld [smem:[%s9455_s0 + %s8497_s15]]  }
  0x39   :  { %9513 = sst [smem:[#allocation79_spill]] %s8687_s4 }
  0x3a   :  { %s8702_s3 = sld [smem:[%s9455_s0 + %s8498_s22]]  }
  0x3b   :  { %s8712_s25 = sld [smem:[%s9455_s0 + %s8500_s7]]  }
  0x3c   :  { %74 = vsyncpa [#allocation3], 0 }
  0x3d   :  { %75 = vsyncpa [#allocation5], 0 }
  0x3e   :  { %76 = vsyncpa [#allocation8], 0 }
  0x3f   :  { %77 = vsyncpa [#allocation11], 0 }
  0x40   :  { %78 = vsyncpa [#allocation14], 0 }
  0x41   :  { %79 = vsyncpa [#allocation17], 0 }
  0x42   :  { %80 = vsyncpa [#allocation20], 0 }
  0x43   :  { %81 = vsyncpa [#allocation23], 0 }
  0x44   :  { %82 = vsyncpa [#allocation26], 0 }
  0x45   :  { %83 = vsyncpa [#allocation29], 0 }
  0x46   :  { %84 = vsyncpa [#allocation32], 0 }
  0x47   :  { %85 = vsyncpa [#allocation35], 0 }
  0x48   :  { %86 = vsyncpa [#allocation38], 0 }
  0x49   :  { %87 = vsyncpa [#allocation41], 0  ;;  %s8714_s15 = smov 0  }
  0x4a LB: > { %s9515_s9 = sld [smem:[#allocation58_spill]]  ;;  %s8720_s0 = sadd.s32 4294967295, %s8465_s15   ;;  %s8465_s15 = sphi %s8714_s15, %s93_s15  }
  0x4b   : > { %s9516_s6 = sld [smem:[#allocation71_spill]]  ;;  %p5911_p0 = scmp.ge.s32.totalorder %s8465_s15, 1 }
  0x4c   : > { %s9517_s4 = sld [smem:[#allocation79_spill]]  ;;  %p843_p1 = scmp.lt.s32.totalorder %s8465_s15, 3 }
  0x4d   : > { %s9518_s5 = sld [smem:[#allocation73_spill]] }
  0x4e   : > { %s9519_s12 = sld [smem:[#allocation68_spill]]  ;;  %p8724_p2 = pnand %p5911_p0, %p843_p1 }
  0x4f   : > { %s9520_s8 = sld [smem:[#allocation63_spill]]  ;;  %p7510_p3 = scmp.eq.s32.totalorder (!%p8724_p2), %s8720_s0, 0 }
  0x50   : > { %s9521_s13 = sld [smem:[#allocation59_spill]]  ;;  %847 = sbr.rel (%p8724_p2) target bundleno = 442 (0x1ba), region = 12 }
  0x51   : > { %s8501_s22 = smov (!%p8724_p2), [#allocation4]  }
  0x52   : > { %s870_s23 = sshll.u32 (!%p8724_p2), %s8501_s22, 4  ;;  %s871_s23 = int_to_ptr.vmem [resolvable:$true] %s870_s23 }
  0x56   : > { %s868_s18 = sshll.u32 %s9521_s13, 4  ;;  %s7653_s1 = scalar_lea.hbm %s9521_s13, 80  ;;  %s869_s18 = int_to_ptr.hbm [resolvable:$true] %s868_s18 }
  0x57   : > { %s7647_s26 = sshra.s32 %s869_s18, 4  ;;  %s7648_s26 = int_to_ptr.hbm [resolvable:$true] %s7647_s26 }
  0x58   : > { %s7649_s28 = scalar_lea.hbm %s7648_s26, 80  ;;  %p7654_p7 = scmp.lt.s32.totalorder %s7648_s26, %s9521_s13 }
  0x59   : > { %p7650_p4 = scmp.ne.s32.totalorder %s7648_s26, %s7649_s28  ;;  %p7655_p8 = scmp.lt.s32.totalorder %s7653_s1, %s7649_s28 }
  0x5b   : > { %p7651_p5 = pnand %p7650_p4, %p7510_p3  ;;  %p7656_p9 = por %p7655_p8, %p7654_p7 }
  0x5d   : > { %p7652_p6 = pneg %p7651_p5 }
  0x5f   : > { %p7657_p10 = pnand %p7656_p9, %p7652_p6 }
  0x61   : > { %7660 = shalt.err (!%p7657_p10)
}
  0x62   : > { %s9471_s2 = smov 64   ;;  %s9473_s7 = smov 4  }
  0x63   : > { %7405 = dma.hbm_to_vmem [thread:$0]  (%p7510_p3), %s869_s18, 1280, %s871_s23, [#allocation5], %s9471_s2, %s9471_s2, %s9473_s7  }
  0x64   : > { %s894_s10 = sshll.u32 %s8562_s21, 4  ;;  %s8504_s11 = smov [#allocation7]   ;;  %s895_s10 = int_to_ptr.hbm [resolvable:$true] %s894_s10 }
  0x65   : > { %s896_s22 = sshll.u32 %s8504_s11, 4  ;;  %s923_s26 = sshll.u32 %s8572_s29, 4  ;;  %s897_s22 = int_to_ptr.vmem [resolvable:$true] %s896_s22  ;;  %s924_s26 = int_to_ptr.hbm [resolvable:$true] %s923_s26 }
  0x66   : > { %s7675_s28 = sshra.s32 %s895_s10, 4  ;;  %s7681_s13 = scalar_lea.hbm %s8562_s21, 48  ;;  %s7676_s28 = int_to_ptr.hbm [resolvable:$true] %s7675_s28 }
  0x67   : > { %s7677_s1 = scalar_lea.hbm %s7676_s28, 48  ;;  %p7682_p0 = scmp.lt.s32.totalorder %s7676_s28, %s8562_s21 }
  0x68   : > { %p7678_p11 = scmp.ne.s32.totalorder %s7676_s28, %s7677_s1  ;;  %p7683_p1 = scmp.lt.s32.totalorder %s7681_s13, %s7677_s1 }
  0x6a   : > { %p7679_p12 = pnand %p7678_p11, %p7510_p3  ;;  %p7684_p4 = por %p7683_p1, %p7682_p0 }
  0x6c   : > { %p7680_p13 = pneg %p7679_p12 }
  0x6e   : > { %p7685_p5 = pnand %p7684_p4, %p7680_p13 }
  0x70   : > { %7688 = shalt.err (!%p7685_p5)
}
  0x71   : > { %s9475_s18 = smov 128   ;;  %s9477_s23 = smov 8  }
  0x72   : > { %7409 = dma.hbm_to_vmem [thread:$0]  (%p7510_p3), %s895_s10, 768, %s897_s22, [#allocation8], %s9475_s18, %s9475_s18, %s9477_s23  }
  0x73   : > { %s8507_s11 = smov [#allocation10]   ;;  %s948_s28 = sshll.u32 %s9520_s8, 4  ;;  %s8753_s28 = int_to_ptr.hbm [resolvable:$true] %s948_s28 }
  0x74   : > { %s925_s2 = sshll.u32 %s8507_s11, 4  ;;  %s7703_s13 = sshra.s32 %s924_s26, 4  ;;  %s926_s2 = int_to_ptr.vmem [resolvable:$true] %s925_s2  ;;  %s7704_s13 = int_to_ptr.hbm [resolvable:$true] %s7703_s13 }
  0x75   : > { %s7705_s1 = scalar_lea.hbm %s7704_s13, 1  ;;  %s7709_s7 = scalar_lea.hbm %s8572_s29, 1 }
  0x76   : > { %p7706_p6 = scmp.ne.s32.totalorder %s7704_s13, %s7705_s1  ;;  %p7710_p9 = scmp.lt.s32.totalorder %s7704_s13, %s8572_s29 }
  0x77   : > { %p7711_p10 = scmp.lt.s32.totalorder %s7709_s7, %s7705_s1 }
  0x78   : > { %p7707_p7 = pnand %p7706_p6, %p7510_p3 }
  0x79   : > { %p7712_p11 = por %p7711_p10, %p7710_p9 }
  0x7a   : > { %p7708_p8 = pneg %p7707_p7 }
  0x7c   : > { %p7713_p12 = pnand %p7712_p11, %p7708_p8 }
  0x7e   : > { %7716 = shalt.err (!%p7713_p12)
}
  0x7f   : > { %7413 = dma.hbm_to_vmem [thread:$0]  (%p7510_p3), %s924_s26, 16, %s926_s2, [#allocation11]  }
  0x80   : > { %s977_s10 = sshll.u32 %s8597_s24, 4  ;;  %s8508_s22 = smov [#allocation13]   ;;  %s8762_s10 = int_to_ptr.hbm [resolvable:$true] %s977_s10 }
  0x81   : > { %s950_s11 = sshll.u32 %s8508_s22, 4  ;;  %s7731_s18 = sshra.s32 %s8753_s28, 4  ;;  %s951_s11 = int_to_ptr.vmem [resolvable:$true] %s950_s11  ;;  %s7732_s18 = int_to_ptr.hbm [resolvable:$true] %s7731_s18 }
  0x82   : > { %s7733_s7 = scalar_lea.hbm %s7732_s18, 120  ;;  %s7737_s13 = scalar_lea.hbm %s9520_s8, 120 }
  0x83   : > { %p7734_p13 = scmp.ne.s32.totalorder %s7732_s18, %s7733_s7  ;;  %p7738_p4 = scmp.lt.s32.totalorder %s7732_s18, %s9520_s8 }
  0x84   : > { %p7739_p5 = scmp.lt.s32.totalorder %s7737_s13, %s7733_s7 }
  0x85   : > { %p7735_p0 = pnand %p7734_p13, %p7510_p3 }
  0x86   : > { %p7740_p6 = por %p7739_p5, %p7738_p4 }
  0x87   : > { %p7736_p1 = pneg %p7735_p0 }
  0x89   : > { %p7741_p7 = pnand %p7740_p6, %p7736_p1 }
  0x8b   : > { %7744 = shalt.err (!%p7741_p7)
}
  0x8c   : > { %s9523_s2 = smov 4   ;;  %s9524_s26 = smov 64  }
  0x8d   : > { %7417 = dma.hbm_to_vmem [thread:$0]  (%p7510_p3), %s8753_s28, 1920, %s951_s11, [#allocation14], %s9524_s26, %s9524_s26, %s9523_s2  }
  0x8e   : > { %s8509_s1 = smov [#allocation16]   ;;  %s1006_s23 = sshll.u32 %s9519_s12, 4  ;;  %s8776_s23 = int_to_ptr.hbm [resolvable:$true] %s1006_s23 }
  0x8f   : > { %s979_s22 = sshll.u32 %s8509_s1, 4  ;;  %s7759_s18 = sshra.s32 %s8762_s10, 4  ;;  %s980_s22 = int_to_ptr.vmem [resolvable:$true] %s979_s22  ;;  %s7760_s18 = int_to_ptr.hbm [resolvable:$true] %s7759_s18 }
  0x90   : > { %s7761_s7 = scalar_lea.hbm %s7760_s18, 96  ;;  %s7765_s13 = scalar_lea.hbm %s8597_s24, 96 }
  0x91   : > { %p7762_p8 = scmp.ne.s32.totalorder %s7760_s18, %s7761_s7  ;;  %p7766_p11 = scmp.lt.s32.totalorder %s7760_s18, %s8597_s24 }
  0x92   : > { %p7767_p12 = scmp.lt.s32.totalorder %s7765_s13, %s7761_s7 }
  0x93   : > { %p7763_p9 = pnand %p7762_p8, %p7510_p3 }
  0x94   : > { %p7768_p13 = por %p7767_p12, %p7766_p11 }
  0x95   : > { %p7764_p10 = pneg %p7763_p9 }
  0x97   : > { %p7769_p0 = pnand %p7768_p13, %p7764_p10 }
  0x99   : > { %7772 = shalt.err (!%p7769_p0)
}
  0x9a   : > { %7421 = dma.hbm_to_vmem [thread:$0]  (%p7510_p3), %s8762_s10, 1536, %s980_s22, [#allocation17], %s9524_s26, %s9524_s26, %s9523_s2  }
  0x9b   : > { %s1032_s28 = sshll.u32 %s8622_s27, 4  ;;  %s8510_s11 = smov [#allocation19]   ;;  %s8790_s28 = int_to_ptr.hbm [resolvable:$true] %s1032_s28 }
  0x9c   : > { %s1008_s1 = sshll.u32 %s8510_s11, 4  ;;  %s7787_s18 = sshra.s32 %s8776_s23, 4  ;;  %s1009_s1 = int_to_ptr.vmem [resolvable:$true] %s1008_s1  ;;  %s7788_s18 = int_to_ptr.hbm [resolvable:$true] %s7787_s18 }
  0x9d   : > { %s7789_s7 = scalar_lea.hbm %s7788_s18, 64  ;;  %s7793_s13 = scalar_lea.hbm %s9519_s12, 64 }
  0x9e   : > { %p7790_p1 = scmp.ne.s32.totalorder %s7788_s18, %s7789_s7  ;;  %p7794_p6 = scmp.lt.s32.totalorder %s7788_s18, %s9519_s12 }
  0x9f   : > { %p7795_p7 = scmp.lt.s32.totalorder %s7793_s13, %s7789_s7 }
  0xa0   : > { %p7791_p4 = pnand %p7790_p1, %p7510_p3 }
  0xa1   : > { %p7796_p8 = por %p7795_p7, %p7794_p6 }
  0xa2   : > { %p7792_p5 = pneg %p7791_p4 }
  0xa4   : > { %p7797_p9 = pnand %p7796_p8, %p7792_p5 }
  0xa6   : > { %7800 = shalt.err (!%p7797_p9)
}
  0xa7   : > { %7425 = dma.hbm_to_vmem [thread:$0]  (%p7510_p3), %s8776_s23, 1024, %s1009_s1, [#allocation20], %s9524_s26, %s9524_s26, %s9523_s2  }
  0xa8   : > { %s8511_s10 = smov [#allocation22]   ;;  %s7815_s11 = sshra.s32 %s8790_s28, 4  ;;  %s7816_s11 = int_to_ptr.hbm [resolvable:$true] %s7815_s11 }
  0xa9   : > { %s1034_s22 = sshll.u32 %s8511_s10, 4  ;;  %s7817_s18 = scalar_lea.hbm %s7816_s11, 4  ;;  %s1035_s22 = int_to_ptr.vmem [resolvable:$true] %s1034_s22 }
  0xaa   : > { %p7818_p10 = scmp.ne.s32.totalorder %s7816_s11, %s7817_s18  ;;  %s7821_s7 = scalar_lea.hbm %s8622_s27, 4 }
  0xab   : > { %p7822_p13 = scmp.lt.s32.totalorder %s7816_s11, %s8622_s27  ;;  %p7823_p0 = scmp.lt.s32.totalorder %s7821_s7, %s7817_s18 }
  0xac   : > { %p7819_p11 = pnand %p7818_p10, %p7510_p3 }
  0xad   : > { %p7824_p1 = por %p7823_p0, %p7822_p13 }
  0xae   : > { %p7820_p12 = pneg %p7819_p11 }
  0xb0   : > { %p7825_p4 = pnand %p7824_p1, %p7820_p12 }
  0xb2   : > { %7828 = shalt.err (!%p7825_p4)
}
  0xb3   : > { %s8512_s13 = smov 32   ;;  %s8513_s23 = smov 2  }
  0xb4   : > { %7429 = dma.hbm_to_vmem [thread:$0]  (%p7510_p3), %s8790_s28, 64, %s1035_s22, [#allocation23], %s8512_s13, %s8512_s13, %s8513_s23  }
  0xb5   : > { %s1061_s1 = sshll.u32 %s9516_s6, 4  ;;  %s8514_s10 = smov [#allocation25]   ;;  %s1062_s1 = int_to_ptr.hbm [resolvable:$true] %s1061_s1 }
  0xb6   : > { %s1063_s8 = sshll.u32 %s8514_s10, 4  ;;  %s1086_s11 = sshll.u32 %s9518_s5, 4  ;;  %s1064_s8 = int_to_ptr.vmem [resolvable:$true] %s1063_s8  ;;  %s1087_s11 = int_to_ptr.hbm [resolvable:$true] %s1086_s11 }
  0xb7   : > { %s7843_s18 = sshra.s32 %s1062_s1, 4  ;;  %s7849_s12 = scalar_lea.hbm %s9516_s6, 2  ;;  %s7844_s18 = int_to_ptr.hbm [resolvable:$true] %s7843_s18 }
  0xb8   : > { %s7845_s7 = scalar_lea.hbm %s7844_s18, 2  ;;  %p7850_p8 = scmp.lt.s32.totalorder %s7844_s18, %s9516_s6 }
  0xb9   : > { %p7846_p5 = scmp.ne.s32.totalorder %s7844_s18, %s7845_s7  ;;  %p7851_p9 = scmp.lt.s32.totalorder %s7849_s12, %s7845_s7 }
  0xbb   : > { %p7847_p6 = pnand %p7846_p5, %p7510_p3  ;;  %p7852_p10 = por %p7851_p9, %p7850_p8 }
  0xbd   : > { %p7848_p7 = pneg %p7847_p6 }
  0xbf   : > { %p7853_p11 = pnand %p7852_p10, %p7848_p7 }
  0xc1   : > { %7856 = shalt.err (!%p7853_p11)
}
  0xc2   : > { %7433 = dma.hbm_to_vmem [thread:$0]  (%p7510_p3), %s1062_s1, 32, %s1064_s8, [#allocation26]  }
  0xc3   : > { %s8515_s28 = smov [#allocation28]   ;;  %s1112_s13 = sshll.u32 %s8652_s20, 4  ;;  %s8820_s13 = int_to_ptr.hbm [resolvable:$true] %s1112_s13 }
  0xc4   : > { %s1088_s22 = sshll.u32 %s8515_s28, 4  ;;  %s7871_s23 = sshra.s32 %s1087_s11, 4  ;;  %s1089_s22 = int_to_ptr.vmem [resolvable:$true] %s1088_s22  ;;  %s7872_s23 = int_to_ptr.hbm [resolvable:$true] %s7871_s23 }
  0xc5   : > { %s7873_s12 = scalar_lea.hbm %s7872_s23, 96  ;;  %s7877_s10 = scalar_lea.hbm %s9518_s5, 96 }
  0xc6   : > { %p7874_p12 = scmp.ne.s32.totalorder %s7872_s23, %s7873_s12  ;;  %p7878_p1 = scmp.lt.s32.totalorder %s7872_s23, %s9518_s5 }
  0xc7   : > { %p7879_p4 = scmp.lt.s32.totalorder %s7877_s10, %s7873_s12 }
  0xc8   : > { %p7875_p13 = pnand %p7874_p12, %p7510_p3 }
  0xc9   : > { %p7880_p5 = por %p7879_p4, %p7878_p1 }
  0xca   : > { %p7876_p0 = pneg %p7875_p13 }
  0xcc   : > { %p7881_p6 = pnand %p7880_p5, %p7876_p0 }
  0xce   : > { %7884 = shalt.err (!%p7881_p6)
}
  0xcf   : > { %7437 = dma.hbm_to_vmem [thread:$0]  (%p7510_p3), %s1087_s11, 1536, %s1089_s22, [#allocation29], %s9524_s26, %s9524_s26, %s9523_s2  }
  0xd0   : > { %s1141_s8 = sshll.u32 %s8662_s30, 4  ;;  %s8516_s1 = smov [#allocation31]   ;;  %s8832_s8 = int_to_ptr.hbm [resolvable:$true] %s1141_s8 }
  0xd1   : > { %s1114_s18 = sshll.u32 %s8516_s1, 4  ;;  %s7899_s7 = sshra.s32 %s8820_s13, 4  ;;  %s1115_s18 = int_to_ptr.vmem [resolvable:$true] %s1114_s18  ;;  %s7900_s7 = int_to_ptr.hbm [resolvable:$true] %s7899_s7 }
  0xd2   : > { %s7901_s28 = scalar_lea.hbm %s7900_s7, 48  ;;  %s7905_s23 = scalar_lea.hbm %s8652_s20, 48 }
  0xd3   : > { %p7902_p7 = scmp.ne.s32.totalorder %s7900_s7, %s7901_s28  ;;  %p7906_p10 = scmp.lt.s32.totalorder %s7900_s7, %s8652_s20 }
  0xd4   : > { %p7907_p11 = scmp.lt.s32.totalorder %s7905_s23, %s7901_s28 }
  0xd5   : > { %p7903_p8 = pnand %p7902_p7, %p7510_p3 }
  0xd6   : > { %p7908_p12 = por %p7907_p11, %p7906_p10 }
  0xd7   : > { %p7904_p9 = pneg %p7903_p8 }
  0xd9   : > { %p7909_p13 = pnand %p7908_p12, %p7904_p9 }
  0xdb   : > { %7912 = shalt.err (!%p7909_p13)
}
  0xdc   : > { %s9525_s11 = smov 8   ;;  %s9526_s22 = smov 128  }
  0xdd   : > { %7441 = dma.hbm_to_vmem [thread:$0]  (%p7510_p3), %s8820_s13, 768, %s1115_s18, [#allocation32], %s9526_s22, %s9526_s22, %s9525_s11  }
  0xde   : > { %s8517_s12 = smov [#allocation34]   ;;  %s1166_s1 = sshll.u32 %s8672_s14, 4  ;;  %s8846_s1 = int_to_ptr.hbm [resolvable:$true] %s1166_s1 }
  0xdf   : > { %s1143_s10 = sshll.u32 %s8517_s12, 4  ;;  %s7927_s7 = sshra.s32 %s8832_s8, 4  ;;  %s1144_s10 = int_to_ptr.vmem [resolvable:$true] %s1143_s10  ;;  %s7928_s7 = int_to_ptr.hbm [resolvable:$true] %s7927_s7 }
  0xe0   : > { %s7929_s28 = scalar_lea.hbm %s7928_s7, 2  ;;  %s7933_s23 = scalar_lea.hbm %s8662_s30, 2 }
  0xe1   : > { %p7930_p0 = scmp.ne.s32.totalorder %s7928_s7, %s7929_s28  ;;  %p7934_p5 = scmp.lt.s32.totalorder %s7928_s7, %s8662_s30 }
  0xe2   : > { %p7935_p6 = scmp.lt.s32.totalorder %s7933_s23, %s7929_s28 }
  0xe3   : > { %p7931_p1 = pnand %p7930_p0, %p7510_p3 }
  0xe4   : > { %p7936_p7 = por %p7935_p6, %p7934_p5 }
  0xe5   : > { %p7932_p4 = pneg %p7931_p1 }
  0xe7   : > { %p7937_p8 = pnand %p7936_p7, %p7932_p4 }
  0xe9   : > { %7940 = shalt.err (!%p7937_p8)
}
  0xea   : > { %7445 = dma.hbm_to_vmem [thread:$0]  (%p7510_p3), %s8832_s8, 32, %s1144_s10, [#allocation35]  }
  0xeb   : > { %s1197_s13 = sshll.u32 %s9517_s4, 4  ;;  %s8518_s18 = smov [#allocation37]   ;;  %s8857_s13 = int_to_ptr.hbm [resolvable:$true] %s1197_s13 }
  0xec   : > { %s1168_s12 = sshll.u32 %s8518_s18, 4  ;;  %s7955_s7 = sshra.s32 %s8846_s1, 4  ;;  %s1169_s12 = int_to_ptr.vmem [resolvable:$true] %s1168_s12  ;;  %s7956_s7 = int_to_ptr.hbm [resolvable:$true] %s7955_s7 }
  0xed   : > { %s7957_s28 = scalar_lea.hbm %s7956_s7, 480  ;;  %s7961_s23 = scalar_lea.hbm %s8672_s14, 480 }
  0xee   : > { %p7958_p9 = scmp.ne.s32.totalorder %s7956_s7, %s7957_s28  ;;  %p7962_p12 = scmp.lt.s32.totalorder %s7956_s7, %s8672_s14 }
  0xef   : > { %p7963_p13 = scmp.lt.s32.totalorder %s7961_s23, %s7957_s28 }
  0xf0   : > { %p7959_p10 = pnand %p7958_p9, %p7510_p3 }
  0xf1   : > { %p7964_p0 = por %p7963_p13, %p7962_p12 }
  0xf2   : > { %p7960_p11 = pneg %p7959_p10 }
  0xf4   : > { %p7965_p1 = pnand %p7964_p0, %p7960_p11 }
  0xf6   : > { %7968 = shalt.err (!%p7965_p1)
}
  0xf7   : > { %7449 = dma.hbm_to_vmem [thread:$0]  (%p7510_p3), %s8846_s1, 7680, %s1169_s12, [#allocation38], %s9526_s22, %s9526_s22, %s9525_s11  }
  0xf8   : > { %s8519_s8 = smov [#allocation40]   ;;  %s854_s18 = sshll.u32 %s9515_s9, 4  ;;  %s855_s18 = int_to_ptr.hbm [resolvable:$true] %s854_s18 }
  0xf9   : > { %s1199_s10 = sshll.u32 %s8519_s8, 4  ;;  %s7983_s7 = sshra.s32 %s8857_s13, 4  ;;  %s1200_s10 = int_to_ptr.vmem [resolvable:$true] %s1199_s10  ;;  %s7984_s7 = int_to_ptr.hbm [resolvable:$true] %s7983_s7 }
  0xfa   : > { %s7985_s28 = scalar_lea.hbm %s7984_s7, 264  ;;  %s7989_s23 = scalar_lea.hbm %s9517_s4, 264 }
  0xfb   : > { %p7986_p4 = scmp.ne.s32.totalorder %s7984_s7, %s7985_s28  ;;  %p7990_p7 = scmp.lt.s32.totalorder %s7984_s7, %s9517_s4 }
  0xfc   : > { %p7991_p8 = scmp.lt.s32.totalorder %s7989_s23, %s7985_s28 }
  0xfd   : > { %p7987_p5 = pnand %p7986_p4, %p7510_p3 }
  0xfe   : > { %p7992_p9 = por %p7991_p8, %p7990_p7 }
  0xff   : > { %p7988_p6 = pneg %p7987_p5 }
 0x101   : > { %p7993_p10 = pnand %p7992_p9, %p7988_p6 }
 0x103   : > { %7996 = shalt.err (!%p7993_p10)
}
 0x104   : > { %s9527_s1 = sld [smem:[#allocation60_spill]]  ;;  %s8520_s12 = smov [#allocation2]  }
 0x105   : > { %7453 = dma.hbm_to_vmem [thread:$0]  (%p7510_p3), %s8857_s13, 4224, %s1200_s10, [#allocation41], %s9524_s26, %s9524_s26, %s9523_s2  }
 0x106   : > { %s856_s8 = sshll.u32 %s8520_s12, 4  ;;  %s8011_s7 = sshra.s32 %s855_s18, 4  ;;  %s857_s8 = int_to_ptr.vmem [resolvable:$true] %s856_s8  ;;  %s8012_s7 = int_to_ptr.hbm [resolvable:$true] %s8011_s7 }
 0x107   : > { %s8013_s28 = scalar_lea.hbm %s8012_s7, 80  ;;  %s8017_s23 = scalar_lea.hbm %s9515_s9, 80 }
 0x108   : > { %p8014_p11 = scmp.ne.s32.totalorder %s8012_s7, %s8013_s28  ;;  %p8018_p0 = scmp.lt.s32.totalorder %s8012_s7, %s9515_s9 }
 0x109   : > { %p8019_p1 = scmp.lt.s32.totalorder %s8017_s23, %s8013_s28 }
 0x10a   : > { %s883_s5 = sshll.u32 %s9527_s1, 4  ;;  %p8015_p12 = pnand %p8014_p11, %p7510_p3  ;;  %s8883_s5 = int_to_ptr.hbm [resolvable:$true] %s883_s5 }
 0x10b   : > { %p8020_p4 = por %p8019_p1, %p8018_p0 }
 0x10c   : > { %p8016_p13 = pneg %p8015_p12 }
 0x10e   : > { %p8021_p5 = pnand %p8020_p4, %p8016_p13 }
 0x110   : > { %8024 = shalt.err (!%p8021_p5)
}
 0x111   : > { %s9528_s13 = sld [smem:[#allocation61_spill]]  ;;  %s8521_s12 = smov [#allocation6]  }
 0x112   : > { %7403 = dma.hbm_to_vmem [thread:$0]  (%p7510_p3), %s855_s18, 1280, %s857_s8, [#allocation3], %s9526_s22, %s9526_s22, %s9525_s11  }
 0x113   : > { %s885_s4 = sshll.u32 %s8521_s12, 4  ;;  %s8039_s7 = sshra.s32 %s8883_s5, 4  ;;  %s886_s4 = int_to_ptr.vmem [resolvable:$true] %s885_s4  ;;  %s8040_s7 = int_to_ptr.hbm [resolvable:$true] %s8039_s7 }
 0x114   : > { %s8041_s28 = scalar_lea.hbm %s8040_s7, 1  ;;  %s8045_s23 = scalar_lea.hbm %s9527_s1, 1 }
 0x115   : > { %p8042_p6 = scmp.ne.s32.totalorder %s8040_s7, %s8041_s28  ;;  %p8046_p9 = scmp.lt.s32.totalorder %s8040_s7, %s9527_s1 }
 0x116   : > { %p8047_p10 = scmp.lt.s32.totalorder %s8045_s23, %s8041_s28 }
 0x117   : > { %s908_s10 = sshll.u32 %s9528_s13, 4  ;;  %p8043_p7 = pnand %p8042_p6, %p7510_p3  ;;  %s8895_s10 = int_to_ptr.hbm [resolvable:$true] %s908_s10 }
 0x118   : > { %p8048_p11 = por %p8047_p10, %p8046_p9 }
 0x119   : > { %p8044_p8 = pneg %p8043_p7 }
 0x11b   : > { %p8049_p12 = pnand %p8048_p11, %p8044_p8 }
 0x11d   : > { %8052 = shalt.err (!%p8049_p12)
}
 0x11e   : > { %s9529_s18 = sld [smem:[#allocation62_spill]]  ;;  %s8522_s8 = smov [#allocation9]  }
 0x11f   : > { %7407 = dma.hbm_to_vmem [thread:$0]  (%p7510_p3), %s8883_s5, 16, %s886_s4, [#allocation5]  }
 0x120   : > { %s910_s12 = sshll.u32 %s8522_s8, 4  ;;  %s8067_s7 = sshra.s32 %s8895_s10, 4  ;;  %s911_s12 = int_to_ptr.vmem [resolvable:$true] %s910_s12  ;;  %s8068_s7 = int_to_ptr.hbm [resolvable:$true] %s8067_s7 }
 0x121   : > { %s8069_s28 = scalar_lea.hbm %s8068_s7, 72  ;;  %s8073_s23 = scalar_lea.hbm %s9528_s13, 72 }
 0x122   : > { %p8070_p13 = scmp.ne.s32.totalorder %s8068_s7, %s8069_s28  ;;  %p8074_p4 = scmp.lt.s32.totalorder %s8068_s7, %s9528_s13 }
 0x123   : > { %p8075_p5 = scmp.lt.s32.totalorder %s8073_s23, %s8069_s28 }
 0x124   : > { %s934_s6 = sshll.u32 %s9529_s18, 4  ;;  %p8071_p0 = pnand %p8070_p13, %p7510_p3  ;;  %s8906_s6 = int_to_ptr.hbm [resolvable:$true] %s934_s6 }
 0x125   : > { %p8076_p6 = por %p8075_p5, %p8074_p4 }
 0x126   : > { %p8072_p1 = pneg %p8071_p0 }
 0x128   : > { %p8077_p7 = pnand %p8076_p6, %p8072_p1 }
 0x12a   : > { %8080 = shalt.err (!%p8077_p7)
}
 0x12b   : > { %s9530_s5 = sld [smem:[#allocation64_spill]]  ;;  %s8523_s8 = smov [#allocation12]  }
 0x12c   : > { %7411 = dma.hbm_to_vmem [thread:$0]  (%p7510_p3), %s8895_s10, 1152, %s911_s12, [#allocation8], %s9524_s26, %s9524_s26, %s9523_s2  }
 0x12d   : > { %s936_s1 = sshll.u32 %s8523_s8, 4  ;;  %s8095_s7 = sshra.s32 %s8906_s6, 4  ;;  %s937_s1 = int_to_ptr.vmem [resolvable:$true] %s936_s1  ;;  %s8096_s7 = int_to_ptr.hbm [resolvable:$true] %s8095_s7 }
 0x12e   : > { %s8097_s28 = scalar_lea.hbm %s8096_s7, 12  ;;  %s8101_s23 = scalar_lea.hbm %s9529_s18, 12 }
 0x12f   : > { %p8098_p8 = scmp.ne.s32.totalorder %s8096_s7, %s8097_s28  ;;  %p8102_p11 = scmp.lt.s32.totalorder %s8096_s7, %s9529_s18 }
 0x130   : > { %p8103_p12 = scmp.lt.s32.totalorder %s8101_s23, %s8097_s28 }
 0x131   : > { %s963_s4 = sshll.u32 %s9530_s5, 4  ;;  %p8099_p9 = pnand %p8098_p8, %p7510_p3  ;;  %s8920_s4 = int_to_ptr.hbm [resolvable:$true] %s963_s4 }
 0x132   : > { %p8104_p13 = por %p8103_p12, %p8102_p11 }
 0x133   : > { %p8100_p10 = pneg %p8099_p9 }
 0x135   : > { %p8105_p0 = pnand %p8104_p13, %p8100_p10 }
 0x137   : > { %8108 = shalt.err (!%p8105_p0)
}
 0x138   : > { %s9531_s10 = sld [smem:[#allocation66_spill]]  ;;  %s8524_s12 = smov [#allocation15]  }
 0x139   : > { %7415 = dma.hbm_to_vmem [thread:$0]  (%p7510_p3), %s8906_s6, 192, %s937_s1, [#allocation11], %s9524_s26, %s9524_s26, %s9523_s2  }
 0x13a   : > { %s965_s8 = sshll.u32 %s8524_s12, 4  ;;  %s8123_s7 = sshra.s32 %s8920_s4, 4  ;;  %s966_s8 = int_to_ptr.vmem [resolvable:$true] %s965_s8  ;;  %s8124_s7 = int_to_ptr.hbm [resolvable:$true] %s8123_s7 }
 0x13b   : > { %s8125_s28 = scalar_lea.hbm %s8124_s7, 1  ;;  %s8129_s23 = scalar_lea.hbm %s9530_s5, 1 }
 0x13c   : > { %p8126_p1 = scmp.ne.s32.totalorder %s8124_s7, %s8125_s28  ;;  %p8130_p6 = scmp.lt.s32.totalorder %s8124_s7, %s9530_s5 }
 0x13d   : > { %p8131_p7 = scmp.lt.s32.totalorder %s8129_s23, %s8125_s28 }
 0x13e   : > { %s992_s9 = sshll.u32 %s9531_s10, 4  ;;  %p8127_p4 = pnand %p8126_p1, %p7510_p3  ;;  %s8934_s9 = int_to_ptr.hbm [resolvable:$true] %s992_s9 }
 0x13f   : > { %p8132_p8 = por %p8131_p7, %p8130_p6 }
 0x140   : > { %p8128_p5 = pneg %p8127_p4 }
 0x142   : > { %p8133_p9 = pnand %p8132_p8, %p8128_p5 }
 0x144   : > { %8136 = shalt.err (!%p8133_p9)
}
 0x145   : > { %s9532_s6 = sld [smem:[#allocation69_spill]]  ;;  %s8525_s12 = smov [#allocation18]  }
 0x146   : > { %7419 = dma.hbm_to_vmem [thread:$0]  (%p7510_p3), %s8920_s4, 16, %s966_s8, [#allocation14]  }
 0x147   : > { %s994_s13 = sshll.u32 %s8525_s12, 4  ;;  %s8151_s7 = sshra.s32 %s8934_s9, 4  ;;  %s995_s13 = int_to_ptr.vmem [resolvable:$true] %s994_s13  ;;  %s8152_s7 = int_to_ptr.hbm [resolvable:$true] %s8151_s7 }
 0x148   : > { %s8153_s28 = scalar_lea.hbm %s8152_s7, 1  ;;  %s8157_s23 = scalar_lea.hbm %s9531_s10, 1 }
 0x149   : > { %p8154_p10 = scmp.ne.s32.totalorder %s8152_s7, %s8153_s28  ;;  %p8158_p13 = scmp.lt.s32.totalorder %s8152_s7, %s9531_s10 }
 0x14a   : > { %p8159_p0 = scmp.lt.s32.totalorder %s8157_s23, %s8153_s28 }
 0x14b   : > { %s1021_s1 = sshll.u32 %s9532_s6, 4  ;;  %p8155_p11 = pnand %p8154_p10, %p7510_p3  ;;  %s8945_s1 = int_to_ptr.hbm [resolvable:$true] %s1021_s1 }
 0x14c   : > { %p8160_p1 = por %p8159_p0, %p8158_p13 }
 0x14d   : > { %p8156_p12 = pneg %p8155_p11 }
 0x14f   : > { %p8161_p4 = pnand %p8160_p1, %p8156_p12 }
 0x151   : > { %8164 = shalt.err (!%p8161_p4)
}
 0x152   : > { %s9533_s4 = sld [smem:[#allocation70_spill]]  ;;  %s8526_s8 = smov [#allocation21]  }
 0x153   : > { %7423 = dma.hbm_to_vmem [thread:$0]  (%p7510_p3), %s8934_s9, 16, %s995_s13, [#allocation17]  }
 0x154   : > { %s1023_s12 = sshll.u32 %s8526_s8, 4  ;;  %s8179_s7 = sshra.s32 %s8945_s1, 4  ;;  %s1024_s12 = int_to_ptr.vmem [resolvable:$true] %s1023_s12  ;;  %s8180_s7 = int_to_ptr.hbm [resolvable:$true] %s8179_s7 }
 0x155   : > { %s8181_s28 = scalar_lea.hbm %s8180_s7, 1  ;;  %s8185_s23 = scalar_lea.hbm %s9532_s6, 1 }
 0x156   : > { %p8182_p5 = scmp.ne.s32.totalorder %s8180_s7, %s8181_s28  ;;  %p8186_p8 = scmp.lt.s32.totalorder %s8180_s7, %s9532_s6 }
 0x157   : > { %p8187_p9 = scmp.lt.s32.totalorder %s8185_s23, %s8181_s28 }
 0x158   : > { %s1046_s5 = sshll.u32 %s9533_s4, 4  ;;  %p8183_p6 = pnand %p8182_p5, %p7510_p3  ;;  %s8956_s5 = int_to_ptr.hbm [resolvable:$true] %s1046_s5 }
 0x159   : > { %p8188_p10 = por %p8187_p9, %p8186_p8 }
 0x15a   : > { %p8184_p7 = pneg %p8183_p6 }
 0x15c   : > { %p8189_p11 = pnand %p8188_p10, %p8184_p7 }
 0x15e   : > { %8192 = shalt.err (!%p8189_p11)
}
 0x15f   : > { %s9534_s9 = sld [smem:[#allocation72_spill]]  ;;  %s8527_s8 = smov [#allocation24]  }
 0x160   : > { %7427 = dma.hbm_to_vmem [thread:$0]  (%p7510_p3), %s8945_s1, 16, %s1024_s12, [#allocation20]  }
 0x161   : > { %s1048_s10 = sshll.u32 %s8527_s8, 4  ;;  %s8207_s7 = sshra.s32 %s8956_s5, 4  ;;  %s1049_s10 = int_to_ptr.vmem [resolvable:$true] %s1048_s10  ;;  %s8208_s7 = int_to_ptr.hbm [resolvable:$true] %s8207_s7 }
 0x162   : > { %s8209_s28 = scalar_lea.hbm %s8208_s7, 32  ;;  %s8213_s23 = scalar_lea.hbm %s9533_s4, 32 }
 0x163   : > { %p8210_p12 = scmp.ne.s32.totalorder %s8208_s7, %s8209_s28  ;;  %p8214_p1 = scmp.lt.s32.totalorder %s8208_s7, %s9533_s4 }
 0x164   : > { %p8215_p4 = scmp.lt.s32.totalorder %s8213_s23, %s8209_s28 }
 0x165   : > { %s1072_s13 = sshll.u32 %s9534_s9, 4  ;;  %p8211_p13 = pnand %p8210_p12, %p7510_p3  ;;  %s8967_s13 = int_to_ptr.hbm [resolvable:$true] %s1072_s13 }
 0x166   : > { %p8216_p5 = por %p8215_p4, %p8214_p1 }
 0x167   : > { %p8212_p0 = pneg %p8211_p13 }
 0x169   : > { %p8217_p6 = pnand %p8216_p5, %p8212_p0 }
 0x16b   : > { %8220 = shalt.err (!%p8217_p6)
}
 0x16c   : > { %s9535_s1 = sld [smem:[#allocation74_spill]]  ;;  %s8528_s12 = smov [#allocation27]  }
 0x16d   : > { %7431 = dma.hbm_to_vmem [thread:$0]  (%p7510_p3), %s8956_s5, 512, %s1049_s10, [#allocation23], %s9524_s26, %s9524_s26, %s9523_s2  }
 0x16e   : > { %s1074_s8 = sshll.u32 %s8528_s12, 4  ;;  %s8235_s7 = sshra.s32 %s8967_s13, 4  ;;  %s1075_s8 = int_to_ptr.vmem [resolvable:$true] %s1074_s8  ;;  %s8236_s7 = int_to_ptr.hbm [resolvable:$true] %s8235_s7 }
 0x16f   : > { %s8237_s28 = scalar_lea.hbm %s8236_s7, 12  ;;  %s8241_s23 = scalar_lea.hbm %s9534_s9, 12 }
 0x170   : > { %p8238_p7 = scmp.ne.s32.totalorder %s8236_s7, %s8237_s28  ;;  %p8242_p10 = scmp.lt.s32.totalorder %s8236_s7, %s9534_s9 }
 0x171   : > { %p8243_p11 = scmp.lt.s32.totalorder %s8241_s23, %s8237_s28 }
 0x172   : > { %s1101_s6 = sshll.u32 %s9535_s1, 4  ;;  %p8239_p8 = pnand %p8238_p7, %p7510_p3  ;;  %s8981_s6 = int_to_ptr.hbm [resolvable:$true] %s1101_s6 }
 0x173   : > { %p8244_p12 = por %p8243_p11, %p8242_p10 }
 0x174   : > { %p8240_p9 = pneg %p8239_p8 }
 0x176   : > { %p8245_p13 = pnand %p8244_p12, %p8240_p9 }
 0x178   : > { %8248 = shalt.err (!%p8245_p13)
}
 0x179   : > { %s9536_s5 = sld [smem:[#allocation75_spill]]  ;;  %s8529_s12 = smov [#allocation30]  }
 0x17a   : > { %7435 = dma.hbm_to_vmem [thread:$0]  (%p7510_p3), %s8967_s13, 192, %s1075_s8, [#allocation26], %s9524_s26, %s9524_s26, %s9523_s2  }
 0x17b   : > { %s1103_s4 = sshll.u32 %s8529_s12, 4  ;;  %s8263_s7 = sshra.s32 %s8981_s6, 4  ;;  %s1104_s4 = int_to_ptr.vmem [resolvable:$true] %s1103_s4  ;;  %s8264_s7 = int_to_ptr.hbm [resolvable:$true] %s8263_s7 }
 0x17c   : > { %s8265_s28 = scalar_lea.hbm %s8264_s7, 1  ;;  %s8269_s23 = scalar_lea.hbm %s9535_s1, 1 }
 0x17d   : > { %p8266_p0 = scmp.ne.s32.totalorder %s8264_s7, %s8265_s28  ;;  %p8270_p5 = scmp.lt.s32.totalorder %s8264_s7, %s9535_s1 }
 0x17e   : > { %p8271_p6 = scmp.lt.s32.totalorder %s8269_s23, %s8265_s28 }
 0x17f   : > { %s1126_s10 = sshll.u32 %s9536_s5, 4  ;;  %p8267_p1 = pnand %p8266_p0, %p7510_p3  ;;  %s8995_s10 = int_to_ptr.hbm [resolvable:$true] %s1126_s10 }
 0x180   : > { %p8272_p7 = por %p8271_p6, %p8270_p5 }
 0x181   : > { %p8268_p4 = pneg %p8267_p1 }
 0x183   : > { %p8273_p8 = pnand %p8272_p7, %p8268_p4 }
 0x185   : > { %8276 = shalt.err (!%p8273_p8)
}
 0x186   : > { %s9537_s2 = sld [smem:[#allocation76_spill]]  ;;  %s8530_s26 = smov [#allocation33]  }
 0x187   : > { %7439 = dma.hbm_to_vmem [thread:$0]  (%p7510_p3), %s8981_s6, 16, %s1104_s4, [#allocation29]  }
 0x188   : > { %s1128_s13 = sshll.u32 %s8530_s26, 4  ;;  %s8291_s12 = sshra.s32 %s8995_s10, 4  ;;  %s1129_s13 = int_to_ptr.vmem [resolvable:$true] %s1128_s13  ;;  %s8292_s12 = int_to_ptr.hbm [resolvable:$true] %s8291_s12 }
 0x189   : > { %s8293_s7 = scalar_lea.hbm %s8292_s12, 384  ;;  %s8297_s28 = scalar_lea.hbm %s9536_s5, 384 }
 0x18a   : > { %p8294_p9 = scmp.ne.s32.totalorder %s8292_s12, %s8293_s7  ;;  %p8298_p12 = scmp.lt.s32.totalorder %s8292_s12, %s9536_s5 }
 0x18b   : > { %p8299_p13 = scmp.lt.s32.totalorder %s8297_s28, %s8293_s7 }
 0x18c   : > { %s1152_s8 = sshll.u32 %s9537_s2, 4  ;;  %p8295_p10 = pnand %p8294_p9, %p7510_p3  ;;  %s9006_s8 = int_to_ptr.hbm [resolvable:$true] %s1152_s8 }
 0x18d   : > { %p8300_p0 = por %p8299_p13, %p8298_p12 }
 0x18e   : > { %p8296_p11 = pneg %p8295_p10 }
 0x190   : > { %p8301_p1 = pnand %p8300_p0, %p8296_p11 }
 0x192   : > { %8304 = shalt.err (!%p8301_p1)
}
 0x193   : > { %s9538_s6 = sld [smem:[#allocation78_spill]]  ;;  %s8531_s23 = smov [#allocation36]  }
 0x194   : > { %7443 = dma.hbm_to_vmem [thread:$0]  (%p7510_p3), %s8995_s10, 6144, %s1129_s13, [#allocation32], %s9526_s22, %s9526_s22, %s9525_s11  }
 0x195   : > { %s1154_s26 = sshll.u32 %s8531_s23, 4  ;;  %s8319_s12 = sshra.s32 %s9006_s8, 4  ;;  %s1155_s26 = int_to_ptr.vmem [resolvable:$true] %s1154_s26  ;;  %s8320_s12 = int_to_ptr.hbm [resolvable:$true] %s8319_s12 }
 0x196   : > { %s8321_s7 = scalar_lea.hbm %s8320_s12, 72  ;;  %s8325_s28 = scalar_lea.hbm %s9537_s2, 72 }
 0x197   : > { %p8322_p4 = scmp.ne.s32.totalorder %s8320_s12, %s8321_s7  ;;  %p8326_p7 = scmp.lt.s32.totalorder %s8320_s12, %s9537_s2 }
 0x198   : > { %p8327_p8 = scmp.lt.s32.totalorder %s8325_s28, %s8321_s7 }
 0x199   : > { %s1183_s4 = sshll.u32 %s9538_s6, 4  ;;  %p8323_p5 = pnand %p8322_p4, %p7510_p3  ;;  %s9020_s4 = int_to_ptr.hbm [resolvable:$true] %s1183_s4 }
 0x19a   : > { %p8328_p9 = por %p8327_p8, %p8326_p7 }
 0x19b   : > { %p8324_p6 = pneg %p8323_p5 }
 0x19d   : > { %p8329_p10 = pnand %p8328_p9, %p8324_p6 }
 0x19f   : > { %8332 = shalt.err (!%p8329_p10)
}
 0x1a0   : > { %7447 = dma.hbm_to_vmem [thread:$0]  (%p7510_p3), %s9006_s8, 1152, %s1155_s26, [#allocation35], %s9526_s22, %s9526_s22, %s9525_s11  }
 0x1a1   : > { %s8532_s10 = smov [#allocation39]   ;;  %s1214_s23 = sshll.u32 %s8697_s19, 4  ;;  %s1215_s23 = int_to_ptr.hbm [resolvable:$true] %s1214_s23 }
 0x1a2   : > { %s1185_s13 = sshll.u32 %s8532_s10, 4  ;;  %s8347_s12 = sshra.s32 %s9020_s4, 4  ;;  %s1186_s13 = int_to_ptr.vmem [resolvable:$true] %s1185_s13  ;;  %s8348_s12 = int_to_ptr.hbm [resolvable:$true] %s8347_s12 }
 0x1a3   : > { %s8349_s7 = scalar_lea.hbm %s8348_s12, 72  ;;  %s8353_s28 = scalar_lea.hbm %s9538_s6, 72 }
 0x1a4   : > { %p8350_p11 = scmp.ne.s32.totalorder %s8348_s12, %s8349_s7  ;;  %p8354_p0 = scmp.lt.s32.totalorder %s8348_s12, %s9538_s6 }
 0x1a5   : > { %p8355_p1 = scmp.lt.s32.totalorder %s8353_s28, %s8349_s7 }
 0x1a6   : > { %p8351_p12 = pnand %p8350_p11, %p7510_p3 }
 0x1a7   : > { %p8356_p4 = por %p8355_p1, %p8354_p0 }
 0x1a8   : > { %p8352_p13 = pneg %p8351_p12 }
 0x1aa   : > { %p8357_p5 = pnand %p8356_p4, %p8352_p13 }
 0x1ac   : > { %8360 = shalt.err (!%p8357_p5)
}
 0x1ad   : > { %7451 = dma.hbm_to_vmem [thread:$0]  (%p7510_p3), %s9020_s4, 1152, %s1186_s13, [#allocation38], %s9526_s22, %s9526_s22, %s9525_s11  }
 0x1ae   : > { %s8533_s8 = smov [#allocation42]   ;;  %s8375_s10 = sshra.s32 %s1215_s23, 4  ;;  %s8376_s10 = int_to_ptr.hbm [resolvable:$true] %s8375_s10 }
 0x1af   : > { %s1216_s26 = sshll.u32 %s8533_s8, 4  ;;  %s8377_s12 = scalar_lea.hbm %s8376_s10, 160  ;;  %s1217_s26 = int_to_ptr.vmem [resolvable:$true] %s1216_s26 }
 0x1b0   : > { %p8378_p6 = scmp.ne.s32.totalorder %s8376_s10, %s8377_s12  ;;  %s8381_s7 = scalar_lea.hbm %s8697_s19, 160 }
 0x1b1   : > { %p8382_p9 = scmp.lt.s32.totalorder %s8376_s10, %s8697_s19  ;;  %p8383_p10 = scmp.lt.s32.totalorder %s8381_s7, %s8377_s12 }
 0x1b2   : > { %p8379_p7 = pnand %p8378_p6, %p7510_p3 }
 0x1b3   : > { %p8384_p11 = por %p8383_p10, %p8382_p9 }
 0x1b4   : > { %p8380_p8 = pneg %p8379_p7 }
 0x1b6   : > { %p8385_p12 = pnand %p8384_p11, %p8380_p8 }
 0x1b8   : > { %8388 = shalt.err (!%p8385_p12)
}
 0x1b9   : > { %7455 = dma.hbm_to_vmem [thread:$0]  (%p7510_p3), %s1215_s23, 2560, %s1217_s26, [#allocation41], %s9526_s22, %s9526_s22, %s9525_s11  }
 0x1ba PF: > { %1246 = sbr.rel (%p8724_p2) target bundleno = 4586 (0x11ea), region = 156  ;;  %p7537_p13 = scmp.eq.s32.totalorder (!%p8724_p2), %s8720_s0, 0 }
 0x1bf   : > { %8408 = dma.done.wait (%p7537_p13), [#allocation3], 1280  }
 0x1c0   : > { %8410 = vsyncadd (%p7537_p13), [#allocation3], 4294966016 }
 0x1c1   : > { %8412 = dma.done.wait (%p7537_p13), [#allocation5], 1296  }
 0x1c2   : > { %8414 = vsyncadd (%p7537_p13), [#allocation5], 4294966000 }
 0x1c3   : > { %8416 = dma.done.wait (%p7537_p13), [#allocation8], 1920  }
 0x1c4   : > { %8418 = vsyncadd (%p7537_p13), [#allocation8], 4294965376 }
 0x1c5   : > { %8420 = dma.done.wait (%p7537_p13), [#allocation11], 208  }
 0x1c6   : > { %8422 = vsyncadd (%p7537_p13), [#allocation11], 4294967088 }
 0x1c7   : > { %8424 = dma.done.wait (%p7537_p13), [#allocation14], 1936  }
 0x1c8   : > { %8426 = vsyncadd (%p7537_p13), [#allocation14], 4294965360 }
 0x1c9   : > { %8428 = dma.done.wait (%p7537_p13), [#allocation17], 1552  }
 0x1ca   : > { %8430 = vsyncadd (%p7537_p13), [#allocation17], 4294965744 }
 0x1cb   : > { %8432 = dma.done.wait (%p7537_p13), [#allocation20], 1040  }
 0x1cc   : > { %8434 = vsyncadd (%p7537_p13), [#allocation20], 4294966256 }
 0x1cd   : > { %8436 = dma.done.wait (%p7537_p13), [#allocation23], 576  }
 0x1ce   : > { %8438 = vsyncadd (%p7537_p13), [#allocation23], 4294966720 }
 0x1cf   : > { %8440 = dma.done.wait (%p7537_p13), [#allocation26], 224  }
 0x1d0   : > { %8442 = vsyncadd (%p7537_p13), [#allocation26], 4294967072 }
 0x1d1   : > { %8444 = dma.done.wait (%p7537_p13), [#allocation29], 1552  }
 0x1d2   : > { %8446 = vsyncadd (%p7537_p13), [#allocation29], 4294965744 }
 0x1d3   : > { %8448 = dma.done.wait (%p7537_p13), [#allocation32], 6912  }
 0x1d4   : > { %8450 = vsyncadd (%p7537_p13), [#allocation32], 4294960384 }
 0x1d5   : > { %8452 = dma.done.wait (%p7537_p13), [#allocation35], 1184  }
 0x1d6   : > { %8454 = vsyncadd (%p7537_p13), [#allocation35], 4294966112 }
 0x1d7   : > { %8456 = dma.done.wait (%p7537_p13), [#allocation38], 8832  }
 0x1d8   : > { %8458 = vsyncadd (%p7537_p13), [#allocation38], 4294958464 }
 0x1d9   : > { %8460 = dma.done.wait (%p7537_p13), [#allocation41], 6784  }
 0x1da   : > { %8462 = vsyncadd (%p7537_p13), [#allocation41], 4294960512  ;;  %s9539_s16 = sld [smem:[#allocation57_spill]]  ;;  %p1463_p2 = scmp.lt.s32.totalorder %s8720_s0, 1  ;;  %vm1502_vm0 = vcmask 1045504   ;;  %v7163_v9 = vld [vmem:[#allocation4 + $0x10] sm:$0xff] }
 0x1db   : > { %v5988_v0 = vld [vmem:[#allocation4 + $0x18] sm:$0xf]  ;;  %v7164_v1 = vld [vmem:[#allocation4 + $0x18] sm:$0x30]  ;;  %v5978_v3 = vld [vmem:[#allocation4 + $0x8] sm:$0xf] }
 0x1dc   : > { %s9545_s0 = smov (!%p1463_p2, %s8720_s0), 1  ;;  %v5989_v2 = vor.u32 %v7164_v1, %v5988_v0  ;;  %v7162_v4 = vld [vmem:[#allocation4 + $0x8] sm:$0x30]  ;;  %v6004_v6 = vld [vmem:[#allocation4 + $0x28] sm:$0xf]  ;;  %v7161_v14 = vld [vmem:[#allocation4] sm:$0xff] }
 0x1dd   : > { %s7159_s11 = sshll.u32 %s9545_s0, 5  ;;  %v5979_v5 = vor.u32 %v7162_v4, %v5978_v3  ;;  %v7166_v7 = vld [vmem:[#allocation4 + $0x28] sm:$0x30]  ;;  %v6017_v15 = vld [vmem:[#allocation4 + $0x38] sm:$0xf]  ;;  %v7165_v17 = vld [vmem:[#allocation4 + $0x20] sm:$0xff] }
 0x1de   : > { %v1544_v8 = vsel %vm1502_vm0, %v5989_v2, 0  ;;  %v6005_v11 = vor.u32 %v7166_v7, %v6004_v6  ;;  %v7168_v18 = vld [vmem:[#allocation4 + $0x38] sm:$0x30]  ;;  %vm1495_vm1 = vcmask 228352   ;;  %v7167_v22 = vld [vmem:[#allocation4 + $0x30] sm:$0xff]  ;;  %vm1574_vm2 = vcmask 1043456   ;;  %s1472_s8 = scalar_lea.vmem %s8712_s25, %s7159_s11 }
 0x1df   : > { %1552 = vmatpush.bf16.msra.mxu1 %v1544_v8  ;;  %v1504_v12 = vsel %vm1502_vm0, %v5979_v5, 0  ;;  %v6018_v19 = vor.u32 %v7168_v18, %v6017_v15  ;;  %v1566_v37 = vld [vmem:[#allocation2 + $0x10] sm:$0xff]  ;;  %v1567_v40 = vld [vmem:[#allocation2 + $0x18] sm:$0xf]  ;;  %v7170_v42 = vld [vmem:[#allocation4 + $0x48] sm:$0x30] }
 0x1e0   : > { %s9121_s22 = scalar_lea.vmem %s9539_s16, %s7159_s11  ;;  %1512 = vmatpush.bf16.msra.mxu0 %v1504_v12  ;;  %v1650_v16 = vsel %vm1502_vm0, %v6005_v11, 0  ;;  %v6030_v41 = vld [vmem:[#allocation4 + $0x48] sm:$0xf]  ;;  %v1525_v45 = vld [vmem:[#allocation2] sm:$0xff]  ;;  %v7169_v48 = vld [vmem:[#allocation4 + $0x40] sm:$0xff]  ;;  %vm1891_vm3 = vcmask 392192  }
 0x1e1   : > { %v1474_v10 = vld [vmem:[%s9121_s22] sm:$0xff]  ;;  %v1475_v13 = vld [vmem:[%s9121_s22 + $0x8] sm:$0xff]  ;;  %1658 = vmatpush.bf16.msra.mxu2 %v1650_v16  ;;  %v1725_v21 = vsel %vm1502_vm0, %v6018_v19, 0  ;;  %v1476_v23 = vld [vmem:[%s9121_s22 + $0x10] sm:$0xff]  ;;  %v6031_v44 = vor.u32 %v7170_v42, %v6030_v41  ;;  %vm1953_vm4 = vcmask 97280   ;;  %vm2143_vm5 = vcmask 654336  }
 0x1e2   : > { %v9128_v20 = vpack.c.bf16 %v1475_v13, %v1474_v10  ;;  %v1477_v24 = vld [vmem:[%s9121_s22 + $0x18] sm:$0xf]  ;;  %v1526_v49 = vld [vmem:[#allocation2 + $0x8] sm:$0xf]  ;;  %v1672_v51 = vld [vmem:[#allocation2 + $0x20] sm:$0xff]  ;;  %vm2223_vm6 = vcmask 1041408  }
 0x1e3   : > { %1553 = vmatpush.bf16.msra.mxu1 %v7163_v9  ;;  %v9139_v25 = vpack.c.bf16 %v1477_v24, %v1476_v23  ;;  %v1800_v46 = vsel %vm1502_vm0, %v6031_v44, 0  ;;  %v1747_v52 = vld [vmem:[#allocation2 + $0x30] sm:$0xff]  ;;  %v1673_v53 = vld [vmem:[#allocation2 + $0x28] sm:$0xf]  ;;  %v1748_v54 = vld [vmem:[#allocation2 + $0x38] sm:$0xf] }
 0x1e4   : > { %1513 = vmatpush.bf16.msra.mxu0 %v7161_v14  ;;  %v1822_v1 = vld [vmem:[#allocation2 + $0x40] sm:$0xff]  ;;  %v1823_v2 = vld [vmem:[#allocation2 + $0x48] sm:$0xf]  ;;  %v7179_v5 = vld [vmem:[#allocation9 + $0x40] sm:$0xff]  ;;  %vm2219_vm7 = vcmask 80896   ;;  %s9540_s4 = sld [smem:[#allocation65_spill]] }
 0x1e5   : > { %1659 = vmatpush.bf16.msra.mxu2 %v7165_v17  ;;  %v7173_v3 = vld [vmem:[#allocation9 + $0x10] sm:$0xff]  ;;  %v7176_v4 = vld [vmem:[#allocation9 + $0x28] sm:$0xff]  ;;  %v7175_v7 = vld [vmem:[#allocation9 + $0x20] sm:$0xff]  ;;  %vm2396_vm8 = vcmask 523264   ;;  %vm2462_vm9 = vcmask 31744   ;;  %s9541_s13 = sld [smem:[#allocation67_spill]] }
 0x1e6   : > { %5990 = vmatmul.msk.bf16.vlgmr.msra.gmra.mxu1 %vm1495_vm1, %v9128_v20  ;;  %v7172_v6 = vld [vmem:[#allocation9 + $0x8] sm:$0xff]  ;;  %v7178_v8 = vld [vmem:[#allocation9 + $0x38] sm:$0xff]  ;;  %v7171_v9 = vld [vmem:[#allocation9] sm:$0xff]  ;;  %vm2694_vm10 = vcmask 15360   ;;  %vm2770_vm11 = vcmask 261120   ;;  %vm2820_vm12 = vcmask 64512  }
 0x1e7   : > { %5980 = vmatmul.msk.bf16.vlgmr.msra.gmra.mxu0 %vm1495_vm1, %v9128_v20  ;;  %v7174_v10 = vld [vmem:[#allocation9 + $0x18] sm:$0xff]  ;;  %v7177_v11 = vld [vmem:[#allocation9 + $0x30] sm:$0xff]  ;;  %v7194_v44 = vld [vmem:[#allocation13 + $0x70] sm:$0xff]  ;;  %s9542_s23 = sld [smem:[#allocation77_spill]]  ;;  %vm4706_vm13 = vcmask 179200   ;;  %vm5013_vm14 = vcmask 785408  }
 0x1e8   : > { %1733 = vmatpush.bf16.msrb.mxu0 %v1725_v21  ;;  %6006 = vmatmul.msk.bf16.vlgmr.msra.gmra.mxu2 %vm1495_vm1, %v9128_v20  ;;  %v7639_v21 = vld [vmem:[#allocation6] ss:$0 sm:$0xff]  ;;  %v2059_v41 = vld [vmem:[#allocation7 + $0x28] sm:$0x3]  ;;  %s9543_s28 = sld [smem:[#allocation80_spill]]  ;;  %vm5114_vm15 = vcmask 195584  }
 0x1e9   : > { %1900 = vmatpush.bf16.msrb.mxu2 %v7173_v3  ;;  %v7184_v42 = vld [vmem:[#allocation13 + $0x20] sm:$0xff] }
 0x1ec   : > { %1734 = vmatpush.bf16.msrb.mxu0 %v7167_v22 }
 0x1ed   : > { %1901 = vmatpush.bf16.msrb.mxu2 %v7172_v6 }
 0x1f0   : > { %1941 = vmatpush.bf16.msra.mxu0 %v7176_v4 }
 0x1f1   : > { %1902 = vmatpush.bf16.msrb.mxu2 %v7171_v9 }
 0x1f4   : > { %1942 = vmatpush.bf16.msra.mxu0 %v7175_v7 }
 0x1f6   : > { %5991 = vmatmul.msk.bf16.gmra.mxu1 %vm1495_vm1, %v9139_v25 }
 0x1f7   : > { %5981 = vmatmul.msk.bf16.gmra.mxu0 %vm1495_vm1, %v9139_v25 }
 0x1f8   : > { %6007 = vmatmul.msk.bf16.gmra.mxu2 %vm1495_vm1, %v9139_v25  ;;  %1943 = vmatpush.bf16.msra.mxu0 %v7174_v10 }
 0x207   : > { %6019 = vmatmul.msk.bf16.vlgmr.msrb.gmra.mxu0 %vm1495_vm1, %v9128_v20 }
 0x217   : > { %6020 = vmatmul.msk.bf16.gmra.mxu0 %vm1495_vm1, %v9139_v25 }
 0x263   : > { %v1555_v26 = vpop.f32.mrf.mxu1 }
 0x264   : > { %v1515_v27 = vpop.f32.mrf.mxu0 }
 0x26b   : > { %v1557_v28 = vpop.f32.mrf.mxu1  ;;  %v1661_v29 = vpop.f32.mrf.mxu2 }
 0x26c   : > { %v1517_v30 = vpop.f32.mrf.mxu0 }
 0x273   : > { %v1560_v31 = vpop.f32.mrf.mxu1  ;;  %v1663_v32 = vpop.f32.mrf.mxu2 }
 0x274   : > { %v1520_v33 = vpop.f32.mrf.mxu0 }
 0x27b   : > { %v1562_v34 = vpop.f32.mrf.mxu1  ;;  %v1666_v36 = vpop.f32.mrf.mxu2 }
 0x27c   : > { %5992 = vmatpush.msk.msra.mxu3 %vm1574_vm2, %v1562_v34  ;;  %v1522_v35 = vpop.f32.mrf.mxu0  ;;  %v1951_v34 = vld [vmem:[#allocation7 + $0x10] sm:$0xff] }
 0x27e   : > { %1591 = vmatpush.msra.mxu3 %v1560_v31 }
 0x280   : > { %1592 = vmatpush.msra.mxu3 %v1557_v28 }
 0x282   : > { %1593 = vmatpush.msra.mxu3 %v1555_v26 }
 0x283   : > { %5993 = vmatmul.msk.f32.vlgmr.msra.gmra.mxu3 %vm1495_vm1, %v1566_v37  ;;  %v1668_v39 = vpop.f32.mrf.mxu2  ;;  %v1909_v37 = vld [vmem:[#allocation7] sm:$0xff] }
 0x284   : > { %5995 = vmatpush.msk.msrb.mxu3 %vm1574_vm2, %v1522_v35  ;;  %v1736_v38 = vpop.f32.mrf.mxu0 }
 0x286   : > { %1623 = vmatpush.msrb.mxu3 %v1520_v33 }
 0x288   : > { %1624 = vmatpush.msrb.mxu3 %v1517_v30 }
 0x28a   : > { %1625 = vmatpush.msrb.mxu3 %v1515_v27 }
 0x28b   : > { %5994 = vmatmul.msk.f32.gmra.mxu3 %vm1495_vm1, %v1567_v40  ;;  %v1910_v40 = vld [vmem:[#allocation7 + $0x8] sm:$0x3] }
 0x28c   : > { %6008 = vmatpush.msk.msra.mxu3 %vm1574_vm2, %v1668_v39  ;;  %v1738_v43 = vpop.f32.mrf.mxu0  ;;  %v1952_v39 = vld [vmem:[#allocation7 + $0x18] sm:$0x3] }
 0x28e   : > { %1696 = vmatpush.msra.mxu3 %v1666_v36 }
 0x290   : > { %1697 = vmatpush.msra.mxu3 %v1663_v32 }
 0x292   : > { %1698 = vmatpush.msra.mxu3 %v1661_v29 }
 0x293   : > { %5996 = vmatmul.msk.f32.vlgmr.msrb.gmra.mxu3 %vm1495_vm1, %v1525_v45  ;;  %v7183_v45 = vld [vmem:[#allocation13 + $0x18] sm:$0xff] }
 0x294   : > { %v1741_v47 = vpop.f32.mrf.mxu0  ;;  %1808 = vmatpush.bf16.msrb.mxu3 %v1800_v46  ;;  %v7188_v46 = vld [vmem:[#allocation13 + $0x40] sm:$0xff] }
 0x298   : > { %1809 = vmatpush.bf16.msrb.mxu3 %v7169_v48  ;;  %v7182_v48 = vld [vmem:[#allocation13 + $0x10] sm:$0xff] }
 0x29b   : > { %5997 = vmatmul.msk.f32.gmra.mxu3 %vm1495_vm1, %v1526_v49  ;;  %v7187_v49 = vld [vmem:[#allocation13 + $0x38] sm:$0xff] }
 0x29c   : > { %v1743_v50 = vpop.f32.mrf.mxu0 }
 0x29d   : > { %6021 = vmatpush.msk.msrb.mxu1 %vm1574_vm2, %v1743_v50  ;;  %v7192_v50 = vld [vmem:[#allocation13 + $0x60] sm:$0xff] }
 0x29f   : > { %1771 = vmatpush.msrb.mxu1 %v1741_v47  ;;  %v7193_v47 = vld [vmem:[#allocation13 + $0x68] sm:$0xff] }
 0x2a1   : > { %1772 = vmatpush.msrb.mxu1 %v1738_v43  ;;  %v7189_v43 = vld [vmem:[#allocation13 + $0x48] sm:$0xff] }
 0x2a3   : > { %1773 = vmatpush.msrb.mxu1 %v1736_v38  ;;  %6009 = vmatmul.msk.f32.vlgmr.msra.gmra.mxu3 %vm1495_vm1, %v1672_v51  ;;  %v2058_v38 = vld [vmem:[#allocation7 + $0x20] sm:$0xff]  ;;  %v7181_v51 = vld [vmem:[#allocation13 + $0x8] sm:$0xff] }
 0x2a4   : > { %6022 = vmatmul.msk.f32.vlgmr.msrb.gmra.mxu1 %vm1495_vm1, %v1747_v52  ;;  %2048 = vmatpush.bf16.msra.mxu3 %v7179_v5  ;;  %v7186_v52 = vld [vmem:[#allocation13 + $0x30] sm:$0xff] }
 0x2a8   : > { %2049 = vmatpush.bf16.msra.mxu3 %v7178_v8 }
 0x2ab   : > { %6010 = vmatmul.msk.f32.gmra.mxu3 %vm1495_vm1, %v1673_v53  ;;  %v7191_v53 = vld [vmem:[#allocation13 + $0x58] sm:$0xff] }
 0x2ac   : > { %6023 = vmatmul.msk.f32.gmra.mxu1 %vm1495_vm1, %v1748_v54  ;;  %2050 = vmatpush.bf16.msra.mxu3 %v7177_v11  ;;  %v7180_v54 = vld [vmem:[#allocation13] sm:$0xff] }
 0x2b3   : > { %6032 = vmatmul.msk.bf16.vlgmr.msrb.gmra.mxu3 %vm1495_vm1, %v9128_v20 }
 0x2c3   : > { %6033 = vmatmul.msk.bf16.gmra.mxu3 %vm1495_vm1, %v9139_v25 }
 0x306   : > { %v1595_v55 = vpop.f32.mrf.mxu3 }
 0x30e   : > { %v1598_v56 = vpop.f32.mrf.mxu3 }
 0x316   : > { %v1627_v57 = vpop.f32.mrf.mxu3 }
 0x317   : > { %v1628_v14 = vadd.f32 %v1627_v57, %v1595_v55  ;;  %v7185_v55 = vld [vmem:[#allocation13 + $0x28] sm:$0xff] }
 0x31e   : > { %v1630_v58 = vpop.f32.mrf.mxu3 }
 0x31f   : > { %v1631_v17 = vadd.f32 %v1630_v58, %v1598_v56  ;;  %v7190_v56 = vld [vmem:[#allocation13 + $0x50] sm:$0xff] }
 0x321   : > { %v1775_v12 = vpop.f32.mrf.mxu1 }
 0x326   : > { %v1700_v59 = vpop.f32.mrf.mxu3 }
 0x327   : > { %v1706_v15 = vadd.f32 %v1700_v59, %v1628_v14 }
 0x329   : > { %v1778_v13 = vpop.f32.mrf.mxu1  ;;  %v1781_v18 = vadd.f32 %v1775_v12, %v1706_v15 }
 0x32e   : > { %v1703_v60 = vpop.f32.mrf.mxu3 }
 0x32f   : > { %v1707_v19 = vadd.f32 %v1703_v60, %v1631_v17  ;;  %v2329_v17 = vld [vmem:[#allocation12 + $0x8] sm:$0xf] }
 0x331   : > { %v1782_v22 = vadd.f32 %v1778_v13, %v1707_v19  ;;  %v2218_v13 = vld [vmem:[#allocation12 + $0x4] sm:$0xf] }
 0x332   : > { %v7202_v19 = vld [vmem:[#allocation16 + $0x38] sm:$0xff] }
 0x336   : > { %v1811_v61 = vpop.f32.mrf.mxu3 }
 0x33e   : > { %v1813_v62 = vpop.f32.mrf.mxu3 }
 0x346   : > { %v1816_v63 = vpop.f32.mrf.mxu3 }
 0x34e   : > { %v1818_v0 = vpop.f32.mrf.mxu3 }
 0x34f   : > { %6034 = vmatpush.msk.msra.mxu1 %vm1574_vm2, %v1818_v0 }
 0x351   : > { %1846 = vmatpush.msra.mxu1 %v1816_v63  ;;  %v7640_v63 = vld [vmem:[#allocation10] ss:$0 sm:$0xff] }
 0x353   : > { %1847 = vmatpush.msra.mxu1 %v1813_v62 }
 0x355   : > { %1848 = vmatpush.msra.mxu1 %v1811_v61 }
 0x356   : > { %6035 = vmatmul.msk.f32.vlgmr.msra.gmra.mxu1 %vm1495_vm1, %v1822_v1 }
 0x35e   : > { %6036 = vmatmul.msk.f32.gmra.mxu1 %vm1495_vm1, %v1823_v2 }
 0x3d3   : > { %v1850_v16 = vpop.f32.mrf.mxu1 }
 0x3d4   : > { %v1856_v20 = vadd.f32 %v1850_v16, %v1781_v18  ;;  %v2161_v16 = vld [vmem:[#allocation12] sm:$0xf] }
 0x3d5   : > { %v7198_v18 = vld [vmem:[#allocation16 + $0x18] sm:$0xff] }
 0x3d6   : > { %v1862_v24 = vadd.f32 %v7639_v21, %v1856_v20  ;;  %v7206_v20 = vld [vmem:[#allocation16 + $0x58] sm:$0xff] }
 0x3d8   : > { %v1864_v27 = vmax.f32 %v1862_v24, 0.0  ;;  %v7196_v24 = vld [vmem:[#allocation16 + $0x8] sm:$0xff] }
 0x3db   : > { %v1853_v23 = vpop.f32.mrf.mxu1 }
 0x3dc   : > { %v1857_v25 = vadd.f32 %v1853_v23, %v1782_v22  ;;  %v7201_v22 = vld [vmem:[#allocation16 + $0x30] sm:$0xff] }
 0x3dd   : > { %v7205_v23 = vld [vmem:[#allocation16 + $0x50] sm:$0xff] }
 0x3de   : > { %v1863_v26 = vadd.f32 %v7639_v21, %v1857_v25  ;;  %v7197_v21 = vld [vmem:[#allocation16 + $0x10] sm:$0xff]  ;;  %v7200_v25 = vld [vmem:[#allocation16 + $0x28] sm:$0xff] }
 0x3e0   : > { %v1865_v28 = vmax.f32 %v1863_v26, 0.0  ;;  %v7204_v26 = vld [vmem:[#allocation16 + $0x48] sm:$0xff] }
 0x3e2   : > { %v1866_v29 = vpack.c.bf16 %v1865_v28, %v1864_v27  ;;  %v7195_v27 = vld [vmem:[#allocation16] sm:$0xff] }
 0x3e3   : > { %v7199_v28 = vld [vmem:[#allocation16 + $0x20] sm:$0xff] }
 0x3e4   : > { %6049 = vmatmul.msk.bf16.vlgmr.msrb.gmra.mxu2 %vm1891_vm3, %v1866_v29  ;;  %6062 = vmatmul.msk.bf16.vlgmr.msra.gmra.mxu0 %vm1891_vm3, %v1866_v29 }
 0x3e5   : > { %6081 = vmatmul.msk.bf16.vlgmr.msra.gmra.mxu3 %vm1891_vm3, %v1866_v29  ;;  %v7203_v29 = vld [vmem:[#allocation16 + $0x40] sm:$0xff] }
 0x461   : > { %v1945_v30 = vpop.f32.mrf.mxu0 }
 0x467   : > { %v1904_v31 = vpop.f32.mrf.mxu2 }
 0x468   : > { %v2052_v32 = vpop.f32.mrf.mxu3 }
 0x469   : > { %v1947_v33 = vpop.f32.mrf.mxu0 }
 0x46a   : > { %6063 = vmatpush.msk.msrb.mxu1 %vm1574_vm2, %v1947_v33  ;;  %v7641_v33 = vld [vmem:[#allocation15] ss:$0 sm:$0xff] }
 0x46c   : > { %1978 = vmatpush.msrb.mxu1 %v1945_v30 }
 0x46d   : > { %6064 = vmatmul.msk.f32.vlgmr.msrb.gmra.mxu1 %vm1953_vm4, %v1951_v34 }
 0x46e   : > { %2150 = vmatpush.bf16.msra.mxu1 %v7184_v42  ;;  %v6188_v42 = vld [vmem:[%s9540_s4 + $0x2] sm:$0x3] }
 0x46f   : > { %v1906_v35 = vpop.f32.mrf.mxu2 }
 0x470   : > { %v2054_v36 = vpop.f32.mrf.mxu3  ;;  %6066 = vmatpush.msk.msra.mxu2 %vm1574_vm2, %v1906_v35 }
 0x471   : > { %6082 = vmatpush.msk.msrb.mxu0 %vm1574_vm2, %v2054_v36 }
 0x472   : > { %2010 = vmatpush.msra.mxu2 %v1904_v31  ;;  %2151 = vmatpush.bf16.msra.mxu1 %v7183_v45 }
 0x473   : > { %2084 = vmatpush.msrb.mxu0 %v2052_v32  ;;  %6067 = vmatmul.msk.f32.vlgmr.msra.gmra.mxu2 %vm1953_vm4, %v1909_v37 }
 0x474   : > { %6083 = vmatmul.msk.f32.vlgmr.msrb.gmra.mxu0 %vm1953_vm4, %v2058_v38  ;;  %2206 = vmatpush.bf16.msrb.mxu2 %v7189_v43 }
 0x475   : > { %6065 = vmatmul.msk.f32.gmra.mxu1 %vm1953_vm4, %v1952_v39  ;;  %2317 = vmatpush.bf16.msra.mxu0 %v7194_v44 }
 0x476   : > { %2152 = vmatpush.bf16.msra.mxu1 %v7182_v48  ;;  %v7210_v48 = vld [vmem:[#allocation19 + $0x18] sm:$0xff] }
 0x478   : > { %2207 = vmatpush.bf16.msrb.mxu2 %v7188_v46  ;;  %v2413_v46 = vld [vmem:[%s9540_s4] sm:$0x3] }
 0x479   : > { %2318 = vmatpush.bf16.msra.mxu0 %v7193_v47 }
 0x47a   : > { %2153 = vmatpush.bf16.msra.mxu1 %v7181_v51  ;;  %v7213_v51 = vld [vmem:[#allocation19 + $0x30] sm:$0xff] }
 0x47b   : > { %6068 = vmatmul.msk.f32.gmra.mxu2 %vm1953_vm4, %v1910_v40  ;;  %v6210_v40 = vld [vmem:[%s9540_s4 + $0x4] sm:$0x3] }
 0x47c   : > { %6084 = vmatmul.msk.f32.gmra.mxu0 %vm1953_vm4, %v2059_v41  ;;  %2208 = vmatpush.bf16.msrb.mxu2 %v7187_v49  ;;  %v7214_v49 = vld [vmem:[#allocation19 + $0x38] sm:$0xff] }
 0x47d   : > { %2319 = vmatpush.bf16.msra.mxu0 %v7192_v50  ;;  %v7209_v50 = vld [vmem:[#allocation19 + $0x10] sm:$0xff] }
 0x47e   : > { %2154 = vmatpush.bf16.msra.mxu1 %v7180_v54  ;;  %v7207_v54 = vld [vmem:[#allocation19] sm:$0xff] }
 0x480   : > { %2209 = vmatpush.bf16.msrb.mxu2 %v7186_v52  ;;  %v7208_v52 = vld [vmem:[#allocation19 + $0x8] sm:$0xff] }
 0x481   : > { %2320 = vmatpush.bf16.msra.mxu0 %v7191_v53  ;;  %v7212_v53 = vld [vmem:[#allocation19 + $0x28] sm:$0xff] }
 0x482   : > { %2404 = vmatpush.bf16.msrb.mxu1 %v7198_v18  ;;  %v7222_v18 = vld [vmem:[#allocation28 + $0x18] sm:$0xff] }
 0x484   : > { %2210 = vmatpush.bf16.msrb.mxu2 %v7185_v55  ;;  %v7211_v55 = vld [vmem:[#allocation19 + $0x20] sm:$0xff] }
 0x485   : > { %2321 = vmatpush.bf16.msra.mxu0 %v7190_v56 }
 0x486   : > { %2405 = vmatpush.bf16.msrb.mxu1 %v7197_v21  ;;  %v7225_v21 = vld [vmem:[#allocation28 + $0x30] sm:$0xff] }
 0x488   : > { %2451 = vmatpush.bf16.msra.mxu2 %v7202_v19  ;;  %v7226_v19 = vld [vmem:[#allocation28 + $0x38] sm:$0xff] }
 0x489   : > { %2552 = vmatpush.bf16.msrb.mxu0 %v7206_v20  ;;  %v7221_v20 = vld [vmem:[#allocation28 + $0x10] sm:$0xff] }
 0x48a   : > { %2406 = vmatpush.bf16.msrb.mxu1 %v7196_v24  ;;  %v2819_v24 = vld [vmem:[#allocation22 + $0x2] sm:$0x3] }
 0x48c   : > { %2452 = vmatpush.bf16.msra.mxu2 %v7201_v22  ;;  %v2787_v22 = vld [vmem:[#allocation22] sm:$0x3] }
 0x48d   : > { %2553 = vmatpush.bf16.msrb.mxu0 %v7205_v23 }
 0x48e   : > { %2407 = vmatpush.bf16.msrb.mxu1 %v7195_v27 }
 0x490   : > { %2453 = vmatpush.bf16.msra.mxu2 %v7200_v25 }
 0x491   : > { %2554 = vmatpush.bf16.msrb.mxu0 %v7204_v26 }
 0x494   : > { %2454 = vmatpush.bf16.msra.mxu2 %v7199_v28  ;;  %v7220_v28 = vld [vmem:[#allocation28 + $0x8] sm:$0xff] }
 0x495   : > { %2555 = vmatpush.bf16.msrb.mxu0 %v7203_v29  ;;  %v7224_v29 = vld [vmem:[#allocation28 + $0x28] sm:$0xff] }
 0x4ea   : > { %v1980_v57 = vpop.f32.mrf.mxu1 }
 0x4f1   : > { %v2086_v58 = vpop.f32.mrf.mxu0 }
 0x4f2   : > { %v1983_v61 = vpop.f32.mrf.mxu1 }
 0x4f6   : > { %v2012_v59 = vpop.f32.mrf.mxu2 }
 0x4f7   : > { %v2013_v60 = vadd.f32 %v2012_v59, %v1980_v57 }
 0x4f9   : > { %v2092_v62 = vadd.f32 %v2086_v58, %v2013_v60  ;;  %v2089_v1 = vpop.f32.mrf.mxu0  ;;  %v7642_v60 = vld [vmem:[#allocation18] ss:$0 sm:$0xff] }
 0x4fb   : > { %v2098_v3 = vadd.f32 %v7640_v63, %v2092_v62 }
 0x4fd   : > { %v2100_v6 = vmax.f32 %v2098_v3, 0.0 }
 0x4fe   : > { %v2015_v0 = vpop.f32.mrf.mxu2 }
 0x4ff   : > { %v2016_v2 = vadd.f32 %v2015_v0, %v1983_v61 }
 0x501   : > { %v2093_v4 = vadd.f32 %v2089_v1, %v2016_v2  ;;  %v6247_v1 = vld [vmem:[%s9541_s13 + $0x8] sm:$0xff]  ;;  %v2645_v2 = vld [vmem:[%s9541_s13] sm:$0xff] }
 0x503   : > { %v2099_v5 = vadd.f32 %v7640_v63, %v2093_v4 }
 0x505   : > { %v2101_v7 = vmax.f32 %v2099_v5, 0.0 }
 0x507   : > { %v2102_v8 = vpack.c.bf16 %v2101_v7, %v2100_v6  ;;  %v7216_v7 = vld [vmem:[#allocation24 + $0x8] sm:$0xff] }
 0x509   : > { %6105 = vmatmul.msk.bf16.vlgmr.msra.gmra.mxu1 %vm2143_vm5, %v2102_v8  ;;  %6126 = vmatmul.msk.bf16.vlgmr.msrb.gmra.mxu2 %vm2143_vm5, %v2102_v8 }
 0x50a   : > { %6151 = vmatmul.msk.bf16.vlgmr.msra.gmra.mxu0 %vm2143_vm5, %v2102_v8  ;;  %2636 = vmatpush.bf16.msrb.mxu2 %v7210_v48  ;;  %v7218_v8 = vld [vmem:[#allocation24 + $0x18] sm:$0xff]  ;;  %v6387_v48 = vld [vmem:[#allocation33 + $0x70] sm:$0xf] }
 0x50e   : > { %2637 = vmatpush.bf16.msrb.mxu2 %v7209_v50  ;;  %v7245_v50 = vld [vmem:[#allocation33 + $0x74] sm:$0xf] }
 0x512   : > { %2638 = vmatpush.bf16.msrb.mxu2 %v7208_v52  ;;  %v6389_v52 = vld [vmem:[#allocation33 + $0x78] sm:$0xf0] }
 0x516   : > { %2639 = vmatpush.bf16.msrb.mxu2 %v7207_v54  ;;  %v7261_v54 = vld [vmem:[#allocation33 + $0xf4] sm:$0xf] }
 0x586   : > { %v2156_v10 = vpop.f32.mrf.mxu1 }
 0x587   : > { %v2323_v11 = vpop.f32.mrf.mxu0 }
 0x58c   : > { %v2212_v9 = vpop.f32.mrf.mxu2 }
 0x58e   : > { %v2158_v14 = vpop.f32.mrf.mxu1 }
 0x58f   : > { %v2325_v15 = vpop.f32.mrf.mxu0 }
 0x594   : > { %v2214_v12 = vpop.f32.mrf.mxu2 }
 0x595   : > { %6127 = vmatpush.msk.msrb.mxu3 %vm2223_vm6, %v2214_v12 }
 0x597   : > { %2242 = vmatpush.msrb.mxu3 %v2212_v9  ;;  %v7215_v9 = vld [vmem:[#allocation24] sm:$0xff] }
 0x598   : > { %6128 = vmatmul.msk.f32.vlgmr.msrb.gmra.mxu3 %vm2219_vm7, %v2218_v13 }
 0x599   : > { %6129 = vmatpush.msk.msra.mxu3 %vm2223_vm6, %v2158_v14 }
 0x59b   : > { %2268 = vmatpush.msra.mxu3 %v2156_v10  ;;  %v7217_v10 = vld [vmem:[#allocation24 + $0x10] sm:$0xff] }
 0x59d   : > { %6152 = vmatpush.msk.msrb.mxu3 %vm2223_vm6, %v2325_v15 }
 0x59f   : > { %2351 = vmatpush.msrb.mxu3 %v2323_v11  ;;  %v7643_v11 = vld [vmem:[#allocation21] ss:$0 sm:$0xff] }
 0x5a0   : > { %6130 = vmatmul.msk.f32.vlgmr.msra.gmra.mxu3 %vm2219_vm7, %v2161_v16 }
 0x5a8   : > { %6153 = vmatmul.msk.f32.vlgmr.msrb.gmra.mxu3 %vm2219_vm7, %v2329_v17 }
 0x61b   : > { %v2244_v30 = vpop.f32.mrf.mxu3 }
 0x623   : > { %v2270_v31 = vpop.f32.mrf.mxu3 }
 0x624   : > { %v2271_v32 = vadd.f32 %v2270_v31, %v2244_v30  ;;  %v7219_v30 = vld [vmem:[#allocation28] sm:$0xff] }
 0x625   : > { %v7223_v31 = vld [vmem:[#allocation28 + $0x20] sm:$0xff] }
 0x62b   : > { %v2353_v34 = vpop.f32.mrf.mxu3 }
 0x62c   : > { %v2356_v35 = vadd.f32 %v2353_v34, %v2271_v32  ;;  %v2867_v34 = vld [vmem:[#allocation25] sm:$0x3] }
 0x62e   : > { %v2361_v36 = vadd.f32 %v7641_v33, %v2356_v35 }
 0x630   : > { %v2362_v37 = vmax.f32 %v2361_v36, 0.0 }
 0x632   : > { %v2363_v38 = vpack.c.bf16 %v2362_v37, %v2362_v37 }
 0x634   : > { %6170 = vmatmul.msk.bf16.vlgmr.msrb.gmra.mxu1 %vm2396_vm8, %v2363_v38  ;;  %6187 = vmatmul.msk.bf16.vlgmr.msra.gmra.mxu2 %vm2396_vm8, %v2363_v38 }
 0x635   : > { %6209 = vmatmul.msk.bf16.vlgmr.msrb.gmra.mxu0 %vm2396_vm8, %v2363_v38  ;;  %2811 = vmatpush.bf16.msra.mxu2 %v7218_v8  ;;  %v2918_v38 = vld [vmem:[#allocation27] sm:$0xf]  ;;  %v6437_v8 = vld [vmem:[#allocation33 + $0xd8] sm:$0xf0] }
 0x639   : > { %2812 = vmatpush.bf16.msra.mxu2 %v7217_v10  ;;  %v6363_v10 = vld [vmem:[#allocation33 + $0x40] sm:$0xf] }
 0x6b1   : > { %v2409_v39 = vpop.f32.mrf.mxu1 }
 0x6b2   : > { %v2557_v41 = vpop.f32.mrf.mxu0 }
 0x6b3   : > { %6211 = vmatpush.msk.msra.mxu0 %vm1574_vm2, %v2557_v41 }
 0x6b4   : > { %6212 = vmatmul.msk.f32.vlgmr.msra.gmra.mxu0 %vm2462_vm9, %v6210_v40  ;;  %v7230_v40 = vld [vmem:[#allocation28 + $0x58] sm:$0xff] }
 0x6b7   : > { %v2456_v43 = vpop.f32.mrf.mxu2 }
 0x6b8   : > { %6189 = vmatpush.msk.msra.mxu3 %vm1574_vm2, %v2456_v43 }
 0x6b9   : > { %v2411_v44 = vpop.f32.mrf.mxu1  ;;  %6190 = vmatmul.msk.f32.vlgmr.msra.gmra.mxu3 %vm2462_vm9, %v6188_v42  ;;  %v2966_v42 = vld [vmem:[#allocation27 + $0x4] sm:$0xf] }
 0x6ba   : > { %6191 = vmatpush.msk.msrb.mxu3 %vm1574_vm2, %v2409_v39  ;;  %v2559_v45 = vpop.f32.mrf.mxu0  ;;  %v7229_v44 = vld [vmem:[#allocation28 + $0x50] sm:$0xff] }
 0x6bb   : > { %v7228_v45 = vld [vmem:[#allocation28 + $0x48] sm:$0xff] }
 0x6bc   : > { %2683 = vmatpush.bf16.msra.mxu3 %v7214_v49  ;;  %v7246_v49 = vld [vmem:[#allocation33 + $0x74] sm:$0xf0] }
 0x6bf   : > { %v2458_v47 = vpop.f32.mrf.mxu2 }
 0x6c0   : > { %2684 = vmatpush.bf16.msra.mxu3 %v7213_v51  ;;  %v7227_v47 = vld [vmem:[#allocation28 + $0x40] sm:$0xff]  ;;  %v6388_v51 = vor.u32 %v7246_v49, %v6387_v48  ;;  %v7258_v48 = vld [vmem:[#allocation33 + $0xd4] sm:$0xf0] }
 0x6c1   : > { %6192 = vmatmul.msk.f32.vlgmr.msrb.gmra.mxu3 %vm2462_vm9, %v2413_v46 }
 0x6c4   : > { %2685 = vmatpush.bf16.msra.mxu3 %v7212_v53  ;;  %v6392_v53 = vor.u32 %v7245_v50, %v6389_v52  ;;  %v7256_v52 = vld [vmem:[#allocation33 + $0xc4] sm:$0xf0] }
 0x6c8   : > { %2686 = vmatpush.bf16.msra.mxu3 %v7211_v55  ;;  %v6453_v55 = vld [vmem:[#allocation33 + $0xf8] sm:$0xf0] }
 0x731   : > { %v2586_v58 = vpop.f32.mrf.mxu0 }
 0x73c   : > { %v2486_v56 = vpop.f32.mrf.mxu3 }
 0x744   : > { %v2512_v57 = vpop.f32.mrf.mxu3 }
 0x745   : > { %v2513_v59 = vadd.f32 %v2512_v57, %v2486_v56  ;;  %v6379_v56 = vld [vmem:[#allocation33 + $0x60] sm:$0xf]  ;;  %v6456_v57 = vor.u32 %v7261_v54, %v6453_v55  ;;  %v6419_v54 = vld [vmem:[#allocation33 + $0xb0] sm:$0xf]  ;;  %v7254_v55 = vld [vmem:[#allocation33 + $0xb4] sm:$0xf0] }
 0x747   : > { %v2589_v61 = vadd.f32 %v2586_v58, %v2513_v59  ;;  %v7244_v58 = vld [vmem:[#allocation33 + $0x64] sm:$0xf0]  ;;  %v7243_v59 = vld [vmem:[#allocation33 + $0x64] sm:$0xf] }
 0x749   : > { %v2594_v62 = vadd.f32 %v7642_v60, %v2589_v61  ;;  %v6381_v60 = vld [vmem:[#allocation33 + $0x68] sm:$0xf0]  ;;  %v6380_v61 = vor.u32 %v7244_v58, %v6379_v56  ;;  %v6420_v56 = vor.u32 %v7254_v55, %v6419_v54  ;;  %v7252_v58 = vld [vmem:[#allocation33 + $0xa4] sm:$0xf0]  ;;  %v3224_v54 = vld [vmem:[#allocation31 + $0x8] sm:$0x3] }
 0x74a   : > { %v6511_v55 = vld [vmem:[#allocation33 + $0x150] sm:$0xf] }
 0x74b   : > { %v2595_v63 = vmax.f32 %v2594_v62, 0.0  ;;  %v6384_v62 = vor.u32 %v7243_v59, %v6381_v60  ;;  %v6339_v60 = vld [vmem:[#allocation33 + $0x10] sm:$0xf] }
 0x74d   : > { %v2596_v0 = vpack.c.bf16 %v2595_v63, %v2595_v63  ;;  %v7259_v63 = vld [vmem:[#allocation33 + $0xe4] sm:$0xf] }
 0x74f   : > { %6229 = vmatmul.msk.bf16.vlgmr.msrb.gmra.mxu2 %vm2396_vm8, %v2596_v0  ;;  %6246 = vmatmul.msk.bf16.vlgmr.msra.gmra.mxu3 %vm2396_vm8, %v2596_v0  ;;  %v6445_v0 = vld [vmem:[#allocation33 + $0xe8] sm:$0xf0] }
 0x750   : > { %2956 = vmatpush.bf16.msrb.mxu2 %v7226_v19  ;;  %v6355_v19 = vld [vmem:[#allocation33 + $0x30] sm:$0xf] }
 0x754   : > { %2957 = vmatpush.bf16.msrb.mxu2 %v7225_v21 }
 0x758   : > { %2958 = vmatpush.bf16.msrb.mxu2 %v7224_v29  ;;  %v6347_v29 = vld [vmem:[#allocation33 + $0x20] sm:$0xf] }
 0x75c   : > { %2959 = vmatpush.bf16.msrb.mxu2 %v7223_v31 }
 0x7d2   : > { %v2641_v3 = vpop.f32.mrf.mxu2  ;;  %v2688_v4 = vpop.f32.mrf.mxu3 }
 0x7d3   : > { %6248 = vmatpush.msk.msra.mxu1 %vm2223_vm6, %v2688_v4  ;;  %6250 = vmatpush.msk.msrb.mxu0 %vm2223_vm6, %v2641_v3  ;;  %v6448_v3 = vor.u32 %v7259_v63, %v6445_v0  ;;  %v7241_v4 = vld [vmem:[#allocation33 + $0x54] sm:$0xf]  ;;  %v6341_v0 = vld [vmem:[#allocation33 + $0x18] sm:$0xf0] }
 0x7d4   : > { %6249 = vmatmul.msk.f32.vlgmr.msra.gmra.mxu1 %vm2694_vm10, %v6247_v1  ;;  %6251 = vmatmul.msk.f32.vlgmr.msrb.gmra.mxu0 %vm2694_vm10, %v2645_v2  ;;  %v6371_v1 = vld [vmem:[#allocation33 + $0x50] sm:$0xf]  ;;  %v7242_v2 = vld [vmem:[#allocation33 + $0x54] sm:$0xf0] }
 0x7d5   : > { %2780 = vmatpush.bf16.msrb.mxu1 %v7216_v7  ;;  %v7257_v7 = vld [vmem:[#allocation33 + $0xd4] sm:$0xf] }
 0x7d9   : > { %2781 = vmatpush.bf16.msrb.mxu1 %v7215_v9 }
 0x7da   : > { %v2643_v5 = vpop.f32.mrf.mxu2  ;;  %v2690_v6 = vpop.f32.mrf.mxu3 }
 0x7db   : > { %v6373_v5 = vld [vmem:[#allocation33 + $0x58] sm:$0xf0]  ;;  %v6372_v6 = vor.u32 %v7242_v2, %v6371_v1  ;;  %v6403_v1 = vld [vmem:[#allocation33 + $0x90] sm:$0xf] }
 0x7dc   : > { %v6376_v9 = vor.u32 %v7241_v4, %v6373_v5  ;;  %v7249_v4 = vld [vmem:[#allocation33 + $0x94] sm:$0xf]  ;;  %v6405_v5 = vld [vmem:[#allocation33 + $0x98] sm:$0xf0] }
 0x7dd   : > { %2909 = vmatpush.bf16.msra.mxu1 %v7222_v18 }
 0x7e1   : > { %2910 = vmatpush.bf16.msra.mxu1 %v7221_v20  ;;  %v7238_v20 = vld [vmem:[#allocation33 + $0x34] sm:$0xf0] }
 0x7e5   : > { %2911 = vmatpush.bf16.msra.mxu1 %v7220_v28 }
 0x7e9   : > { %2912 = vmatpush.bf16.msra.mxu1 %v7219_v30  ;;  %v7236_v30 = vld [vmem:[#allocation33 + $0x24] sm:$0xf0] }
 0x851   : > { %v2718_v12 = vpop.f32.mrf.mxu1  ;;  %v2744_v13 = vpop.f32.mrf.mxu0 }
 0x852   : > { %v2745_v14 = vadd.f32 %v2744_v13, %v2718_v12  ;;  %v6440_v12 = vor.u32 %v7257_v7, %v6437_v8  ;;  %v7239_v13 = vld [vmem:[#allocation33 + $0x44] sm:$0xf]  ;;  %v6408_v7 = vor.u32 %v7249_v4, %v6405_v5  ;;  %v6331_v8 = vld [vmem:[#allocation33] sm:$0xf]  ;;  %v6495_v5 = vld [vmem:[#allocation33 + $0x130] sm:$0xf] }
 0x854   : > { %v2751_v15 = vadd.f32 %v7643_v11, %v2745_v14  ;;  %v7240_v11 = vld [vmem:[#allocation33 + $0x44] sm:$0xf0]  ;;  %v6365_v14 = vld [vmem:[#allocation33 + $0x48] sm:$0xf0] }
 0x855   : > { %v6368_v18 = vor.u32 %v7239_v13, %v6365_v14  ;;  %v6395_v13 = vld [vmem:[#allocation33 + $0x80] sm:$0xf]  ;;  %v7248_v14 = vld [vmem:[#allocation33 + $0x84] sm:$0xf0] }
 0x856   : > { %v2752_v16 = vmax.f32 %v2751_v15, 0.0  ;;  %v7255_v15 = vld [vmem:[#allocation33 + $0xc4] sm:$0xf] }
 0x858   : > { %v2753_v17 = vpack.c.bf16 %v2752_v16, %v2752_v16  ;;  %v6429_v16 = vld [vmem:[#allocation33 + $0xc8] sm:$0xf0] }
 0x859   : > { %v6432_v21 = vor.u32 %v7255_v15, %v6429_v16  ;;  %v6396_v16 = vor.u32 %v7248_v14, %v6395_v13  ;;  %v7263_v14 = vld [vmem:[#allocation33 + $0x104] sm:$0xf] }
 0x85a   : > { %6260 = vmatmul.msk.bf16.vlgmr.msrb.gmra.mxu1 %vm2770_vm11, %v2753_v17  ;;  %6269 = vmatmul.msk.bf16.vlgmr.msra.gmra.mxu2 %vm2770_vm11, %v2753_v17  ;;  %v6364_v17 = vor.u32 %v7240_v11, %v6363_v10  ;;  %v7231_v10 = vld [vmem:[#allocation33 + $0x4] sm:$0xf] }
 0x85b   : > { %3197 = vmatpush.bf16.msrb.mxu1 %v6388_v51  ;;  %3210 = vmatpush.bf16.msra.mxu2 %v6392_v53  ;;  %v6427_v51 = vld [vmem:[#allocation33 + $0xc0] sm:$0xf] }
 0x85c   : > { %v6428_v53 = vor.u32 %v7256_v52, %v6427_v51 }
 0x85f   : > { %3198 = vmatpush.bf16.msrb.mxu1 %v6380_v61  ;;  %3211 = vmatpush.bf16.msra.mxu2 %v6384_v62  ;;  %v7234_v61 = vld [vmem:[#allocation33 + $0x14] sm:$0xf0]  ;;  %v7233_v62 = vld [vmem:[#allocation33 + $0x14] sm:$0xf] }
 0x860   : > { %v6340_v63 = vor.u32 %v7234_v61, %v6339_v60  ;;  %v6344_v2 = vor.u32 %v7233_v62, %v6341_v0  ;;  %v6503_v62 = vld [vmem:[#allocation33 + $0x140] sm:$0xf] }
 0x863   : > { %3199 = vmatpush.bf16.msrb.mxu1 %v6372_v6  ;;  %3212 = vmatpush.bf16.msra.mxu2 %v6376_v9  ;;  %v7232_v9 = vld [vmem:[#allocation33 + $0x4] sm:$0xf0] }
 0x864   : > { %v6332_v11 = vor.u32 %v7232_v9, %v6331_v8  ;;  %v7265_v8 = vld [vmem:[#allocation33 + $0x114] sm:$0xf]  ;;  %v6481_v9 = vld [vmem:[#allocation33 + $0x118] sm:$0xf0] }
 0x865   : > { %v6484_v13 = vor.u32 %v7265_v8, %v6481_v9  ;;  %v7289_v9 = vld [vmem:[#allocation37 + $0x54] sm:$0xf] }
 0x867   : > { %3200 = vmatpush.bf16.msrb.mxu1 %v6364_v17  ;;  %3213 = vmatpush.bf16.msra.mxu2 %v6368_v18  ;;  %v7247_v17 = vld [vmem:[#allocation33 + $0x84] sm:$0xf]  ;;  %v6397_v18 = vld [vmem:[#allocation33 + $0x88] sm:$0xf0] }
 0x8d7   : > { %v2783_v23 = vpop.f32.mrf.mxu1 }
 0x8d8   : > { %2862 = vmatpush.msrb.mxu3 %v2783_v23  ;;  %v6357_v23 = vld [vmem:[#allocation33 + $0x38] sm:$0xf0] }
 0x8d9   : > { %6271 = vmatmul.msk.f32.vlgmr.msrb.gmra.mxu3 %vm2820_vm12, %v2787_v22  ;;  %v7237_v22 = vld [vmem:[#allocation33 + $0x34] sm:$0xf] }
 0x8da   : > { %v6360_v28 = vor.u32 %v7237_v22, %v6357_v23  ;;  %v7644_v22 = vld [vmem:[#allocation30] ss:$0 sm:$0xff] }
 0x8dc   : > { %3214 = vmatpush.bf16.msra.mxu2 %v6360_v28 }
 0x8dd   : > { %v2814_v25 = vpop.f32.mrf.mxu2 }
 0x8de   : > { %2839 = vmatpush.msra.mxu0 %v2814_v25  ;;  %v7253_v25 = vld [vmem:[#allocation33 + $0xb4] sm:$0xf] }
 0x8df   : > { %v2785_v26 = vpop.f32.mrf.mxu1  ;;  %6270 = vmatmul.msk.f32.vlgmr.msra.gmra.mxu0 %vm2820_vm12, %v2819_v24 }
 0x8e0   : > { %v6421_v26 = vld [vmem:[#allocation33 + $0xb8] sm:$0xf0] }
 0x8e1   : > { %v6424_v31 = vor.u32 %v7253_v25, %v6421_v26 }
 0x8e5   : > { %v2816_v27 = vpop.f32.mrf.mxu2 }
 0x8e6   : > { %v6356_v27 = vor.u32 %v7238_v20, %v6355_v19  ;;  %v6400_v19 = vor.u32 %v7247_v17, %v6397_v18  ;;  %v6479_v17 = vld [vmem:[#allocation33 + $0x110] sm:$0xf]  ;;  %v7266_v18 = vld [vmem:[#allocation33 + $0x114] sm:$0xf0] }
 0x8e8   : > { %3201 = vmatpush.bf16.msrb.mxu1 %v6356_v27 }
 0x95c   : > { %v2841_v32 = vpop.f32.mrf.mxu0  ;;  %v2864_v33 = vpop.f32.mrf.mxu3 }
 0x95d   : > { %v2865_v35 = vadd.f32 %v2864_v33, %v2841_v32  ;;  %v7235_v32 = vld [vmem:[#allocation33 + $0x24] sm:$0xf]  ;;  %v6349_v33 = vld [vmem:[#allocation33 + $0x28] sm:$0xf0] }
 0x95f   : > { %v2868_v36 = vadd.f32 %v2867_v34, %v2865_v35  ;;  %v7251_v34 = vld [vmem:[#allocation33 + $0xa4] sm:$0xf]  ;;  %v6413_v35 = vld [vmem:[#allocation33 + $0xa8] sm:$0xf0] }
 0x961   : > { %v2869_v37 = vpack.c.bf16 %v2868_v36, %v2868_v36  ;;  %v6348_v36 = vor.u32 %v7236_v30, %v6347_v29  ;;  %v7277_v29 = vld [vmem:[#allocation33 + $0x174] sm:$0xf]  ;;  %v6529_v30 = vld [vmem:[#allocation33 + $0x178] sm:$0xf0] }
 0x963   : > { %6288 = vmatmul.msk.bf16.vlgmr.msra.gmra.mxu1 %vm2396_vm8, %v2869_v37  ;;  %6305 = vmatmul.msk.bf16.vlgmr.msrb.gmra.mxu2 %vm2396_vm8, %v2869_v37 }
 0x964   : > { %3202 = vmatpush.bf16.msrb.mxu1 %v6348_v36  ;;  %v3223_v36 = vld [vmem:[#allocation31] sm:$0xff] }
 0x968   : > { %3203 = vmatpush.bf16.msrb.mxu1 %v6340_v63  ;;  %v7272_v63 = vld [vmem:[#allocation33 + $0x144] sm:$0xf0] }
 0x969   : > { %v6504_v4 = vor.u32 %v7272_v63, %v6503_v62  ;;  %v7282_v62 = vld [vmem:[#allocation37 + $0x14] sm:$0xf0] }
 0x96c   : > { %3204 = vmatpush.bf16.msrb.mxu1 %v6332_v11  ;;  %v6487_v11 = vld [vmem:[#allocation33 + $0x120] sm:$0xf] }
 0x9e0   : > { %v2914_v39 = vpop.f32.mrf.mxu1 }
 0x9e1   : > { %6308 = vmatpush.msk.msra.mxu3 %vm2223_vm6, %v2914_v39  ;;  %v6352_v39 = vor.u32 %v7235_v32, %v6349_v33  ;;  %v6521_v33 = vld [vmem:[#allocation33 + $0x168] sm:$0xf0] }
 0x9e2   : > { %6309 = vmatmul.msk.f32.vlgmr.msra.gmra.mxu3 %vm2694_vm10, %v2918_v38  ;;  %v7262_v38 = vld [vmem:[#allocation33 + $0xf4] sm:$0xf0] }
 0x9e3   : > { %3215 = vmatpush.bf16.msra.mxu2 %v6352_v39 }
 0x9e6   : > { %v2961_v41 = vpop.f32.mrf.mxu2 }
 0x9e7   : > { %6306 = vmatpush.msk.msrb.mxu0 %vm2223_vm6, %v2961_v41  ;;  %v3066_v41 = vld [vmem:[#allocation27 + $0x8] sm:$0xf]  ;;  %3216 = vmatpush.bf16.msra.mxu2 %v6344_v2  ;;  %v7267_v2 = vld [vmem:[#allocation33 + $0x124] sm:$0xf] }
 0x9e8   : > { %v2916_v43 = vpop.f32.mrf.mxu1  ;;  %6307 = vmatmul.msk.f32.vlgmr.msrb.gmra.mxu0 %vm2694_vm10, %v2966_v42 }
 0x9e9   : > { %3056 = vmatpush.bf16.msra.mxu0 %v7230_v40  ;;  %v6416_v40 = vor.u32 %v7251_v34, %v6413_v35  ;;  %v3349_v35 = vld [vmem:[#allocation31 + $0x10] sm:$0xff] }
 0x9ed   : > { %3057 = vmatpush.bf16.msra.mxu0 %v7229_v44  ;;  %v6443_v44 = vld [vmem:[#allocation33 + $0xe0] sm:$0xf] }
 0x9ee   : > { %v2963_v46 = vpop.f32.mrf.mxu2 }
 0x9f1   : > { %3058 = vmatpush.bf16.msra.mxu0 %v7228_v45  ;;  %v7260_v45 = vld [vmem:[#allocation33 + $0xe4] sm:$0xf0] }
 0x9f2   : > { %v6444_v46 = vor.u32 %v7260_v45, %v6443_v44  ;;  %v6519_v44 = vld [vmem:[#allocation33 + $0x160] sm:$0xf]  ;;  %v7276_v45 = vld [vmem:[#allocation33 + $0x164] sm:$0xf0] }
 0x9f3   : > { %v6520_v52 = vor.u32 %v7276_v45, %v6519_v44 }
 0x9f5   : > { %3059 = vmatpush.bf16.msra.mxu0 %v7227_v47  ;;  %v6435_v47 = vld [vmem:[#allocation33 + $0xd0] sm:$0xf] }
 0x9f6   : > { %v6436_v49 = vor.u32 %v7258_v48, %v6435_v47 }
 0x9f8   : > { %6326 = vmatmul.msk.bf16.vlgmr.msra.gmra.mxu0 %vm2396_vm8, %v2869_v37  ;;  %v6451_v37 = vld [vmem:[#allocation33 + $0xf0] sm:$0xf] }
 0x9f9   : > { %3335 = vmatpush.bf16.msrb.mxu0 %v6456_v57  ;;  %v6452_v42 = vor.u32 %v7262_v38, %v6451_v37  ;;  %v6411_v57 = vld [vmem:[#allocation33 + $0xa0] sm:$0xf]  ;;  %v6527_v37 = vld [vmem:[#allocation33 + $0x170] sm:$0xf]  ;;  %v7278_v38 = vld [vmem:[#allocation33 + $0x174] sm:$0xf0] }
 0x9fa   : > { %v6412_v59 = vor.u32 %v7252_v58, %v6411_v57  ;;  %v7269_v58 = vld [vmem:[#allocation33 + $0x134] sm:$0xf] }
 0x9fd   : > { %3336 = vmatpush.bf16.msrb.mxu0 %v6448_v3  ;;  %v7250_v3 = vld [vmem:[#allocation33 + $0x94] sm:$0xf0] }
 0x9fe   : > { %v6404_v6 = vor.u32 %v7250_v3, %v6403_v1  ;;  %v6489_v3 = vld [vmem:[#allocation33 + $0x128] sm:$0xf0] }
 0xa01   : > { %3337 = vmatpush.bf16.msrb.mxu0 %v6440_v12  ;;  %v6333_v12 = vld [vmem:[#allocation33 + $0x8] sm:$0xf0] }
 0xa02   : > { %v6336_v15 = vor.u32 %v7231_v10, %v6333_v12  ;;  %v7268_v12 = vld [vmem:[#allocation33 + $0x124] sm:$0xf0] }
 0xa04   : > { %3217 = vmatpush.bf16.msra.mxu2 %v6336_v15  ;;  %v6473_v15 = vld [vmem:[#allocation33 + $0x108] sm:$0xf0] }
 0xa05   : > { %3338 = vmatpush.bf16.msrb.mxu0 %v6432_v21 }
 0xa09   : > { %3339 = vmatpush.bf16.msrb.mxu0 %v6424_v31  ;;  %v6532_v31 = vor.u32 %v7277_v29, %v6529_v30  ;;  %v7293_v30 = vld [vmem:[#allocation37 + $0x74] sm:$0xf] }
 0xa0d   : > { %3340 = vmatpush.bf16.msrb.mxu0 %v6416_v40  ;;  %v7273_v40 = vld [vmem:[#allocation33 + $0x154] sm:$0xf] }
 0xa11   : > { %3341 = vmatpush.bf16.msrb.mxu0 %v6408_v7  ;;  %v6492_v7 = vor.u32 %v7267_v2, %v6489_v3  ;;  %v7313_v2 = vld [vmem:[#allocation37 + $0x114] sm:$0xf]  ;;  %v6681_v3 = vld [vmem:[#allocation37 + $0x118] sm:$0xf0] }
 0xa15   : > { %3342 = vmatpush.bf16.msrb.mxu0 %v6400_v19  ;;  %v6476_v19 = vor.u32 %v7263_v14, %v6473_v15  ;;  %v6679_v15 = vld [vmem:[#allocation37 + $0x110] sm:$0xf] }
 0xa65   : > { %v9218_v24 = vpop.f32.mrf.mxu0  ;;  %v3016_v20 = vpop.f32.mrf.mxu3 }
 0xa66   : > { %v3017_v21 = vadd.f32 %v3016_v20, %v9218_v24  ;;  %v7275_v24 = vld [vmem:[#allocation33 + $0x164] sm:$0xf]  ;;  %v6480_v20 = vor.u32 %v7266_v18, %v6479_v17  ;;  %v7309_v18 = vld [vmem:[#allocation37 + $0xf4] sm:$0xf] }
 0xa67   : > { %v6524_v39 = vor.u32 %v7275_v24, %v6521_v33  ;;  %v7294_v24 = vld [vmem:[#allocation37 + $0x74] sm:$0xf0] }
 0xa75   : > { %v3061_v43 = vpop.f32.mrf.mxu0 }
 0xa76   : > { %6327 = vmatpush.msk.msrb.mxu3 %vm2223_vm6, %v3061_v43 }
 0xa77   : > { %6328 = vmatmul.msk.f32.vlgmr.msrb.gmra.mxu3 %vm2694_vm10, %v3066_v41  ;;  %v6513_v41 = vld [vmem:[#allocation33 + $0x158] sm:$0xf0] }
 0xa78   : > { %3322 = vmatpush.bf16.msra.mxu3 %v6452_v42  ;;  %v6528_v42 = vor.u32 %v7278_v38, %v6527_v37  ;;  %v6516_v47 = vor.u32 %v7273_v40, %v6513_v41  ;;  %v7292_v37 = vld [vmem:[#allocation37 + $0x64] sm:$0xf0]  ;;  %v6591_v40 = vld [vmem:[#allocation37 + $0x68] sm:$0xf0]  ;;  %v6613_v41 = vld [vmem:[#allocation37 + $0x90] sm:$0xf] }
 0xa7c   : > { %3323 = vmatpush.bf16.msra.mxu3 %v6444_v46 }
 0xa7d   : > { %v3063_v50 = vpop.f32.mrf.mxu0 }
 0xa7e   : > { %v6505_v50 = vld [vmem:[#allocation33 + $0x148] sm:$0xf0] }
 0xa80   : > { %3324 = vmatpush.bf16.msra.mxu3 %v6436_v49  ;;  %v7271_v49 = vld [vmem:[#allocation33 + $0x144] sm:$0xf] }
 0xa81   : > { %v6508_v57 = vor.u32 %v7271_v49, %v6505_v50 }
 0xa84   : > { %3325 = vmatpush.bf16.msra.mxu3 %v6428_v53  ;;  %v3350_v53 = vld [vmem:[#allocation31 + $0x18] sm:$0x3] }
 0xa88   : > { %3326 = vmatpush.bf16.msra.mxu3 %v6420_v56  ;;  %v7274_v56 = vld [vmem:[#allocation33 + $0x154] sm:$0xf0] }
 0xa89   : > { %v6512_v60 = vor.u32 %v7274_v56, %v6511_v55  ;;  %v6565_v55 = vld [vmem:[#allocation37 + $0x30] sm:$0xf]  ;;  %v7286_v56 = vld [vmem:[#allocation37 + $0x34] sm:$0xf0] }
 0xa8c   : > { %3327 = vmatpush.bf16.msra.mxu3 %v6412_v59  ;;  %v6497_v59 = vld [vmem:[#allocation33 + $0x138] sm:$0xf0] }
 0xa8d   : > { %v6500_v1 = vor.u32 %v7269_v58, %v6497_v59  ;;  %v6557_v58 = vld [vmem:[#allocation37 + $0x20] sm:$0xf]  ;;  %v7284_v59 = vld [vmem:[#allocation37 + $0x24] sm:$0xf0] }
 0xa90   : > { %3328 = vmatpush.bf16.msra.mxu3 %v6404_v6  ;;  %v7270_v6 = vld [vmem:[#allocation33 + $0x134] sm:$0xf0] }
 0xa91   : > { %v6496_v10 = vor.u32 %v7270_v6, %v6495_v5  ;;  %v6684_v5 = vor.u32 %v7313_v2, %v6681_v3  ;;  %v7311_v6 = vld [vmem:[#allocation37 + $0x104] sm:$0xf]  ;;  %v6633_v2 = vld [vmem:[#allocation37 + $0xb8] sm:$0xf0] }
 0xa94   : > { %3329 = vmatpush.bf16.msra.mxu3 %v6396_v16  ;;  %v6488_v16 = vor.u32 %v7268_v12, %v6487_v11  ;;  %v6605_v12 = vld [vmem:[#allocation37 + $0x80] sm:$0xf] }
 0xafa   : > { %v3090_v23 = vpop.f32.mrf.mxu3 }
 0xafb   : > { %v3093_v25 = vadd.f32 %v3090_v23, %v3017_v21  ;;  %v6471_v21 = vld [vmem:[#allocation33 + $0x100] sm:$0xf] }
 0xafd   : > { %v3098_v26 = vadd.f32 %v7644_v22, %v3093_v25  ;;  %v7264_v22 = vld [vmem:[#allocation33 + $0x104] sm:$0xf0] }
 0xafe   : > { %v6472_v23 = vor.u32 %v7264_v22, %v6471_v21  ;;  %v7287_v21 = vld [vmem:[#allocation37 + $0x44] sm:$0xf]  ;;  %v6575_v22 = vld [vmem:[#allocation37 + $0x48] sm:$0xf0] }
 0xaff   : > { %v3099_v27 = vmax.f32 %v3098_v26, 0.0 }
 0xb01   : > { %v9223_v28 = vpack.c.bf16 %v3099_v27, %v3099_v27 }
 0xb03   : > { %3205 = vmatmul.bf16.vlgmr.msrb.gmra.mxu1 %v9223_v28  ;;  %3218 = vmatmul.bf16.vlgmr.msra.gmra.mxu2 %v9223_v28 }
 0xb04   : > { %3330 = vmatmul.bf16.vlgmr.msra.gmra.mxu3 %v9223_v28  ;;  %3343 = vmatmul.bf16.vlgmr.msrb.gmra.mxu0 %v9223_v28 }
 0xb80   : > { %v3206_v32 = vpop.f32.mrf.mxu1 }
 0xb81   : > { %v3344_v34 = vpop.f32.mrf.mxu0  ;;  %6463 = vmatpush.msk.msrb.mxu3 %vm1574_vm2, %v3206_v32  ;;  %v6597_v32 = vld [vmem:[#allocation37 + $0x70] sm:$0xf] }
 0xb82   : > { %6460 = vmatpush.msk.msrb.mxu2 %vm1574_vm2, %v3344_v34  ;;  %6464 = vmatmul.msk.f32.vlgmr.msrb.gmra.mxu3 %vm2462_vm9, %v3223_v36  ;;  %v3591_v34 = vld [vmem:[#allocation31 + $0x20] sm:$0xff] }
 0xb83   : > { %6461 = vmatmul.msk.f32.vlgmr.msrb.gmra.mxu2 %vm2462_vm9, %v3349_v35 }
 0xb84   : > { %3577 = vmatpush.bf16.msra.mxu2 %v6532_v31  ;;  %v6599_v31 = vld [vmem:[#allocation37 + $0x78] sm:$0xf0] }
 0xb85   : > { %v6602_v33 = vor.u32 %v7293_v30, %v6599_v31  ;;  %v6671_v30 = vld [vmem:[#allocation37 + $0x100] sm:$0xf]  ;;  %v7312_v31 = vld [vmem:[#allocation37 + $0x104] sm:$0xf0] }
 0xb86   : > { %v3219_v43 = vpop.f32.mrf.mxu2 }
 0xb87   : > { %v3331_v46 = vpop.f32.mrf.mxu3  ;;  %6466 = vmatpush.msk.msra.mxu0 %vm1574_vm2, %v3219_v43  ;;  %v7298_v43 = vld [vmem:[#allocation37 + $0x94] sm:$0xf0] }
 0xb88   : > { %3578 = vmatpush.bf16.msra.mxu2 %v6524_v39  ;;  %6457 = vmatpush.msk.msra.mxu1 %vm1574_vm2, %v3331_v46  ;;  %v3208_v48 = vpop.f32.mrf.mxu1  ;;  %v7291_v39 = vld [vmem:[#allocation37 + $0x64] sm:$0xf]  ;;  %v6614_v44 = vor.u32 %v7298_v43, %v6613_v41  ;;  %v6581_v46 = vld [vmem:[#allocation37 + $0x50] sm:$0xf]  ;;  %v7310_v41 = vld [vmem:[#allocation37 + $0xf4] sm:$0xf0] }
 0xb89   : > { %6467 = vmatmul.msk.f32.vlgmr.msra.gmra.mxu0 %vm2462_vm9, %v3223_v36  ;;  %v3346_v51 = vpop.f32.mrf.mxu0  ;;  %6458 = vmatmul.msk.f32.vlgmr.msra.gmra.mxu1 %vm2462_vm9, %v3349_v35  ;;  %v6598_v35 = vor.u32 %v7294_v24, %v6597_v32  ;;  %v6589_v36 = vld [vmem:[#allocation37 + $0x60] sm:$0xf]  ;;  %v3592_v48 = vld [vmem:[#allocation31 + $0x28] sm:$0x3]  ;;  %v6672_v32 = vor.u32 %v7312_v31, %v6671_v30  ;;  %v7307_v24 = vld [vmem:[#allocation37 + $0xe4] sm:$0xf] }
 0xb8a   : > { %3564 = vmatpush.bf16.msrb.mxu1 %v6528_v42  ;;  %6465 = vmatmul.msk.f32.gmra.mxu3 %vm2462_vm9, %v3224_v54  ;;  %v6594_v42 = vor.u32 %v7291_v39, %v6591_v40  ;;  %v6590_v45 = vor.u32 %v7292_v37, %v6589_v36  ;;  %v6567_v36 = vld [vmem:[#allocation37 + $0x38] sm:$0xf0]  ;;  %v6663_v40 = vld [vmem:[#allocation37 + $0xf0] sm:$0xf]  ;;  %v7316_v31 = vld [vmem:[#allocation37 + $0x124] sm:$0xf0] }
 0xb8b   : > { %6462 = vmatmul.msk.f32.gmra.mxu2 %vm2462_vm9, %v3350_v53  ;;  %v6664_v43 = vor.u32 %v7310_v41, %v6663_v40 }
 0xb8c   : > { %3579 = vmatpush.bf16.msra.mxu2 %v6516_v47  ;;  %v7290_v47 = vld [vmem:[#allocation37 + $0x54] sm:$0xf0] }
 0xb8d   : > { %v6582_v49 = vor.u32 %v7290_v47, %v6581_v46  ;;  %v6559_v46 = vld [vmem:[#allocation37 + $0x28] sm:$0xf0] }
 0xb8e   : > { %3565 = vmatpush.bf16.msrb.mxu1 %v6520_v52  ;;  %v3221_v61 = vpop.f32.mrf.mxu2  ;;  %v6573_v52 = vld [vmem:[#allocation37 + $0x40] sm:$0xf] }
 0xb8f   : > { %v3333_v0 = vpop.f32.mrf.mxu3  ;;  %v6549_v61 = vld [vmem:[#allocation37 + $0x10] sm:$0xf] }
 0xb90   : > { %3580 = vmatpush.bf16.msra.mxu2 %v6508_v57  ;;  %v6566_v57 = vor.u32 %v7286_v56, %v6565_v55  ;;  %v6550_v63 = vor.u32 %v7282_v62, %v6549_v61  ;;  %v6541_v0 = vld [vmem:[#allocation37] sm:$0xf]  ;;  %v6641_v55 = vld [vmem:[#allocation37 + $0xc8] sm:$0xf0]  ;;  %v6647_v62 = vld [vmem:[#allocation37 + $0xd0] sm:$0xf] }
 0xb91   : > { %6468 = vmatmul.msk.f32.gmra.mxu0 %vm2462_vm9, %v3224_v54  ;;  %6459 = vmatmul.msk.f32.gmra.mxu1 %vm2462_vm9, %v3350_v53  ;;  %v7288_v53 = vld [vmem:[#allocation37 + $0x44] sm:$0xf0] }
 0xb92   : > { %3566 = vmatpush.bf16.msrb.mxu1 %v6512_v60  ;;  %v6574_v54 = vor.u32 %v7288_v53, %v6573_v52  ;;  %v6558_v60 = vor.u32 %v7284_v59, %v6557_v58  ;;  %v7308_v53 = vld [vmem:[#allocation37 + $0xe4] sm:$0xf0]  ;;  %v7281_v58 = vld [vmem:[#allocation37 + $0x14] sm:$0xf]  ;;  %v6551_v59 = vld [vmem:[#allocation37 + $0x18] sm:$0xf0] }
 0xb93   : > { %v6554_v61 = vor.u32 %v7281_v58, %v6551_v59 }
 0xb94   : > { %3581 = vmatpush.bf16.msra.mxu2 %v6500_v1  ;;  %v7280_v1 = vld [vmem:[#allocation37 + $0x4] sm:$0xf0] }
 0xb96   : > { %3567 = vmatpush.bf16.msrb.mxu1 %v6504_v4  ;;  %v6542_v4 = vor.u32 %v7280_v1, %v6541_v0  ;;  %v7301_v1 = vld [vmem:[#allocation37 + $0xb4] sm:$0xf] }
 0xb97   : > { %v6636_v3 = vor.u32 %v7301_v1, %v6633_v2  ;;  %v6761_v1 = vld [vmem:[#allocation37 + $0x190] sm:$0xf]  ;;  %v7330_v2 = vld [vmem:[#allocation37 + $0x194] sm:$0xf0] }
 0xb98   : > { %3582 = vmatpush.bf16.msra.mxu2 %v6492_v7  ;;  %v6673_v7 = vld [vmem:[#allocation37 + $0x108] sm:$0xf0] }
 0xb99   : > { %v6676_v8 = vor.u32 %v7311_v6, %v6673_v7  ;;  %v6639_v7 = vld [vmem:[#allocation37 + $0xc0] sm:$0xf] }
 0xb9a   : > { %3568 = vmatpush.bf16.msrb.mxu1 %v6496_v10  ;;  %v6583_v10 = vld [vmem:[#allocation37 + $0x58] sm:$0xf0] }
 0xb9b   : > { %v6586_v11 = vor.u32 %v7289_v9, %v6583_v10 }
 0xb9c   : > { %3583 = vmatpush.bf16.msra.mxu2 %v6484_v13  ;;  %v7296_v13 = vld [vmem:[#allocation37 + $0x84] sm:$0xf0] }
 0xb9d   : > { %v6606_v14 = vor.u32 %v7296_v13, %v6605_v12  ;;  %v6625_v12 = vld [vmem:[#allocation37 + $0xa8] sm:$0xf0] }
 0xb9e   : > { %3569 = vmatpush.bf16.msrb.mxu1 %v6488_v16  ;;  %v7314_v16 = vld [vmem:[#allocation37 + $0x114] sm:$0xf0] }
 0xb9f   : > { %v6680_v17 = vor.u32 %v7314_v16, %v6679_v15  ;;  %v7302_v15 = vld [vmem:[#allocation37 + $0xb4] sm:$0xf0]  ;;  %v6695_v16 = vld [vmem:[#allocation37 + $0x130] sm:$0xf] }
 0xba0   : > { %3584 = vmatpush.bf16.msra.mxu2 %v6476_v19  ;;  %v6665_v19 = vld [vmem:[#allocation37 + $0xf8] sm:$0xf0] }
 0xba2   : > { %3570 = vmatpush.bf16.msrb.mxu1 %v6480_v20  ;;  %v6668_v20 = vor.u32 %v7309_v18, %v6665_v19  ;;  %v7318_v19 = vld [vmem:[#allocation37 + $0x134] sm:$0xf0] }
 0xba3   : > { %3585 = vmatmul.bf16.vlgmr.msra.gmra.mxu2 %v9223_v28 }
 0xba6   : > { %3571 = vmatpush.bf16.msrb.mxu1 %v6472_v23  ;;  %v6578_v23 = vor.u32 %v7287_v21, %v6575_v22  ;;  %v6623_v21 = vld [vmem:[#allocation37 + $0xa0] sm:$0xf]  ;;  %v7300_v22 = vld [vmem:[#allocation37 + $0xa4] sm:$0xf0] }
 0xba7   : > { %v6624_v30 = vor.u32 %v7300_v22, %v6623_v21 }
 0xba9   : > { %3572 = vmatmul.bf16.vlgmr.msrb.gmra.mxu1 %v9223_v28 }
 0xbaa   : > { %3822 = vmatpush.bf16.msra.mxu1 %v6602_v33  ;;  %v6657_v33 = vld [vmem:[#allocation37 + $0xe8] sm:$0xf0] }
 0xbae   : > { %3823 = vmatpush.bf16.msra.mxu1 %v6594_v42  ;;  %v7305_v42 = vld [vmem:[#allocation37 + $0xd4] sm:$0xf] }
 0xbb2   : > { %3824 = vmatpush.bf16.msra.mxu1 %v6586_v11  ;;  %v7299_v11 = vld [vmem:[#allocation37 + $0xa4] sm:$0xf] }
 0xbb3   : > { %v6628_v13 = vor.u32 %v7299_v11, %v6625_v12  ;;  %v7324_v11 = vld [vmem:[#allocation37 + $0x164] sm:$0xf0] }
 0xbb6   : > { %3825 = vmatpush.bf16.msra.mxu1 %v6578_v23  ;;  %v6687_v23 = vld [vmem:[#allocation37 + $0x120] sm:$0xf] }
 0xc05   : > { %v3438_v9 = vpop.f32.mrf.mxu3 }
 0xc06   : > { %v9243_v25 = vpop.f32.mrf.mxu1  ;;  %v9245_v26 = vpop.f32.mrf.mxu2 }
 0xc0e   : > { %v9247_v27 = vpop.f32.mrf.mxu1  ;;  %v9249_v29 = vpop.f32.mrf.mxu2 }
 0xc26   : > { %v3573_v38 = vpop.f32.mrf.mxu1  ;;  %v3586_v28 = vpop.f32.mrf.mxu2 }
 0xc27   : > { %6533 = vmatpush.msk.msra.mxu3 %vm1574_vm2, %v3573_v38  ;;  %6536 = vmatpush.msk.msrb.mxu0 %vm1574_vm2, %v3586_v28  ;;  %v7297_v38 = vld [vmem:[#allocation37 + $0x94] sm:$0xf]  ;;  %v6615_v28 = vld [vmem:[#allocation37 + $0x98] sm:$0xf0] }
 0xc28   : > { %6534 = vmatmul.msk.f32.vlgmr.msra.gmra.mxu3 %vm2462_vm9, %v3591_v34  ;;  %6537 = vmatmul.msk.f32.vlgmr.msrb.gmra.mxu0 %vm2462_vm9, %v3591_v34  ;;  %v6660_v34 = vor.u32 %v7307_v24, %v6657_v33  ;;  %v6618_v39 = vor.u32 %v7297_v38, %v6615_v28  ;;  %v6697_v24 = vld [vmem:[#allocation37 + $0x138] sm:$0xf0]  ;;  %v6688_v33 = vor.u32 %v7316_v31, %v6687_v23  ;;  %v6689_v38 = vld [vmem:[#allocation37 + $0x128] sm:$0xf0]  ;;  %v3655_v28 = vld [vmem:[#allocation34] sm:$0x3] }
 0xc29   : > { %3794 = vmatpush.bf16.msrb.mxu3 %v6598_v35  ;;  %3814 = vmatpush.bf16.msra.mxu0 %v6614_v44  ;;  %v7285_v35 = vld [vmem:[#allocation37 + $0x34] sm:$0xf]  ;;  %v6649_v44 = vld [vmem:[#allocation37 + $0xd8] sm:$0xf0] }
 0xc2a   : > { %v6570_v37 = vor.u32 %v7285_v35, %v6567_v36  ;;  %3842 = vmatpush.bf16.msrb.mxu2 %v6618_v39  ;;  %v6652_v47 = vor.u32 %v7305_v42, %v6649_v44  ;;  %v3441_v35 = vpop.f32.mrf.mxu3  ;;  %v3658_v42 = vperm.slane %v3655_v28, 1 }
 0xc2c   : > { %3826 = vmatpush.bf16.msra.mxu1 %v6570_v37  ;;  %v7315_v37 = vld [vmem:[#allocation37 + $0x124] sm:$0xf] }
 0xc2d   : > { %3795 = vmatpush.bf16.msrb.mxu3 %v6590_v45  ;;  %3815 = vmatpush.bf16.msra.mxu0 %v6606_v14  ;;  %v7283_v45 = vld [vmem:[#allocation37 + $0x24] sm:$0xf]  ;;  %v6631_v14 = vld [vmem:[#allocation37 + $0xb0] sm:$0xf]  ;;  %v6692_v39 = vor.u32 %v7315_v37, %v6689_v38 }
 0xc2e   : > { %v3575_v50 = vpop.f32.mrf.mxu1  ;;  %v3588_v51 = vpop.f32.mrf.mxu2  ;;  %v6632_v18 = vor.u32 %v7302_v15, %v6631_v14  ;;  %v7322_v14 = vld [vmem:[#allocation37 + $0x154] sm:$0xf0] }
 0xc2f   : > { %v6607_v50 = vld [vmem:[#allocation37 + $0x88] sm:$0xf0]  ;;  %v6655_v51 = vld [vmem:[#allocation37 + $0xe0] sm:$0xf] }
 0xc30   : > { %6535 = vmatmul.msk.f32.gmra.mxu3 %vm2462_vm9, %v3592_v48  ;;  %6538 = vmatmul.msk.f32.gmra.mxu0 %vm2462_vm9, %v3592_v48  ;;  %v6562_v48 = vor.u32 %v7283_v45, %v6559_v46  ;;  %v6656_v56 = vor.u32 %v7308_v53, %v6655_v51  ;;  %v3439_v46 = vadd.f32 %v3438_v9, %v9243_v25  ;;  %v6777_v25 = vld [vmem:[#allocation37 + $0x1b0] sm:$0xf] }
 0xc31   : > { %3796 = vmatpush.bf16.msrb.mxu3 %v6582_v49  ;;  %3974 = vmatpush.bf16.msrb.mxu0 %v6680_v17  ;;  %v7295_v49 = vld [vmem:[#allocation37 + $0x84] sm:$0xf] }
 0xc32   : > { %3827 = vmatpush.bf16.msra.mxu1 %v6562_v48  ;;  %v6610_v52 = vor.u32 %v7295_v49, %v6607_v50  ;;  %v3657_v50 = vperm.slane %v3655_v28, 0  ;;  %v7331_v28 = vld [vmem:[#allocation37 + $0x1a4] sm:$0xf] }
 0xc34   : > { %3843 = vmatpush.bf16.msrb.mxu2 %v6610_v52  ;;  %v3442_v52 = vadd.f32 %v3441_v35, %v9247_v27 }
 0xc35   : > { %3797 = vmatpush.bf16.msrb.mxu3 %v6574_v54  ;;  %3975 = vmatpush.bf16.msrb.mxu0 %v6672_v32  ;;  %v7303_v54 = vld [vmem:[#allocation37 + $0xc4] sm:$0xf]  ;;  %v7317_v32 = vld [vmem:[#allocation37 + $0x134] sm:$0xf] }
 0xc36   : > { %3828 = vmatpush.bf16.msra.mxu1 %v6554_v61 }
 0xc39   : > { %3798 = vmatpush.bf16.msrb.mxu3 %v6566_v57  ;;  %3976 = vmatpush.bf16.msrb.mxu0 %v6664_v43  ;;  %v6644_v57 = vor.u32 %v7303_v54, %v6641_v55 }
 0xc3d   : > { %3799 = vmatpush.bf16.msrb.mxu3 %v6558_v60  ;;  %v3461_v60 = vpop.f32.mrf.mxu0  ;;  %3977 = vmatpush.bf16.msrb.mxu0 %v6656_v56 }
 0xc3e   : > { %v3462_v40 = vadd.f32 %v3461_v60, %v9245_v26 }
 0xc41   : > { %3800 = vmatpush.bf16.msrb.mxu3 %v6550_v63  ;;  %v7306_v63 = vld [vmem:[#allocation37 + $0xd4] sm:$0xf0] }
 0xc42   : > { %v6648_v0 = vor.u32 %v7306_v63, %v6647_v62  ;;  %v6769_v62 = vld [vmem:[#allocation37 + $0x1a0] sm:$0xf]  ;;  %v7332_v63 = vld [vmem:[#allocation37 + $0x1a4] sm:$0xf0] }
 0xc44   : > { %3978 = vmatpush.bf16.msrb.mxu0 %v6648_v0  ;;  %v6770_v0 = vor.u32 %v7332_v63, %v6769_v62 }
 0xc45   : > { %3801 = vmatpush.bf16.msrb.mxu3 %v6542_v4  ;;  %v7279_v4 = vld [vmem:[#allocation37 + $0x4] sm:$0xf]  ;;  %v3464_v17 = vpop.f32.mrf.mxu0 }
 0xc46   : > { %v3465_v44 = vadd.f32 %v3464_v17, %v9249_v29  ;;  %v7334_v29 = vld [vmem:[#allocation37 + $0x1b4] sm:$0xf0]  ;;  %v7320_v17 = vld [vmem:[#allocation37 + $0x144] sm:$0xf0] }
 0xc47   : > { %v6778_v61 = vor.u32 %v7334_v29, %v6777_v25 }
 0xc49   : > { %4002 = vmatpush.bf16.msra.mxu3 %v6684_v5  ;;  %v6543_v5 = vld [vmem:[#allocation37 + $0x8] sm:$0xf0] }
 0xc4a   : > { %v6546_v6 = vor.u32 %v7279_v4, %v6543_v5  ;;  %v6753_v4 = vld [vmem:[#allocation37 + $0x180] sm:$0xf]  ;;  %v7328_v5 = vld [vmem:[#allocation37 + $0x184] sm:$0xf0] }
 0xc4c   : > { %3829 = vmatpush.bf16.msra.mxu1 %v6546_v6  ;;  %v6754_v6 = vor.u32 %v7328_v5, %v6753_v4  ;;  %v3852_v4 = vld [vmem:[#allocation36 + $0x10] sm:$0x3f]  ;;  %v6785_v5 = vld [vmem:[#allocation37 + $0x1c0] sm:$0xf] }
 0xc4d   : > { %4003 = vmatpush.bf16.msra.mxu3 %v6676_v8  ;;  %v7304_v8 = vld [vmem:[#allocation37 + $0xc4] sm:$0xf0] }
 0xc4e   : > { %v6640_v10 = vor.u32 %v7304_v8, %v6639_v7  ;;  %v6745_v7 = vld [vmem:[#allocation37 + $0x170] sm:$0xf]  ;;  %v7326_v8 = vld [vmem:[#allocation37 + $0x174] sm:$0xf0] }
 0xc4f   : > { %v6746_v9 = vor.u32 %v7326_v8, %v6745_v7  ;;  %v4032_v7 = vld [vmem:[#allocation36 + $0x20] sm:$0xff] }
 0xc50   : > { %3979 = vmatpush.bf16.msrb.mxu0 %v6640_v10  ;;  %v6737_v10 = vld [vmem:[#allocation37 + $0x160] sm:$0xf] }
 0xc51   : > { %4004 = vmatpush.bf16.msra.mxu3 %v6668_v20  ;;  %v6696_v20 = vor.u32 %v7318_v19, %v6695_v16  ;;  %v6738_v12 = vor.u32 %v7324_v11, %v6737_v10  ;;  %v6721_v16 = vld [vmem:[#allocation37 + $0x140] sm:$0xf]  ;;  %v6731_v10 = vld [vmem:[#allocation37 + $0x158] sm:$0xf0] }
 0xc53   : > { %3994 = vmatpush.bf16.msra.mxu2 %v6696_v20 }
 0xc54   : > { %3980 = vmatpush.bf16.msrb.mxu0 %v6632_v18  ;;  %v6722_v18 = vor.u32 %v7320_v17, %v6721_v16  ;;  %v6787_v16 = vld [vmem:[#allocation37 + $0x1c8] sm:$0xf0] }
 0xc55   : > { %4005 = vmatpush.bf16.msra.mxu3 %v6660_v34  ;;  %v6700_v34 = vor.u32 %v7317_v32, %v6697_v24  ;;  %v7333_v32 = vld [vmem:[#allocation37 + $0x1b4] sm:$0xf]  ;;  %v6779_v24 = vld [vmem:[#allocation37 + $0x1b8] sm:$0xf0] }
 0xc56   : > { %v6782_v37 = vor.u32 %v7333_v32, %v6779_v24 }
 0xc57   : > { %3995 = vmatpush.bf16.msra.mxu2 %v6688_v33  ;;  %4022 = vmatpush.bf16.msrb.mxu1 %v6700_v34 }
 0xc58   : > { %3981 = vmatpush.bf16.msrb.mxu0 %v6624_v30 }
 0xc59   : > { %4006 = vmatpush.bf16.msra.mxu3 %v6652_v47 }
 0xc5b   : > { %4023 = vmatpush.bf16.msrb.mxu1 %v6692_v39  ;;  %v6771_v39 = vld [vmem:[#allocation37 + $0x1a8] sm:$0xf0] }
 0xc5d   : > { %4007 = vmatpush.bf16.msra.mxu3 %v6644_v57 }
 0xc61   : > { %4008 = vmatpush.bf16.msra.mxu3 %v6636_v3  ;;  %v6762_v3 = vor.u32 %v7330_v2, %v6761_v1  ;;  %v7323_v1 = vld [vmem:[#allocation37 + $0x164] sm:$0xf]  ;;  %v6739_v2 = vld [vmem:[#allocation37 + $0x168] sm:$0xf0] }
 0xc62   : > { %v6742_v8 = vor.u32 %v7323_v1, %v6739_v2  ;;  %v7350_v1 = vld [vmem:[#allocation40 + $0x58] sm:$0xff] }
 0xc65   : > { %4009 = vmatpush.bf16.msra.mxu3 %v6628_v13  ;;  %v6729_v13 = vld [vmem:[#allocation37 + $0x150] sm:$0xf] }
 0xc66   : > { %v6730_v15 = vor.u32 %v7322_v14, %v6729_v13  ;;  %v6795_v13 = vld [vmem:[#allocation37 + $0x1d8] sm:$0xf0] }
 0xca5   : > { %v3645_v36 = vpop.f32.mrf.mxu0 }
 0xca6   : > { %v3652_v41 = vadd.f32 %v3645_v36, %v3462_v40  ;;  %v9279_v40 = vld [vmem:[#allocation36] sm:$0xff] }
 0xca8   : > { %v3662_v47 = vadd.f32 %v3658_v42, %v3652_v41 }
 0xcaa   : > { %v3666_v53 = vmax.f32 %v3662_v47, 0.0 }
 0xcab   : > { %v3622_v43 = vpop.f32.mrf.mxu3 }
 0xcac   : > { %v3651_v49 = vadd.f32 %v3622_v43, %v3439_v46  ;;  %v7329_v43 = vld [vmem:[#allocation37 + $0x194] sm:$0xf] }
 0xcad   : > { %v3648_v45 = vpop.f32.mrf.mxu0 }
 0xcae   : > { %v3654_v48 = vadd.f32 %v3648_v45, %v3465_v44  ;;  %v3661_v26 = vadd.f32 %v3657_v50, %v3651_v49  ;;  %v6763_v44 = vld [vmem:[#allocation37 + $0x198] sm:$0xf0] }
 0xcb0   : > { %v3664_v51 = vadd.f32 %v3658_v42, %v3654_v48  ;;  %v3665_v59 = vmax.f32 %v3661_v26, 0.0  ;;  %v6774_v42 = vor.u32 %v7331_v28, %v6771_v39  ;;  %v6766_v48 = vor.u32 %v7329_v43, %v6763_v44  ;;  %v4347_v44 = vld [vmem:[#allocation36 + $0x38] sm:$0xff] }
 0xcb2   : > { %v3668_v54 = vmax.f32 %v3664_v51, 0.0  ;;  %v6755_v51 = vld [vmem:[#allocation37 + $0x188] sm:$0xf0] }
 0xcb3   : > { %v3625_v55 = vpop.f32.mrf.mxu3 }
 0xcb4   : > { %v9261_v56 = vpack.c.bf16 %v3668_v54, %v3666_v53  ;;  %v3653_v57 = vadd.f32 %v3625_v55, %v3442_v52  ;;  %v9283_v52 = vld [vmem:[#allocation36 + $0x8] sm:$0xff]  ;;  %v4031_v54 = vld [vmem:[#allocation36 + $0x18] sm:$0xff] }
 0xcb6   : > { %v3663_v58 = vadd.f32 %v3657_v50, %v3653_v57  ;;  %6619 = vmatmul.msk.bf16.vlgmr.msra.gmra.mxu0 %vm2770_vm11, %v9261_v56  ;;  %6620 = vmatmul.msk.bf16.vlgmr.msrb.gmra.mxu2 %vm2770_vm11, %v9261_v56  ;;  %v7327_v50 = vld [vmem:[#allocation37 + $0x184] sm:$0xf]  ;;  %v7325_v57 = vld [vmem:[#allocation37 + $0x174] sm:$0xf] }
 0xcb7   : > { %v6758_v55 = vor.u32 %v7327_v50, %v6755_v51  ;;  %v7356_v50 = vld [vmem:[#allocation40 + $0x88] sm:$0xff]  ;;  %v4348_v51 = vld [vmem:[#allocation36 + $0x40] sm:$0x3f] }
 0xcb8   : > { %v3667_v60 = vmax.f32 %v3663_v58, 0.0  ;;  %v6747_v58 = vld [vmem:[#allocation37 + $0x178] sm:$0xf0] }
 0xcb9   : > { %v6750_v63 = vor.u32 %v7325_v57, %v6747_v58  ;;  %v7354_v57 = vld [vmem:[#allocation40 + $0x78] sm:$0xff] }
 0xcba   : > { %v9267_v27 = vpack.c.bf16 %v3667_v60, %v3665_v59  ;;  %v6793_v59 = vld [vmem:[#allocation37 + $0x1d0] sm:$0xf]  ;;  %v7338_v60 = vld [vmem:[#allocation37 + $0x1d4] sm:$0xf0] }
 0xcbc   : > { %3802 = vmatmul.bf16.vlgmr.msrb.gmra.mxu3 %v9267_v27  ;;  %3830 = vmatmul.bf16.vlgmr.msra.gmra.mxu1 %v9267_v27 }
 0xcbd   : > { %4289 = vmatpush.bf16.msrb.mxu3 %v6778_v61 }
 0xcc1   : > { %4290 = vmatpush.bf16.msrb.mxu3 %v6770_v0 }
 0xcc5   : > { %4291 = vmatpush.bf16.msrb.mxu3 %v6762_v3  ;;  %v6794_v3 = vor.u32 %v7338_v60, %v6793_v59  ;;  %v7353_v59 = vld [vmem:[#allocation40 + $0x70] sm:$0xff] }
 0xcc6   : > { %3982 = vmatmul.bf16.vlgmr.msrb.gmra.mxu0 %v9267_v27  ;;  %6701 = vmatmul.msk.bf16.vlgmr.msra.gmra.mxu2 %vm2770_vm11, %v9261_v56  ;;  %v7341_v60 = vld [vmem:[#allocation40 + $0x10] sm:$0xff] }
 0xcc9   : > { %4292 = vmatpush.bf16.msrb.mxu3 %v6754_v6  ;;  %v7336_v6 = vld [vmem:[#allocation37 + $0x1c4] sm:$0xf0] }
 0xcca   : > { %v6786_v11 = vor.u32 %v7336_v6, %v6785_v5  ;;  %v7349_v5 = vld [vmem:[#allocation40 + $0x50] sm:$0xff]  ;;  %v7360_v6 = vld [vmem:[#allocation40 + $0xa8] sm:$0xff] }
 0xccc   : > { %4010 = vmatmul.bf16.vlgmr.msra.gmra.mxu3 %v9267_v27  ;;  %6702 = vmatmul.msk.bf16.vlgmr.msrb.gmra.mxu1 %vm2770_vm11, %v9261_v56 }
 0xccd   : > { %4293 = vmatpush.bf16.msrb.mxu3 %v6746_v9  ;;  %v7321_v9 = vld [vmem:[#allocation37 + $0x154] sm:$0xf] }
 0xcce   : > { %v6734_v17 = vor.u32 %v7321_v9, %v6731_v10  ;;  %v7371_v9 = vld [vmem:[#allocation40 + $0x100] sm:$0xff] }
 0xcd1   : > { %4294 = vmatpush.bf16.msrb.mxu3 %v6738_v12  ;;  %v7337_v12 = vld [vmem:[#allocation37 + $0x1d4] sm:$0xf] }
 0xcd2   : > { %v6798_v14 = vor.u32 %v7337_v12, %v6795_v13  ;;  %v7359_v12 = vld [vmem:[#allocation40 + $0xa0] sm:$0xff] }
 0xcd5   : > { %4295 = vmatpush.bf16.msrb.mxu3 %v6730_v15  ;;  %v7335_v15 = vld [vmem:[#allocation37 + $0x1c4] sm:$0xf] }
 0xcd9   : > { %4296 = vmatpush.bf16.msrb.mxu3 %v6722_v18  ;;  %v7319_v18 = vld [vmem:[#allocation37 + $0x144] sm:$0xf] }
 0xcdc   : > { %4297 = vmatmul.bf16.vlgmr.msrb.gmra.mxu3 %v9267_v27 }
 0xd33   : > { %v3817_v19 = vpop.f32.mrf.mxu0 }
 0xd39   : > { %v3831_v20 = vpop.f32.mrf.mxu1  ;;  %v3845_v21 = vpop.f32.mrf.mxu2 }
 0xd3a   : > { %v3846_v61 = vadd.f32 %v3845_v21, %v3831_v20  ;;  %v6790_v20 = vor.u32 %v7335_v15, %v6787_v16  ;;  %v4033_v21 = vld [vmem:[#allocation36 + $0x28] sm:$0x3f] }
 0xd3b   : > { %v3819_v22 = vpop.f32.mrf.mxu0  ;;  %v7370_v16 = vld [vmem:[#allocation40 + $0xf8] sm:$0xff] }
 0xd3f   : > { %v3803_v23 = vpop.f32.mrf.mxu3 }
 0xd40   : > { %v3818_v38 = vadd.f32 %v3817_v19, %v3803_v23  ;;  %v6723_v19 = vld [vmem:[#allocation37 + $0x148] sm:$0xf0] }
 0xd41   : > { %v3847_v30 = vpop.f32.mrf.mxu2  ;;  %v3833_v31 = vpop.f32.mrf.mxu1 }
 0xd42   : > { %v3848_v26 = vadd.f32 %v3847_v30, %v3833_v31 }
 0xd43   : > { %v3983_v33 = vpop.f32.mrf.mxu0 }
 0xd47   : > { %v3805_v34 = vpop.f32.mrf.mxu3 }
 0xd48   : > { %v3820_v35 = vadd.f32 %v3819_v22, %v3805_v34  ;;  %v6726_v22 = vor.u32 %v7319_v18, %v6723_v19  ;;  %v7347_v18 = vld [vmem:[#allocation40 + $0x40] sm:$0xff]  ;;  %v7358_v19 = vld [vmem:[#allocation40 + $0x98] sm:$0xff] }
 0xd49   : > { %v3997_v36 = vpop.f32.mrf.mxu2  ;;  %v4025_v41 = vpop.f32.mrf.mxu1 }
 0xd4a   : > { %6711 = vmatpush.msk.msra.mxu1 %vm2223_vm6, %v3820_v35  ;;  %v3998_v53 = vadd.f32 %v3997_v36, %v3983_v33 }
 0xd4b   : > { %v3985_v46 = vpop.f32.mrf.mxu0 }
 0xd4c   : > { %4131 = vmatpush.msra.mxu1 %v3818_v38 }
 0xd4d   : > { %6712 = vmatmul.msk.f32.vlgmr.msra.gmra.mxu1 %vm2219_vm7, %v9279_v40 }
 0xd4e   : > { %4317 = vmatpush.bf16.msrb.mxu1 %v6782_v37 }
 0xd4f   : > { %v4011_v45 = vpop.f32.mrf.mxu3 }
 0xd50   : > { %v4026_v0 = vadd.f32 %v4025_v41, %v4011_v45  ;;  %v4346_v41 = vld [vmem:[#allocation36 + $0x30] sm:$0xff] }
 0xd51   : > { %v3999_v47 = vpop.f32.mrf.mxu2  ;;  %v4027_v25 = vpop.f32.mrf.mxu1 }
 0xd52   : > { %4318 = vmatpush.bf16.msrb.mxu1 %v6774_v42  ;;  %v4000_v49 = vadd.f32 %v3999_v47, %v3985_v46  ;;  %v7346_v46 = vld [vmem:[#allocation40 + $0x38] sm:$0xff]  ;;  %v7357_v47 = vld [vmem:[#allocation40 + $0x90] sm:$0xff] }
 0xd54   : > { %6703 = vmatpush.msk.msrb.mxu2 %vm2223_vm6, %v4000_v49  ;;  %v7345_v49 = vld [vmem:[#allocation40 + $0x30] sm:$0xff] }
 0xd55   : > { %6713 = vmatmul.msk.f32.gmra.mxu1 %vm2219_vm7, %v9283_v52 }
 0xd56   : > { %4319 = vmatpush.bf16.msrb.mxu1 %v6766_v48  ;;  %4064 = vmatpush.msrb.mxu2 %v3998_v53  ;;  %v7355_v53 = vld [vmem:[#allocation40 + $0x80] sm:$0xff] }
 0xd57   : > { %v4013_v29 = vpop.f32.mrf.mxu3  ;;  %6704 = vmatmul.msk.f32.vlgmr.msrb.gmra.mxu2 %vm2219_vm7, %v4031_v54 }
 0xd58   : > { %v4028_v62 = vadd.f32 %v4027_v25, %v4013_v29  ;;  %6715 = vmatpush.msk.msra.mxu2 %vm2223_vm6, %v3848_v26  ;;  %v7343_v26 = vld [vmem:[#allocation40 + $0x20] sm:$0xff]  ;;  %v7342_v29 = vld [vmem:[#allocation40 + $0x18] sm:$0xff] }
 0xd5a   : > { %4320 = vmatpush.bf16.msrb.mxu1 %v6758_v55  ;;  %4157 = vmatpush.msra.mxu2 %v3846_v61  ;;  %v7352_v61 = vld [vmem:[#allocation40 + $0x68] sm:$0xff] }
 0xd5b   : > { %6707 = vmatpush.msk.msra.mxu0 %vm2223_vm6, %v4028_v62  ;;  %v7340_v62 = vld [vmem:[#allocation40 + $0x8] sm:$0xff] }
 0xd5c   : > { %4337 = vmatpush.bf16.msrb.mxu2 %v6798_v14 }
 0xd5d   : > { %4090 = vmatpush.msra.mxu0 %v4026_v0  ;;  %6714 = vmatmul.msk.f32.gmra.mxu1 %vm2219_vm7, %v3852_v4  ;;  %v7339_v0 = vld [vmem:[#allocation40] sm:$0xff] }
 0xd5e   : > { %6708 = vmatmul.msk.f32.vlgmr.msra.gmra.mxu0 %vm2219_vm7, %v4031_v54  ;;  %4321 = vmatpush.bf16.msrb.mxu1 %v6750_v63  ;;  %v7351_v63 = vld [vmem:[#allocation40 + $0x60] sm:$0xff] }
 0xd5f   : > { %4309 = vmatpush.bf16.msrb.mxu0 %v6794_v3  ;;  %6705 = vmatmul.msk.f32.gmra.mxu2 %vm2219_vm7, %v4032_v7  ;;  %v4298_v34 = vpop.f32.mrf.mxu3  ;;  %v4422_v3 = vld [vmem:[%s9542_s23] sm:$0x3] }
 0xd60   : > { %4338 = vmatpush.bf16.msrb.mxu2 %v6790_v20 }
 0xd62   : > { %4322 = vmatpush.bf16.msrb.mxu1 %v6742_v8  ;;  %v4424_v8 = vperm.slane %v4422_v3, 0 }
 0xd63   : > { %4310 = vmatpush.bf16.msrb.mxu0 %v6786_v11  ;;  %v7348_v11 = vld [vmem:[#allocation40 + $0x48] sm:$0xff] }
 0xd66   : > { %6709 = vmatmul.msk.f32.gmra.mxu0 %vm2219_vm7, %v4032_v7  ;;  %4323 = vmatpush.bf16.msrb.mxu1 %v6734_v17 }
 0xd67   : > { %6706 = vmatmul.msk.f32.gmra.mxu2 %vm2219_vm7, %v4033_v21 }
 0xd6a   : > { %4324 = vmatpush.bf16.msrb.mxu1 %v6726_v22  ;;  %v7369_v22 = vld [vmem:[#allocation40 + $0xf0] sm:$0xff] }
 0xd6d   : > { %4325 = vmatmul.bf16.vlgmr.msrb.gmra.mxu1 %v9267_v27 }
 0xd6e   : > { %6710 = vmatmul.msk.f32.gmra.mxu0 %vm2219_vm7, %v4033_v21  ;;  %4538 = vmatpush.bf16.msra.mxu1 %v7346_v46 }
 0xd6f   : > { %6716 = vmatmul.msk.f32.vlgmr.msra.gmra.mxu2 %vm2219_vm7, %v9279_v40 }
 0xd70   : > { %4561 = vmatpush.bf16.msra.mxu2 %v7349_v5 }
 0xd72   : > { %4539 = vmatpush.bf16.msra.mxu1 %v7345_v49 }
 0xd74   : > { %4562 = vmatpush.bf16.msra.mxu2 %v7348_v11 }
 0xd76   : > { %6799 = vmatmul.msk.bf16.vlgmr.msrb.gmra.mxu0 %vm2770_vm11, %v9261_v56 }
 0xd77   : > { %6717 = vmatmul.msk.f32.gmra.mxu2 %vm2219_vm7, %v9283_v52  ;;  %v7344_v52 = vld [vmem:[#allocation40 + $0x28] sm:$0xff] }
 0xd78   : > { %4540 = vmatpush.bf16.msra.mxu1 %v7344_v52  ;;  %4563 = vmatpush.bf16.msra.mxu2 %v7347_v18 }
 0xd7c   : > { %4541 = vmatpush.bf16.msra.mxu1 %v7343_v26 }
 0xd7f   : > { %6718 = vmatmul.msk.f32.gmra.mxu2 %vm2219_vm7, %v3852_v4 }
 0xd80   : > { %4542 = vmatpush.bf16.msra.mxu1 %v7342_v29 }
 0xd84   : > { %4543 = vmatpush.bf16.msra.mxu1 %v7341_v60 }
 0xd87   : > { %6800 = vmatmul.msk.bf16.vlgmr.msrb.gmra.mxu2 %vm2770_vm11, %v9261_v56  ;;  %v4300_v56 = vpop.f32.mrf.mxu3 }
 0xd88   : > { %4544 = vmatpush.bf16.msra.mxu1 %v7340_v62 }
 0xd8c   : > { %4545 = vmatpush.bf16.msra.mxu1 %v7339_v0 }
 0xdca   : > { %v9315_v32 = vpop.f32.mrf.mxu1 }
 0xdd2   : > { %v9323_v37 = vpop.f32.mrf.mxu1 }
 0xdda   : > { %v9307_v23 = vpop.f32.mrf.mxu2  ;;  %v9328_v42 = vpop.f32.mrf.mxu1 }
 0xddb   : > { %v9309_v30 = vpop.f32.mrf.mxu0  ;;  %v4134_v4 = vadd.f32 %v9315_v32, %v9307_v23 }
 0xde2   : > { %v9311_v27 = vpop.f32.mrf.mxu2 }
 0xde3   : > { %v9313_v31 = vpop.f32.mrf.mxu0  ;;  %v4137_v10 = vadd.f32 %v9323_v37, %v9311_v27  ;;  %v7368_v27 = vld [vmem:[#allocation40 + $0xe8] sm:$0xff]  ;;  %v7367_v37 = vld [vmem:[#allocation40 + $0xe0] sm:$0xff] }
 0xdea   : > { %v9317_v24 = vpop.f32.mrf.mxu2  ;;  %v4326_v45 = vpop.f32.mrf.mxu1 }
 0xdeb   : > { %v9319_v33 = vpop.f32.mrf.mxu0 }
 0xdf2   : > { %v9321_v35 = vpop.f32.mrf.mxu2  ;;  %v4328_v54 = vpop.f32.mrf.mxu1 }
 0xdf3   : > { %v4312_v36 = vpop.f32.mrf.mxu0  ;;  %v4160_v46 = vadd.f32 %v9321_v35, %v9309_v30 }
 0xdf4   : > { %v4313_v40 = vadd.f32 %v4312_v36, %v4298_v34  ;;  %v4140_v34 = vadd.f32 %v9328_v42, %v9317_v24  ;;  %v7363_v24 = vld [vmem:[#allocation40 + $0xc0] sm:$0xff] }
 0xdfa   : > { %v9325_v38 = vpop.f32.mrf.mxu2 }
 0xdfb   : > { %v4314_v28 = vpop.f32.mrf.mxu0 }
 0xdfc   : > { %v4315_v39 = vadd.f32 %v4314_v28, %v4300_v56  ;;  %v7366_v56 = vld [vmem:[#allocation40 + $0xd8] sm:$0xff] }
 0xdfe   : > { %6801 = vmatpush.msk.msra.mxu0 %vm2223_vm6, %v4315_v39  ;;  %v7365_v39 = vld [vmem:[#allocation40 + $0xd0] sm:$0xff] }
 0xe00   : > { %4379 = vmatpush.msra.mxu0 %v4313_v40 }
 0xe01   : > { %6802 = vmatmul.msk.f32.vlgmr.msra.gmra.mxu0 %vm2219_vm7, %v4346_v41 }
 0xe02   : > { %v9331_v43 = vpop.f32.mrf.mxu2  ;;  %4666 = vmatpush.bf16.msrb.mxu0 %v7357_v47  ;;  %v4425_v47 = vperm.slane %v4422_v3, 1 }
 0xe06   : > { %4667 = vmatpush.bf16.msrb.mxu0 %v7356_v50  ;;  %v7362_v50 = vld [vmem:[#allocation40 + $0xb8] sm:$0xff] }
 0xe09   : > { %6803 = vmatmul.msk.f32.gmra.mxu0 %vm2219_vm7, %v4347_v44 }
 0xe0a   : > { %v4340_v48 = vpop.f32.mrf.mxu2  ;;  %4668 = vmatpush.bf16.msrb.mxu0 %v7355_v53 }
 0xe0b   : > { %v4341_v25 = vadd.f32 %v4340_v48, %v4326_v45  ;;  %v7364_v45 = vld [vmem:[#allocation40 + $0xc8] sm:$0xff]  ;;  %v4163_v48 = vadd.f32 %v9325_v38, %v9313_v31 }
 0xe0e   : > { %4669 = vmatpush.bf16.msrb.mxu0 %v7354_v57  ;;  %v4166_v57 = vadd.f32 %v9331_v43, %v9319_v33 }
 0xe11   : > { %6804 = vmatmul.msk.f32.gmra.mxu0 %vm2219_vm7, %v4348_v51 }
 0xe12   : > { %v4342_v55 = vpop.f32.mrf.mxu2  ;;  %4670 = vmatpush.bf16.msrb.mxu0 %v7353_v59 }
 0xe13   : > { %v4343_v58 = vadd.f32 %v4342_v55, %v4328_v54  ;;  %v7361_v54 = vld [vmem:[#allocation40 + $0xb0] sm:$0xff] }
 0xe15   : > { %6805 = vmatpush.msk.msra.mxu3 %vm2223_vm6, %v4343_v58 }
 0xe16   : > { %4671 = vmatpush.bf16.msrb.mxu0 %v7352_v61 }
 0xe17   : > { %4405 = vmatpush.msra.mxu3 %v4341_v25 }
 0xe18   : > { %6806 = vmatmul.msk.f32.vlgmr.msra.gmra.mxu3 %vm2219_vm7, %v4346_v41 }
 0xe19   : > { %4689 = vmatpush.bf16.msrb.mxu3 %v7360_v6 }
 0xe1a   : > { %4672 = vmatpush.bf16.msrb.mxu0 %v7351_v63 }
 0xe1d   : > { %4690 = vmatpush.bf16.msrb.mxu3 %v7359_v12 }
 0xe1e   : > { %4673 = vmatpush.bf16.msrb.mxu0 %v7350_v1 }
 0xe20   : > { %6807 = vmatmul.msk.f32.gmra.mxu3 %vm2219_vm7, %v4347_v44 }
 0xe21   : > { %4691 = vmatpush.bf16.msrb.mxu3 %v7358_v19 }
 0xe22   : > { %4895 = vmatpush.bf16.msra.mxu0 %v7371_v9 }
 0xe25   : > { %4872 = vmatpush.bf16.msra.mxu3 %v7368_v27  ;;  %v4576_v27 = vld [vmem:[#allocation39 + $0x10] sm:$0xff] }
 0xe26   : > { %4896 = vmatpush.bf16.msra.mxu0 %v7370_v16  ;;  %v4703_v16 = vld [vmem:[#allocation39 + $0x18] sm:$0xff] }
 0xe28   : > { %6808 = vmatmul.msk.f32.gmra.mxu3 %vm2219_vm7, %v4348_v51 }
 0xe29   : > { %4873 = vmatpush.bf16.msra.mxu3 %v7367_v37 }
 0xe2a   : > { %4897 = vmatpush.bf16.msra.mxu0 %v7369_v22 }
 0xe2d   : > { %4874 = vmatpush.bf16.msra.mxu3 %v7366_v56 }
 0xe31   : > { %4875 = vmatpush.bf16.msra.mxu3 %v7365_v39 }
 0xe35   : > { %4876 = vmatpush.bf16.msra.mxu3 %v7364_v45  ;;  %v7383_v45 = vld [vmem:[%s8702_s3 + $0x58] sm:$0xff] }
 0xe39   : > { %4877 = vmatpush.bf16.msra.mxu3 %v7363_v24  ;;  %v7382_v24 = vld [vmem:[%s8702_s3 + $0x50] sm:$0xff] }
 0xe3d   : > { %4878 = vmatpush.bf16.msra.mxu3 %v7362_v50  ;;  %v7380_v50 = vld [vmem:[%s8702_s3 + $0x40] sm:$0xff] }
 0xe41   : > { %4879 = vmatpush.bf16.msra.mxu3 %v7361_v54  ;;  %v7372_v54 = vld [vmem:[%s8702_s3] sm:$0xff] }
 0xe7e   : > { %v4381_v2 = vpop.f32.mrf.mxu0 }
 0xe7f   : > { %v4416_v7 = vadd.f32 %v4381_v2, %v4134_v4 }
 0xe81   : > { %v4428_v14 = vadd.f32 %v4424_v8, %v4416_v7 }
 0xe83   : > { %v4434_v20 = vmax.f32 %v4428_v14, 0.0 }
 0xe86   : > { %v4384_v13 = vpop.f32.mrf.mxu0 }
 0xe87   : > { %v4418_v15 = vadd.f32 %v4384_v13, %v4137_v10 }
 0xe89   : > { %v4430_v17 = vadd.f32 %v4424_v8, %v4418_v15 }
 0xe8b   : > { %v4436_v21 = vmax.f32 %v4430_v17, 0.0  ;;  %v4574_v17 = vld [vmem:[#allocation39] sm:$0xff] }
 0xe8d   : > { %v4440_v23 = vpack.c.bf16 %v4436_v21, %v4434_v20  ;;  %v4704_v20 = vld [vmem:[#allocation39 + $0x20] sm:$0xff]  ;;  %v4575_v21 = vld [vmem:[#allocation39 + $0x8] sm:$0xff] }
 0xe8e   : > { %v4387_v32 = vpop.f32.mrf.mxu0 }
 0xe8f   : > { %4546 = vmatmul.bf16.vlgmr.msra.gmra.mxu1 %v4440_v23  ;;  %4674 = vmatmul.bf16.vlgmr.msrb.gmra.mxu0 %v4440_v23  ;;  %v4420_v36 = vadd.f32 %v4387_v32, %v4140_v34 }
 0xe91   : > { %v4432_v28 = vadd.f32 %v4424_v8, %v4420_v36 }
 0xe93   : > { %v4438_v40 = vmax.f32 %v4432_v28, 0.0  ;;  %v4909_v28 = vld [vmem:[#allocation39 + $0x30] sm:$0xff] }
 0xe95   : > { %v4442_v44 = vpack.c.bf16 %v4438_v40, %v4438_v40  ;;  %v4910_v40 = vld [vmem:[#allocation39 + $0x38] sm:$0xff] }
 0xe9b   : > { %v4407_v41 = vpop.f32.mrf.mxu3 }
 0xe9c   : > { %v4417_v42 = vadd.f32 %v4407_v41, %v4160_v46  ;;  %v4911_v41 = vld [vmem:[#allocation39 + $0x40] sm:$0xff]  ;;  %v7376_v46 = vld [vmem:[%s8702_s3 + $0x20] sm:$0xff] }
 0xe9e   : > { %v4429_v51 = vadd.f32 %v4425_v47, %v4417_v42  ;;  %v7375_v42 = vld [vmem:[%s8702_s3 + $0x18] sm:$0xff] }
 0xe9f   : > { %4551 = vmatmul.bf16.gmra.mxu1 %v4442_v44  ;;  %4679 = vmatmul.bf16.gmra.mxu0 %v4442_v44 }
 0xea0   : > { %v4435_v55 = vmax.f32 %v4429_v51, 0.0  ;;  %v7373_v51 = vld [vmem:[%s8702_s3 + $0x8] sm:$0xff] }
 0xea3   : > { %v4410_v49 = vpop.f32.mrf.mxu3 }
 0xea4   : > { %v4419_v52 = vadd.f32 %v4410_v49, %v4163_v48  ;;  %v7374_v49 = vld [vmem:[%s8702_s3 + $0x10] sm:$0xff] }
 0xea6   : > { %v4431_v53 = vadd.f32 %v4425_v47, %v4419_v52  ;;  %v7379_v52 = vld [vmem:[%s8702_s3 + $0x38] sm:$0xff] }
 0xea8   : > { %v4437_v26 = vmax.f32 %v4431_v53, 0.0 }
 0xeaa   : > { %v4441_v30 = vpack.c.bf16 %v4437_v26, %v4435_v55  ;;  %v7378_v55 = vld [vmem:[%s8702_s3 + $0x30] sm:$0xff] }
 0xeab   : > { %v4413_v35 = vpop.f32.mrf.mxu3 }
 0xeac   : > { %6853 = vmatmul.msk.bf16.vlgmr.msra.gmra.mxu2 %vm1891_vm3, %v4441_v30  ;;  %6899 = vmatmul.msk.bf16.vlgmr.msrb.gmra.mxu3 %vm1891_vm3, %v4441_v30  ;;  %v4421_v31 = vadd.f32 %v4413_v35, %v4166_v57  ;;  %v7388_v35 = vld [vmem:[%s8702_s3 + $0x80] sm:$0xff] }
 0xeae   : > { %v4433_v38 = vadd.f32 %v4425_v47, %v4421_v31  ;;  %v7381_v47 = vld [vmem:[%s8702_s3 + $0x48] sm:$0xff] }
 0xeaf   : > { %6953 = vmatmul.msk.bf16.vlgmr.msra.gmra.mxu0 %vm1891_vm3, %v4441_v30  ;;  %v7389_v30 = vld [vmem:[%s8702_s3 + $0x88] sm:$0xff] }
 0xeb0   : > { %v4439_v58 = vmax.f32 %v4433_v38, 0.0  ;;  %v7387_v38 = vld [vmem:[%s8702_s3 + $0x78] sm:$0xff] }
 0xeb2   : > { %v4443_v25 = vpack.c.bf16 %v4439_v58, %v4439_v58 }
 0xebc   : > { %6854 = vmatmul.msk.bf16.gmra.mxu2 %vm1891_vm3, %v4443_v25  ;;  %6900 = vmatmul.msk.bf16.gmra.mxu3 %vm1891_vm3, %v4443_v25 }
 0xebf   : > { %6954 = vmatmul.msk.bf16.gmra.mxu0 %vm1891_vm3, %v4443_v25  ;;  %v7386_v25 = vld [vmem:[%s8702_s3 + $0x70] sm:$0xff] }
 0xecc   : > { %4880 = vmatmul.bf16.vlgmr.msra.gmra.mxu3 %v4440_v23  ;;  %v4705_v23 = vld [vmem:[#allocation39 + $0x28] sm:$0xff] }
 0xedc   : > { %4885 = vmatmul.bf16.gmra.mxu3 %v4442_v44  ;;  %v7377_v44 = vld [vmem:[%s8702_s3 + $0x28] sm:$0xff] }
 0xf0c   : > { %v4547_v29 = vpop.f32.mrf.mxu1  ;;  %v4675_v33 = vpop.f32.mrf.mxu0 }
 0xf14   : > { %v4549_v43 = vpop.f32.mrf.mxu1  ;;  %v4677_v59 = vpop.f32.mrf.mxu0 }
 0xf1c   : > { %v4552_v60 = vpop.f32.mrf.mxu1  ;;  %v4680_v61 = vpop.f32.mrf.mxu0 }
 0xf24   : > { %v4554_v62 = vpop.f32.mrf.mxu1  ;;  %v4682_v63 = vpop.f32.mrf.mxu0 }
 0xf2c   : > { %v4899_v0 = vpop.f32.mrf.mxu0 }
 0xf2f   : > { %v4565_v1 = vpop.f32.mrf.mxu2  ;;  %v4693_v2 = vpop.f32.mrf.mxu3 }
 0xf30   : > { %v4566_v14 = vadd.f32 %v4565_v1, %v4547_v29  ;;  %v4694_v15 = vadd.f32 %v4693_v2, %v4675_v33  ;;  %v7384_v1 = vld [vmem:[%s8702_s3 + $0x60] sm:$0xff] }
 0xf34   : > { %v4901_v3 = vpop.f32.mrf.mxu0 }
 0xf37   : > { %v4567_v4 = vpop.f32.mrf.mxu2  ;;  %v4695_v5 = vpop.f32.mrf.mxu3 }
 0xf38   : > { %v4568_v11 = vadd.f32 %v4567_v4, %v4549_v43  ;;  %v4696_v12 = vadd.f32 %v4695_v5, %v4677_v59  ;;  %v7645_v43 = vld [vmem:[%s9543_s28] ss:$0 sm:$0xff] }
 0xf3c   : > { %v4904_v6 = vpop.f32.mrf.mxu0 }
 0xf3f   : > { %v4570_v7 = vpop.f32.mrf.mxu2  ;;  %v4698_v8 = vpop.f32.mrf.mxu3 }
 0xf40   : > { %v4571_v9 = vadd.f32 %v4570_v7, %v4552_v60  ;;  %v4699_v10 = vadd.f32 %v4698_v8, %v4680_v61  ;;  %v7385_v60 = vld [vmem:[%s8702_s3 + $0x68] sm:$0xff] }
 0xf41   : > { %v7401_v8 = vld [vmem:[%s8702_s3 + $0xe8] sm:$0xff] }
 0xf42   : > { %6901 = vmatpush.msk.msrb.mxu2 %vm1502_vm0, %v4699_v10  ;;  %6905 = vmatpush.msk.msrb.mxu1 %vm1502_vm0, %v4571_v9  ;;  %v7400_v10 = vld [vmem:[%s8702_s3 + $0xe0] sm:$0xff] }
 0xf44   : > { %v4906_v13 = vpop.f32.mrf.mxu0  ;;  %4733 = vmatpush.msrb.mxu2 %v4696_v12  ;;  %4771 = vmatpush.msrb.mxu1 %v4568_v11 }
 0xf46   : > { %4734 = vmatpush.msrb.mxu2 %v4694_v15  ;;  %4772 = vmatpush.msrb.mxu1 %v4566_v14  ;;  %v7399_v14 = vld [vmem:[%s8702_s3 + $0xd8] sm:$0xff]  ;;  %v7398_v15 = vld [vmem:[%s8702_s3 + $0xd0] sm:$0xff] }
 0xf47   : > { %v4572_v18 = vpop.f32.mrf.mxu2  ;;  %v4700_v19 = vpop.f32.mrf.mxu3  ;;  %6902 = vmatmul.msk.f32.vlgmr.msrb.gmra.mxu2 %vm4706_vm13, %v4703_v16  ;;  %6906 = vmatmul.msk.f32.vlgmr.msrb.gmra.mxu1 %vm4706_vm13, %v4574_v17  ;;  %v7397_v16 = vld [vmem:[%s8702_s3 + $0xc8] sm:$0xff]  ;;  %v7396_v17 = vld [vmem:[%s8702_s3 + $0xc0] sm:$0xff] }
 0xf48   : > { %5022 = vmatpush.bf16.msra.mxu1 %v7377_v44  ;;  %v5040_v44 = vld [vmem:[#allocation42 + $0x10] sm:$0xff] }
 0xf4c   : > { %5023 = vmatpush.bf16.msra.mxu1 %v7376_v46 }
 0xf4f   : > { %v4881_v22 = vpop.f32.mrf.mxu3  ;;  %6903 = vmatmul.msk.f32.gmra.mxu2 %vm4706_vm13, %v4704_v20  ;;  %6907 = vmatmul.msk.f32.gmra.mxu1 %vm4706_vm13, %v4575_v21 }
 0xf50   : > { %v4900_v56 = vadd.f32 %v4899_v0, %v4881_v22  ;;  %5024 = vmatpush.bf16.msra.mxu1 %v7375_v42  ;;  %v7391_v42 = vld [vmem:[%s8702_s3 + $0x98] sm:$0xff] }
 0xf54   : > { %5025 = vmatpush.bf16.msra.mxu1 %v7374_v49 }
 0xf57   : > { %v4883_v32 = vpop.f32.mrf.mxu3  ;;  %6904 = vmatmul.msk.f32.gmra.mxu2 %vm4706_vm13, %v4705_v23  ;;  %6908 = vmatmul.msk.f32.gmra.mxu1 %vm4706_vm13, %v4576_v27  ;;  %v5038_v23 = vld [vmem:[#allocation42] sm:$0xff] }
 0xf58   : > { %v4902_v37 = vadd.f32 %v4901_v3, %v4883_v32  ;;  %5026 = vmatpush.bf16.msra.mxu1 %v7373_v51  ;;  %v5265_v51 = vld [vmem:[#allocation42 + $0x40] sm:$0xff] }
 0xf5c   : > { %5027 = vmatpush.bf16.msra.mxu1 %v7372_v54 }
 0xf5f   : > { %v4886_v34 = vpop.f32.mrf.mxu3 }
 0xf60   : > { %v4905_v36 = vadd.f32 %v4904_v6, %v4886_v34  ;;  %5248 = vmatpush.bf16.msrb.mxu1 %v7389_v30  ;;  %v5110_v34 = vld [vmem:[#allocation42 + $0x20] sm:$0xff]  ;;  %v5268_v30 = vld [vmem:[#allocation42 + $0x58] sm:$0xf] }
 0xf62   : > { %6955 = vmatpush.msk.msra.mxu2 %vm1502_vm0, %v4905_v36  ;;  %v7395_v36 = vld [vmem:[%s8702_s3 + $0xb8] sm:$0xff]  ;;  %vm5559_vm0 = vcmask 224256  }
 0xf64   : > { %4938 = vmatpush.msra.mxu2 %v4902_v37  ;;  %5249 = vmatpush.bf16.msrb.mxu1 %v7388_v35  ;;  %v5039_v37 = vld [vmem:[#allocation42 + $0x8] sm:$0xff] }
 0xf66   : > { %4939 = vmatpush.msra.mxu2 %v4900_v56  ;;  %v7394_v56 = vld [vmem:[%s8702_s3 + $0xb0] sm:$0xff] }
 0xf67   : > { %v4888_v39 = vpop.f32.mrf.mxu3  ;;  %6956 = vmatmul.msk.f32.vlgmr.msra.gmra.mxu2 %vm4706_vm13, %v4909_v28 }
 0xf68   : > { %5093 = vmatpush.bf16.msrb.mxu2 %v7383_v45  ;;  %5250 = vmatpush.bf16.msrb.mxu1 %v7387_v38  ;;  %v7392_v45 = vld [vmem:[%s8702_s3 + $0xa0] sm:$0xff] }
 0xf6c   : > { %5094 = vmatpush.bf16.msrb.mxu2 %v7382_v24  ;;  %5251 = vmatpush.bf16.msrb.mxu1 %v7386_v25  ;;  %v5112_v24 = vld [vmem:[#allocation42 + $0x30] sm:$0xff]  ;;  %v5499_v25 = vld [vmem:[#allocation42 + $0x80] sm:$0xff] }
 0xf6f   : > { %6957 = vmatmul.msk.f32.gmra.mxu2 %vm4706_vm13, %v4910_v40  ;;  %v5111_v40 = vld [vmem:[#allocation42 + $0x28] sm:$0xff] }
 0xf70   : > { %5095 = vmatpush.bf16.msrb.mxu2 %v7381_v47  ;;  %5252 = vmatpush.bf16.msrb.mxu1 %v7385_v60  ;;  %v5041_v47 = vld [vmem:[#allocation42 + $0x18] sm:$0xf] }
 0xf74   : > { %5096 = vmatpush.bf16.msrb.mxu2 %v7380_v50  ;;  %5253 = vmatpush.bf16.msrb.mxu1 %v7384_v1  ;;  %v5113_v50 = vld [vmem:[#allocation42 + $0x38] sm:$0xf]  ;;  %v5383_v1 = vld [vmem:[#allocation42 + $0x68] sm:$0xff] }
 0xf77   : > { %6958 = vmatmul.msk.f32.gmra.mxu2 %vm4706_vm13, %v4911_v41  ;;  %v7393_v41 = vld [vmem:[%s8702_s3 + $0xa8] sm:$0xff] }
 0xf78   : > { %5097 = vmatpush.bf16.msrb.mxu2 %v7379_v52 }
 0xf7c   : > { %5098 = vmatpush.bf16.msrb.mxu2 %v7378_v55  ;;  %v5267_v55 = vld [vmem:[#allocation42 + $0x50] sm:$0xff] }
 0xfc4   : > { %v4774_v57 = vpop.f32.mrf.mxu1 }
 0xfca   : > { %v4736_v48 = vpop.f32.mrf.mxu2 }
 0xfcb   : > { %v4775_v58 = vadd.f32 %v4774_v57, %v4736_v48  ;;  %v7390_v48 = vld [vmem:[%s8702_s3 + $0x90] sm:$0xff] }
 0xfcc   : > { %v4777_v29 = vpop.f32.mrf.mxu1 }
 0xfd2   : > { %v4739_v53 = vpop.f32.mrf.mxu2 }
 0xfd3   : > { %v4778_v59 = vadd.f32 %v4777_v29, %v4739_v53  ;;  %v5266_v53 = vld [vmem:[#allocation42 + $0x48] sm:$0xff] }
 0xfd4   : > { %v4780_v4 = vpop.f32.mrf.mxu1 }
 0xfda   : > { %v4742_v26 = vpop.f32.mrf.mxu2 }
 0xfdb   : > { %v4781_v7 = vadd.f32 %v4780_v4, %v4742_v26 }
 0xfea   : > { %v4941_v31 = vpop.f32.mrf.mxu2 }
 0xfeb   : > { %v4950_v33 = vadd.f32 %v4941_v31, %v4775_v58 }
 0xfed   : > { %v4957_v62 = vadd.f32 %v7645_v43, %v4950_v33  ;;  %v5500_v33 = vld [vmem:[#allocation42 + $0x88] sm:$0xff] }
 0xfef   : > { %v4960_v2 = vmax.f32 %v4957_v62, 0.0 }
 0xff2   : > { %v4944_v61 = vpop.f32.mrf.mxu2 }
 0xff3   : > { %v4951_v63 = vadd.f32 %v4944_v61, %v4778_v59  ;;  %v5501_v59 = vld [vmem:[#allocation42 + $0x90] sm:$0xff]  ;;  %v5502_v61 = vld [vmem:[#allocation42 + $0x98] sm:$0xf] }
 0xff5   : > { %v4958_v0 = vadd.f32 %v7645_v43, %v4951_v63  ;;  %v5382_v63 = vld [vmem:[#allocation42 + $0x60] sm:$0xff] }
 0xff7   : > { %v4961_v3 = vmax.f32 %v4958_v0, 0.0 }
 0xff9   : > { %v9389_v5 = vpack.c.bf16 %v4961_v3, %v4960_v2  ;;  %v5384_v2 = vld [vmem:[#allocation42 + $0x70] sm:$0xff]  ;;  %v5385_v3 = vld [vmem:[#allocation42 + $0x78] sm:$0xf] }
 0xffa   : > { %v4947_v6 = vpop.f32.mrf.mxu2 }
 0xffb   : > { %6983 = vmatmul.msk.bf16.vlgmr.msra.gmra.mxu1 %vm5013_vm14, %v9389_v5  ;;  %7021 = vmatmul.msk.bf16.vlgmr.msrb.gmra.mxu2 %vm5013_vm14, %v9389_v5  ;;  %v4952_v9 = vadd.f32 %v4947_v6, %v4781_v7 }
 0xffc   : > { %5482 = vmatpush.bf16.msra.mxu1 %v7401_v8 }
 0xffd   : > { %v4959_v11 = vadd.f32 %v7645_v43, %v4952_v9 }
 0xfff   : > { %v4962_v12 = vmax.f32 %v4959_v11, 0.0 }
0x1000   : > { %5483 = vmatpush.bf16.msra.mxu1 %v7400_v10 }
0x1001   : > { %v9397_v13 = vpack.c.bf16 %v4962_v12, %v4962_v12 }
0x1004   : > { %5484 = vmatpush.bf16.msra.mxu1 %v7399_v14 }
0x1008   : > { %5485 = vmatpush.bf16.msra.mxu1 %v7398_v15 }
0x100b   : > { %6984 = vmatmul.msk.bf16.gmra.mxu1 %vm5013_vm14, %v9397_v13  ;;  %7022 = vmatmul.msk.bf16.gmra.mxu2 %vm5013_vm14, %v9397_v13 }
0x100c   : > { %5486 = vmatpush.bf16.msra.mxu1 %v7397_v16 }
0x1010   : > { %5487 = vmatpush.bf16.msra.mxu1 %v7396_v17  ;;  %v7646_v17 = vld [vmem:[%s8707_s17] ss:$0 sm:$0xff] }
0x101b   : > { %7067 = vmatmul.msk.bf16.vlgmr.msrb.gmra.mxu1 %vm5013_vm14, %v9389_v5 }
0x102b   : > { %7068 = vmatmul.msk.bf16.gmra.mxu1 %vm5013_vm14, %v9397_v13 }
0x103b   : > { %7151 = vmatmul.msk.bf16.vlgmr.msra.gmra.mxu1 %vm5013_vm14, %v9389_v5 }
0x104b   : > { %7152 = vmatmul.msk.bf16.gmra.mxu1 %vm5013_vm14, %v9397_v13 }
0x1078   : > { %v5029_v18 = vpop.f32.mrf.mxu1 }
0x107e   : > { %v5100_v19 = vpop.f32.mrf.mxu2 }
0x1080   : > { %v5031_v20 = vpop.f32.mrf.mxu1 }
0x1086   : > { %v5102_v21 = vpop.f32.mrf.mxu2 }
0x1088   : > { %v5034_v22 = vpop.f32.mrf.mxu1 }
0x1089   : > { %5181 = vmatpush.msrb.mxu0 %v5034_v22 }
0x108b   : > { %5182 = vmatpush.msrb.mxu0 %v5031_v20 }
0x108d   : > { %5183 = vmatpush.msrb.mxu0 %v5029_v18 }
0x108e   : > { %v5105_v27 = vpop.f32.mrf.mxu2  ;;  %7027 = vmatmul.msk.f32.vlgmr.msrb.gmra.mxu0 %vm5114_vm15, %v5038_v23 }
0x108f   : > { %5140 = vmatpush.msrb.mxu3 %v5105_v27 }
0x1090   : > { %v5036_v32 = vpop.f32.mrf.mxu1 }
0x1091   : > { %5141 = vmatpush.msrb.mxu3 %v5102_v21 }
0x1093   : > { %5142 = vmatpush.msrb.mxu3 %v5100_v19 }
0x1094   : > { %7023 = vmatmul.msk.f32.vlgmr.msrb.gmra.mxu3 %vm5114_vm15, %v5110_v34 }
0x1095   : > { %5365 = vmatpush.bf16.msra.mxu3 %v7395_v36 }
0x1096   : > { %v5107_v28 = vpop.f32.mrf.mxu2  ;;  %7028 = vmatmul.msk.f32.gmra.mxu0 %vm5114_vm15, %v5039_v37 }
0x1098   : > { %v5255_v39 = vpop.f32.mrf.mxu1 }
0x1099   : > { %5366 = vmatpush.bf16.msra.mxu3 %v7394_v56 }
0x109c   : > { %7024 = vmatmul.msk.f32.gmra.mxu3 %vm5114_vm15, %v5111_v40 }
0x109d   : > { %5367 = vmatpush.bf16.msra.mxu3 %v7393_v41 }
0x109e   : > { %7029 = vmatmul.msk.f32.gmra.mxu0 %vm5114_vm15, %v5040_v44 }
0x10a0   : > { %v5257_v46 = vpop.f32.mrf.mxu1 }
0x10a1   : > { %5368 = vmatpush.bf16.msra.mxu3 %v7392_v45 }
0x10a4   : > { %7025 = vmatmul.msk.f32.gmra.mxu3 %vm5114_vm15, %v5112_v24 }
0x10a5   : > { %5369 = vmatpush.bf16.msra.mxu3 %v7391_v42 }
0x10a6   : > { %7030 = vmatmul.msk.f32.gmra.mxu0 %vm5114_vm15, %v5041_v47 }
0x10a8   : > { %v5260_v49 = vpop.f32.mrf.mxu1 }
0x10a9   : > { %5294 = vmatpush.msra.mxu2 %v5260_v49  ;;  %5370 = vmatpush.bf16.msra.mxu3 %v7390_v48 }
0x10ab   : > { %5295 = vmatpush.msra.mxu2 %v5257_v46 }
0x10ac   : > { %7026 = vmatmul.msk.f32.gmra.mxu3 %vm5114_vm15, %v5113_v50 }
0x10ad   : > { %5296 = vmatpush.msra.mxu2 %v5255_v39 }
0x10ae   : > { %7069 = vmatmul.msk.f32.vlgmr.msra.gmra.mxu2 %vm5114_vm15, %v5265_v51 }
0x10b0   : > { %v5262_v52 = vpop.f32.mrf.mxu1 }
0x10b4   : > { %7109 = vmatmul.msk.bf16.vlgmr.msra.gmra.mxu3 %vm5013_vm14, %v9389_v5 }
0x10b6   : > { %7070 = vmatmul.msk.f32.gmra.mxu2 %vm5114_vm15, %v5266_v53 }
0x10b8   : > { %v5489_v54 = vpop.f32.mrf.mxu1 }
0x10be   : > { %7071 = vmatmul.msk.f32.gmra.mxu2 %vm5114_vm15, %v5267_v55 }
0x10c0   : > { %v5491_v26 = vpop.f32.mrf.mxu1 }
0x10c4   : > { %7110 = vmatmul.msk.bf16.gmra.mxu3 %vm5013_vm14, %v9397_v13 }
0x10c6   : > { %7072 = vmatmul.msk.f32.gmra.mxu2 %vm5114_vm15, %v5268_v30 }
0x10c8   : > { %v5494_v35 = vpop.f32.mrf.mxu1 }
0x10c9   : > { %5528 = vmatpush.msrb.mxu2 %v5494_v35 }
0x10cb   : > { %5529 = vmatpush.msrb.mxu2 %v5491_v26 }
0x10cd   : > { %5530 = vmatpush.msrb.mxu2 %v5489_v54 }
0x10ce   : > { %7153 = vmatmul.msk.f32.vlgmr.msrb.gmra.mxu2 %vm5114_vm15, %v5499_v25 }
0x10d0   : > { %v5496_v57 = vpop.f32.mrf.mxu1 }
0x10d6   : > { %7154 = vmatmul.msk.f32.gmra.mxu2 %vm5114_vm15, %v5500_v33 }
0x10de   : > { %7155 = vmatmul.msk.f32.gmra.mxu2 %vm5114_vm15, %v5501_v59 }
0x10e6   : > { %7156 = vmatmul.msk.f32.gmra.mxu2 %vm5114_vm15, %v5502_v61 }
0x110b   : > { %v5185_v5 = vpop.f32.mrf.mxu0 }
0x1113   : > { %v5188_v7 = vpop.f32.mrf.mxu0 }
0x1117   : > { %v5144_v31 = vpop.f32.mrf.mxu3 }
0x1118   : > { %v5186_v13 = vadd.f32 %v5185_v5, %v5144_v31 }
0x111b   : > { %v5191_v9 = vpop.f32.mrf.mxu0 }
0x111f   : > { %v5147_v38 = vpop.f32.mrf.mxu3 }
0x1120   : > { %v5189_v20 = vadd.f32 %v5188_v7, %v5147_v38 }
0x1123   : > { %v5194_v11 = vpop.f32.mrf.mxu0 }
0x1127   : > { %v5150_v58 = vpop.f32.mrf.mxu3 }
0x1128   : > { %v5192_v34 = vadd.f32 %v5191_v9, %v5150_v58 }
0x112f   : > { %v5153_v29 = vpop.f32.mrf.mxu3 }
0x1130   : > { %v5195_v41 = vadd.f32 %v5194_v11, %v5153_v29 }
0x1131   : > { %v5298_v4 = vpop.f32.mrf.mxu2 }
0x1132   : > { %v5310_v14 = vadd.f32 %v5298_v4, %v5186_v13 }
0x1137   : > { %v5372_v43 = vpop.f32.mrf.mxu3 }
0x1139   : > { %v5301_v6 = vpop.f32.mrf.mxu2 }
0x113a   : > { %v5311_v22 = vadd.f32 %v5301_v6, %v5189_v20 }
0x113f   : > { %v5374_v60 = vpop.f32.mrf.mxu3 }
0x1141   : > { %v5304_v8 = vpop.f32.mrf.mxu2 }
0x1142   : > { %v5312_v56 = vadd.f32 %v5304_v8, %v5192_v34 }
0x1147   : > { %v5377_v62 = vpop.f32.mrf.mxu3 }
0x1148   : > { %5411 = vmatpush.msra.mxu0 %v5377_v62 }
0x1149   : > { %v5307_v10 = vpop.f32.mrf.mxu2 }
0x114a   : > { %5412 = vmatpush.msra.mxu0 %v5374_v60  ;;  %v5313_v45 = vadd.f32 %v5307_v10, %v5195_v41 }
0x114c   : > { %5413 = vmatpush.msra.mxu0 %v5372_v43 }
0x114d   : > { %7111 = vmatmul.msk.f32.vlgmr.msra.gmra.mxu0 %vm5114_vm15, %v5382_v63 }
0x114f   : > { %v5379_v0 = vpop.f32.mrf.mxu3 }
0x1151   : > { %v5532_v12 = vpop.f32.mrf.mxu2 }
0x1155   : > { %7112 = vmatmul.msk.f32.gmra.mxu0 %vm5114_vm15, %v5383_v1 }
0x1159   : > { %v5535_v19 = vpop.f32.mrf.mxu2 }
0x115d   : > { %7113 = vmatmul.msk.f32.gmra.mxu0 %vm5114_vm15, %v5384_v2 }
0x1161   : > { %v5538_v37 = vpop.f32.mrf.mxu2 }
0x1165   : > { %7114 = vmatmul.msk.f32.gmra.mxu0 %vm5114_vm15, %v5385_v3 }
0x1169   : > { %v5541_v24 = vpop.f32.mrf.mxu2 }
0x11ca   : > { %v5415_v15 = vpop.f32.mrf.mxu0 }
0x11cb   : > { %v5427_v16 = vadd.f32 %v5415_v15, %v5310_v14 }
0x11cd   : > { %v5544_v18 = vadd.f32 %v5532_v12, %v5427_v16 }
0x11cf   : > { %v5552_v21 = vadd.f32 %v7646_v17, %v5544_v18 }
0x11d1   : > { %5556 = vst.msk [vmem:[%s1472_s8] sm:$0xff] %vm1495_vm1, %v5552_v21 }
0x11d2   : > { %v5418_v23 = vpop.f32.mrf.mxu0 }
0x11d3   : > { %v5428_v27 = vadd.f32 %v5418_v23, %v5311_v22 }
0x11d5   : > { %v5545_v32 = vadd.f32 %v5535_v19, %v5428_v27 }
0x11d7   : > { %v5553_v36 = vadd.f32 %v7646_v17, %v5545_v32 }
0x11d9   : > { %5557 = vst.msk [vmem:[%s1472_s8 + $0x8] sm:$0xff] %vm1495_vm1, %v5553_v36 }
0x11da   : > { %v5421_v28 = vpop.f32.mrf.mxu0 }
0x11db   : > { %v5429_v39 = vadd.f32 %v5421_v28, %v5312_v56 }
0x11dd   : > { %v5546_v40 = vadd.f32 %v5538_v37, %v5429_v39 }
0x11df   : > { %v5554_v44 = vadd.f32 %v7646_v17, %v5546_v40 }
0x11e1   : > { %5558 = vst.msk [vmem:[%s1472_s8 + $0x10] sm:$0xff] %vm1495_vm1, %v5554_v44 }
0x11e2   : > { %v5424_v46 = vpop.f32.mrf.mxu0 }
0x11e3   : > { %v5430_v42 = vadd.f32 %v5424_v46, %v5313_v45 }
0x11e5   : > { %v5547_v47 = vadd.f32 %v5541_v24, %v5430_v42 }
0x11e7   : > { %v5555_v48 = vadd.f32 %v7646_v17, %v5547_v47 }
0x11e9   : > { %5560 = vst.msk [vmem:[%s1472_s8 + $0x18] sm:$0xf] %vm5559_vm0, %v5555_v48 }
0x11ea PF: > { %s93_s15 = sadd.s32 1, %s8465_s15  }
0x11eb   : > { %p90_p3 = scmp.ge.s32.totalorder %s93_s15, 4  }
0x11ed   :  { %92 = sbr.rel (!%p90_p3) target bundleno = 74 (0x4a), region = 377 }
0x11f2   :  { %5582 = vsyncpa [#allocation3], 1 }
0x11f3   :  { %5584 = vsyncpa [#allocation3 + $0x1], 1 }
0x11f4   :  { %5585 = vsyncpa [#allocation5], 1 }
0x11f5   :  { %5586 = vsyncpa [#allocation8], 1 }
0x11f6   :  { %5587 = vsyncpa [#allocation11], 1 }
0x11f7   :  { %5588 = vsyncpa [#allocation14], 1 }
0x11f8   :  { %5589 = vsyncpa [#allocation17], 1 }
0x11f9   :  { %5590 = vsyncpa [#allocation20], 1 }
0x11fa   :  { %5591 = vsyncpa [#allocation23], 1 }
0x11fb   :  { %5592 = vsyncpa [#allocation26], 1 }
0x11fc   :  { %5593 = vsyncpa [#allocation29], 1 }
0x11fd   :  { %5594 = vsyncpa [#allocation32], 1 }
0x11fe   :  { %5595 = vsyncpa [#allocation35], 1 }
0x11ff   :  { %5596 = vsyncpa [#allocation38], 1 }
0x1200   :  { %5597 = vsyncpa [#allocation41], 1 }

</bundles_post_ra>
